<compile_context>
chip_gen: v5e
topology: v5e:2x2
jax: 0.10.0
libtpu: 0.0.40
codegen_flags: <defaults>
</compile_context>

<pallas_src>
import functools

import jax
import jax.numpy as jnp
from jax import lax
from jax.experimental import pallas as pl
from jax.experimental.pallas import tpu as pltpu

K = 7   # conv kernel size
P = 3   # conv padding


def _spatial_attention_kernel(w_ref, x_ref, o_ref, *, H, W):
    # w_ref: SMEM, flat (2*K*K,) conv weights, (c, ky, kx) row-major.
    # x_ref: VMEM, (Nb, C, H*W) input block (spatial dims pre-flattened).
    # o_ref: VMEM, (Nb, 1, H*W) lane-dense output block.
    Nb, C, HW = x_ref.shape

    # ---- channel mean / max, chunked: only (Nb, HW) accumulators stay live.
    cc = max(1, min(C, max(1, 8192 // max(1, Nb * HW))))
    s_acc = jnp.zeros((Nb, HW), jnp.float32)
    m_acc = jnp.full((Nb, HW), -jnp.inf, jnp.float32)
    c0 = 0
    while c0 < C:                                   # static compile-time loop
        c1 = min(C, c0 + cc)
        xc = x_ref[:, c0:c1, :].astype(jnp.float32)  # (Nb, chunk, HW)
        s_acc = s_acc + jnp.sum(xc, axis=1)
        m_acc = jnp.maximum(m_acc, jnp.max(xc, axis=1))
        c0 = c1
    avg = s_acc * (1.0 / C)                          # compile-time 1/C

    # ---- 7x7 conv, 2->1 channels, on the flat row-major spatial layout.
    # Tap (dy, dx): out[f] += w * in[f + dy*W + dx] when column x+dx is in
    # range (per-kx mask); row-out-of-range offsets read the zero extension.
    PAD = P * (W + 1)                                # covers |dy*W + dx|
    zpad = jnp.zeros((Nb, PAD), jnp.float32)
    zp_a = jnp.concatenate([zpad, avg, zpad], axis=-1)     # (Nb, HW + 2*PAD)
    zp_m = jnp.concatenate([zpad, m_acc, zpad], axis=-1)

    col = lax.broadcasted_iota(jnp.int32, (Nb, HW), 1) % W  # hoisted
    acc = jnp.zeros((Nb, HW), jnp.float32)
    for kx in range(K):
        dx = kx - P
        mask = jnp.logical_and(col + dx >= 0, col + dx < W).astype(jnp.float32)
        part = jnp.zeros((Nb, HW), jnp.float32)
        for ky in range(K):
            dy = ky - P
            off = PAD + dy * W + dx                  # static slice offset
            wa = w_ref[ky * K + kx]                  # avg-channel weight
            wm = w_ref[K * K + ky * K + kx]          # max-channel weight
            part = part + wa * zp_a[:, off:off + HW] + wm * zp_m[:, off:off + HW]
        acc = acc + mask * part                      # one mask multiply per kx

    o_ref[:, 0, :] = jax.nn.sigmoid(acc).astype(o_ref.dtype)


def spatial_attention(x, conv_w, *, block_n=None):
    """x: (N, C, H, W); conv_w: (1, 2, K, K) no-bias conv -> (N, 1, H, W)."""
    N, C, H, W = x.shape
    assert conv_w.shape == (1, 2, K, K)
    HW = H * W

    x_flat = x.reshape(N, C, HW)                     # lane-dense spatial layout
    w_flat = conv_w.reshape(-1).astype(jnp.float32)  # (2*K*K,)

    if block_n is None:
        # Batch several images per grid step (bigger DMAs) but keep >= 2 grid
        # steps (feeds both v7x TensorCores) and modest vreg pressure.
        per_img = C * HW * x.dtype.itemsize
        block_n = max(1, min(N, 8, (512 * 1024) // max(1, per_img)))
        if N >= 2:
            block_n = max(1, min(block_n, N // 2))
        while N % block_n != 0:
            block_n -= 1
    grid = (N // block_n,)

    block_bytes = block_n * C * HW * x.dtype.itemsize
    vmem_limit = int(min(64 * 1024 * 1024,
                         max(16 * 1024 * 1024, 8 * block_bytes)))

    kernel = functools.partial(_spatial_attention_kernel, H=H, W=W)
    out_flat = pl.pallas_call(
        kernel,
        out_shape=jax.ShapeDtypeStruct((N, 1, HW), x.dtype),
        grid_spec=pltpu.PrefetchScalarGridSpec(
            num_scalar_prefetch=0,
            grid=grid,
            in_specs=[
                pl.BlockSpec(memory_space=pltpu.MemorySpace.SMEM),    # weights
                pl.BlockSpec((block_n, C, HW), lambda n: (n, 0, 0)),  # x
            ],
            out_specs=pl.BlockSpec((block_n, 1, HW), lambda n: (n, 0, 0)),
        ),
        compiler_params=pltpu.CompilerParams(
            dimension_semantics=("parallel",),
            vmem_limit_bytes=vmem_limit,
        ),
    )(w_flat, x_flat)

    return out_flat.reshape(N, 1, H, W)


def spatial_attention_ref(x, conv_w):
    """Pure-JAX reference mirroring the PyTorch module."""
    avg = jnp.mean(x, axis=1, keepdims=True)
    mx = jnp.max(x, axis=1, keepdims=True)
    cat = jnp.concatenate([avg, mx], axis=1)                 # (N, 2, H, W)
    y = lax.conv_general_dilated(
        cat, conv_w,
        window_strides=(1, 1),
        padding=((P, P), (P, P)),
        dimension_numbers=("NCHW", "OIHW", "NCHW"))
    return jax.nn.sigmoid(y)


if __name__ == "__main__":
    key = jax.random.PRNGKey(0)
    kx_key, kw_key = jax.random.split(key)

    N, C, H, W = 2, 4, 16, 16
    x = jax.random.normal(kx_key, (N, C, H, W), dtype=jnp.float32)

    # Deterministic Conv2d(2, 1, 7, bias=False) weights, kaiming-uniform-style.
    fan_in = 2 * K * K
    bound = 1.0 / jnp.sqrt(jnp.float32(fan_in))
    conv_w = jax.random.uniform(kw_key, (1, 2, K, K), dtype=jnp.float32,
                                minval=-bound, maxval=bound)

    out = spatial_attention(x, conv_w)
    out = jax.block_until_ready(out)

    ref = spatial_attention_ref(x, conv_w)
    assert out.shape == (N, 1, H, W)
    assert jnp.allclose(out, ref, atol=1e-5, rtol=1e-5)

    print("KERNEL_OK")
</pallas_src>

<mosaic_0001>
module attributes {stable_mosaic.version = 11 : i64} {
  func.func @_spatial_attention_kernel(%arg0: i32, %arg1: memref<98xf32, #tpu.memory_space<smem>>, %arg2: memref<1x4x256xf32, #tpu.memory_space<vmem>>, %arg3: memref<1x1x256xf32, #tpu.memory_space<vmem>>) attributes {dimension_semantics = [#tpu.dimension_semantics<parallel>], iteration_bounds = array<i64: 2>, scalar_prefetch = 0 : i64, scratch_operands = 0 : i64, tpu.core_type = #tpu.core_type<tc>, window_params = [{transform_indices = @transform_0, window_bounds = array<i64: 98>}, {transform_indices = @transform_1, window_bounds = array<i64: 1, 4, 256>}, {transform_indices = @transform_2, window_bounds = array<i64: 1, 1, 256>}]} {
    %cst = arith.constant 0.000000e+00 : f32
    %0 = vector.broadcast %cst : f32 to vector<1x256xf32>
    %cst_0 = arith.constant 0xFF800000 : f32
    %1 = vector.broadcast %cst_0 : f32 to vector<1x256xf32>
    %c0 = arith.constant 0 : index
    %c0_1 = arith.constant 0 : index
    %c0_2 = arith.constant 0 : index
    %2 = vector.load %arg2[%c0, %c0_1, %c0_2] : memref<1x4x256xf32, #tpu.memory_space<vmem>>, vector<1x4x256xf32>
    %cst_3 = arith.constant dense<0.000000e+00> : vector<1x256xf32>
    %3 = vector.multi_reduction <add>, %2, %cst_3 [1] : vector<1x4x256xf32> to vector<1x256xf32>
    %4 = arith.addf %0, %3 : vector<1x256xf32>
    %cst_4 = arith.constant dense<0xFF800000> : vector<1x256xf32>
    %5 = vector.multi_reduction <maximumf>, %2, %cst_4 [1] : vector<1x4x256xf32> to vector<1x256xf32>
    %6 = arith.maximumf %1, %5 : vector<1x256xf32>
    %cst_5 = arith.constant 2.500000e-01 : f32
    %7 = vector.broadcast %cst_5 : f32 to vector<1x256xf32>
    %8 = arith.mulf %4, %7 : vector<1x256xf32>
    %cst_6 = arith.constant 0.000000e+00 : f32
    %9 = vector.broadcast %cst_6 : f32 to vector<1x51xf32>
    %10 = tpu.concatenate %9, %8, %9 in 1 : vector<1x51xf32>, vector<1x256xf32>, vector<1x51xf32> -> vector<1x358xf32>
    %11 = tpu.concatenate %9, %6, %9 in 1 : vector<1x51xf32>, vector<1x256xf32>, vector<1x51xf32> -> vector<1x358xf32>
    %12 = tpu.iota {dimensions = array<i32: 1>} : vector<1x256xi32>
    %c16_i32 = arith.constant 16 : i32
    %c0_i32 = arith.constant 0 : i32
    %13 = arith.cmpi eq, %c16_i32, %c0_i32 : i32
    %c1_i32 = arith.constant 1 : i32
    %14 = arith.select %13, %c1_i32, %c16_i32 : i32
    %15 = vector.broadcast %14 : i32 to vector<1x256xi32>
    %16 = arith.remsi %12, %15 : vector<1x256xi32>
    %c0_i32_7 = arith.constant 0 : i32
    %17 = vector.broadcast %c0_i32_7 : i32 to vector<1x256xi32>
    %18 = arith.cmpi ne, %16, %17 : vector<1x256xi32>
    %c0_i32_8 = arith.constant 0 : i32
    %19 = vector.broadcast %c0_i32_8 : i32 to vector<1x256xi32>
    %20 = arith.cmpi slt, %16, %19 : vector<1x256xi32>
    %c0_i32_9 = arith.constant 0 : i32
    %21 = arith.cmpi slt, %14, %c0_i32_9 : i32
    %22 = vector.broadcast %21 : i1 to vector<1x256xi1>
    %23 = vector.broadcast %22 : vector<1x256xi1> to vector<1x256xi1>
    %24 = arith.xori %20, %23 : vector<1x256xi1>
    %25 = arith.andi %24, %18 : vector<1x256xi1>
    %26 = vector.broadcast %14 : i32 to vector<1x256xi32>
    %27 = arith.addi %16, %26 : vector<1x256xi32>
    %28 = arith.select %25, %27, %16 : vector<1x256xi1>, vector<1x256xi32>
    %cst_10 = arith.constant 0.000000e+00 : f32
    %29 = vector.broadcast %cst_10 : f32 to vector<1x256xf32>
    %c-3_i32 = arith.constant -3 : i32
    %30 = vector.broadcast %c-3_i32 : i32 to vector<1x256xi32>
    %31 = arith.addi %28, %30 : vector<1x256xi32>
    %c0_i32_11 = arith.constant 0 : i32
    %32 = vector.broadcast %c0_i32_11 : i32 to vector<1x256xi32>
    %33 = arith.cmpi sge, %31, %32 : vector<1x256xi32>
    %c-3_i32_12 = arith.constant -3 : i32
    %34 = vector.broadcast %c-3_i32_12 : i32 to vector<1x256xi32>
    %35 = arith.addi %28, %34 : vector<1x256xi32>
    %c16_i32_13 = arith.constant 16 : i32
    %36 = vector.broadcast %c16_i32_13 : i32 to vector<1x256xi32>
    %37 = arith.cmpi slt, %35, %36 : vector<1x256xi32>
    %38 = arith.andi %33, %37 : vector<1x256xi1>
    %39 = arith.extui %38 : vector<1x256xi1> to vector<1x256xi32>
    %40 = arith.sitofp %39 : vector<1x256xi32> to vector<1x256xf32>
    %cst_14 = arith.constant 0.000000e+00 : f32
    %41 = vector.broadcast %cst_14 : f32 to vector<1x256xf32>
    %c0_15 = arith.constant 0 : index
    %42 = memref.load %arg1[%c0_15] : memref<98xf32, #tpu.memory_space<smem>>
    %c49 = arith.constant 49 : index
    %43 = memref.load %arg1[%c49] : memref<98xf32, #tpu.memory_space<smem>>
    %44 = vector.extract_strided_slice %10 {offsets = [0, 0], sizes = [1, 256], strides = [1, 1]} : vector<1x358xf32> to vector<1x256xf32>
    %45 = vector.broadcast %42 : f32 to vector<1x256xf32>
    %46 = arith.mulf %45, %44 : vector<1x256xf32>
    %47 = arith.addf %41, %46 : vector<1x256xf32>
    %48 = vector.extract_strided_slice %11 {offsets = [0, 0], sizes = [1, 256], strides = [1, 1]} : vector<1x358xf32> to vector<1x256xf32>
    %49 = vector.broadcast %43 : f32 to vector<1x256xf32>
    %50 = arith.mulf %49, %48 : vector<1x256xf32>
    %51 = arith.addf %47, %50 : vector<1x256xf32>
    %c7 = arith.constant 7 : index
    %52 = memref.load %arg1[%c7] : memref<98xf32, #tpu.memory_space<smem>>
    %c56 = arith.constant 56 : index
    %53 = memref.load %arg1[%c56] : memref<98xf32, #tpu.memory_space<smem>>
    %54 = vector.extract_strided_slice %10 {offsets = [0, 16], sizes = [1, 256], strides = [1, 1]} : vector<1x358xf32> to vector<1x256xf32>
    %55 = vector.broadcast %52 : f32 to vector<1x256xf32>
    %56 = arith.mulf %55, %54 : vector<1x256xf32>
    %57 = arith.addf %51, %56 : vector<1x256xf32>
    %58 = vector.extract_strided_slice %11 {offsets = [0, 16], sizes = [1, 256], strides = [1, 1]} : vector<1x358xf32> to vector<1x256xf32>
    %59 = vector.broadcast %53 : f32 to vector<1x256xf32>
    %60 = arith.mulf %59, %58 : vector<1x256xf32>
    %61 = arith.addf %57, %60 : vector<1x256xf32>
    %c14 = arith.constant 14 : index
    %62 = memref.load %arg1[%c14] : memref<98xf32, #tpu.memory_space<smem>>
    %c63 = arith.constant 63 : index
    %63 = memref.load %arg1[%c63] : memref<98xf32, #tpu.memory_space<smem>>
    %64 = vector.extract_strided_slice %10 {offsets = [0, 32], sizes = [1, 256], strides = [1, 1]} : vector<1x358xf32> to vector<1x256xf32>
    %65 = vector.broadcast %62 : f32 to vector<1x256xf32>
    %66 = arith.mulf %65, %64 : vector<1x256xf32>
    %67 = arith.addf %61, %66 : vector<1x256xf32>
    %68 = vector.extract_strided_slice %11 {offsets = [0, 32], sizes = [1, 256], strides = [1, 1]} : vector<1x358xf32> to vector<1x256xf32>
    %69 = vector.broadcast %63 : f32 to vector<1x256xf32>
    %70 = arith.mulf %69, %68 : vector<1x256xf32>
    %71 = arith.addf %67, %70 : vector<1x256xf32>
    %c21 = arith.constant 21 : index
    %72 = memref.load %arg1[%c21] : memref<98xf32, #tpu.memory_space<smem>>
    %c70 = arith.constant 70 : index
    %73 = memref.load %arg1[%c70] : memref<98xf32, #tpu.memory_space<smem>>
    %74 = vector.extract_strided_slice %10 {offsets = [0, 48], sizes = [1, 256], strides = [1, 1]} : vector<1x358xf32> to vector<1x256xf32>
    %75 = vector.broadcast %72 : f32 to vector<1x256xf32>
    %76 = arith.mulf %75, %74 : vector<1x256xf32>
    %77 = arith.addf %71, %76 : vector<1x256xf32>
    %78 = vector.extract_strided_slice %11 {offsets = [0, 48], sizes = [1, 256], strides = [1, 1]} : vector<1x358xf32> to vector<1x256xf32>
    %79 = vector.broadcast %73 : f32 to vector<1x256xf32>
    %80 = arith.mulf %79, %78 : vector<1x256xf32>
    %81 = arith.addf %77, %80 : vector<1x256xf32>
    %c28 = arith.constant 28 : index
    %82 = memref.load %arg1[%c28] : memref<98xf32, #tpu.memory_space<smem>>
    %c77 = arith.constant 77 : index
    %83 = memref.load %arg1[%c77] : memref<98xf32, #tpu.memory_space<smem>>
    %84 = vector.extract_strided_slice %10 {offsets = [0, 64], sizes = [1, 256], strides = [1, 1]} : vector<1x358xf32> to vector<1x256xf32>
    %85 = vector.broadcast %82 : f32 to vector<1x256xf32>
    %86 = arith.mulf %85, %84 : vector<1x256xf32>
    %87 = arith.addf %81, %86 : vector<1x256xf32>
    %88 = vector.extract_strided_slice %11 {offsets = [0, 64], sizes = [1, 256], strides = [1, 1]} : vector<1x358xf32> to vector<1x256xf32>
    %89 = vector.broadcast %83 : f32 to vector<1x256xf32>
    %90 = arith.mulf %89, %88 : vector<1x256xf32>
    %91 = arith.addf %87, %90 : vector<1x256xf32>
    %c35 = arith.constant 35 : index
    %92 = memref.load %arg1[%c35] : memref<98xf32, #tpu.memory_space<smem>>
    %c84 = arith.constant 84 : index
    %93 = memref.load %arg1[%c84] : memref<98xf32, #tpu.memory_space<smem>>
    %94 = vector.extract_strided_slice %10 {offsets = [0, 80], sizes = [1, 256], strides = [1, 1]} : vector<1x358xf32> to vector<1x256xf32>
    %95 = vector.broadcast %92 : f32 to vector<1x256xf32>
    %96 = arith.mulf %95, %94 : vector<1x256xf32>
    %97 = arith.addf %91, %96 : vector<1x256xf32>
    %98 = vector.extract_strided_slice %11 {offsets = [0, 80], sizes = [1, 256], strides = [1, 1]} : vector<1x358xf32> to vector<1x256xf32>
    %99 = vector.broadcast %93 : f32 to vector<1x256xf32>
    %100 = arith.mulf %99, %98 : vector<1x256xf32>
    %101 = arith.addf %97, %100 : vector<1x256xf32>
    %c42 = arith.constant 42 : index
    %102 = memref.load %arg1[%c42] : memref<98xf32, #tpu.memory_space<smem>>
    %c91 = arith.constant 91 : index
    %103 = memref.load %arg1[%c91] : memref<98xf32, #tpu.memory_space<smem>>
    %104 = vector.extract_strided_slice %10 {offsets = [0, 96], sizes = [1, 256], strides = [1, 1]} : vector<1x358xf32> to vector<1x256xf32>
    %105 = vector.broadcast %102 : f32 to vector<1x256xf32>
    %106 = arith.mulf %105, %104 : vector<1x256xf32>
    %107 = arith.addf %101, %106 : vector<1x256xf32>
    %108 = vector.extract_strided_slice %11 {offsets = [0, 96], sizes = [1, 256], strides = [1, 1]} : vector<1x358xf32> to vector<1x256xf32>
    %109 = vector.broadcast %103 : f32 to vector<1x256xf32>
    %110 = arith.mulf %109, %108 : vector<1x256xf32>
    %111 = arith.addf %107, %110 : vector<1x256xf32>
    %112 = arith.mulf %40, %111 : vector<1x256xf32>
    %113 = arith.addf %29, %112 : vector<1x256xf32>
    %c-2_i32 = arith.constant -2 : i32
    %114 = vector.broadcast %c-2_i32 : i32 to vector<1x256xi32>
    %115 = arith.addi %28, %114 : vector<1x256xi32>
    %c0_i32_16 = arith.constant 0 : i32
    %116 = vector.broadcast %c0_i32_16 : i32 to vector<1x256xi32>
    %117 = arith.cmpi sge, %115, %116 : vector<1x256xi32>
    %c-2_i32_17 = arith.constant -2 : i32
    %118 = vector.broadcast %c-2_i32_17 : i32 to vector<1x256xi32>
    %119 = arith.addi %28, %118 : vector<1x256xi32>
    %c16_i32_18 = arith.constant 16 : i32
    %120 = vector.broadcast %c16_i32_18 : i32 to vector<1x256xi32>
    %121 = arith.cmpi slt, %119, %120 : vector<1x256xi32>
    %122 = arith.andi %117, %121 : vector<1x256xi1>
    %123 = arith.extui %122 : vector<1x256xi1> to vector<1x256xi32>
    %124 = arith.sitofp %123 : vector<1x256xi32> to vector<1x256xf32>
    %cst_19 = arith.constant 0.000000e+00 : f32
    %125 = vector.broadcast %cst_19 : f32 to vector<1x256xf32>
    %c1 = arith.constant 1 : index
    %126 = memref.load %arg1[%c1] : memref<98xf32, #tpu.memory_space<smem>>
    %c50 = arith.constant 50 : index
    %127 = memref.load %arg1[%c50] : memref<98xf32, #tpu.memory_space<smem>>
    %128 = vector.extract_strided_slice %10 {offsets = [0, 1], sizes = [1, 256], strides = [1, 1]} : vector<1x358xf32> to vector<1x256xf32>
    %129 = vector.broadcast %126 : f32 to vector<1x256xf32>
    %130 = arith.mulf %129, %128 : vector<1x256xf32>
    %131 = arith.addf %125, %130 : vector<1x256xf32>
    %132 = vector.extract_strided_slice %11 {offsets = [0, 1], sizes = [1, 256], strides = [1, 1]} : vector<1x358xf32> to vector<1x256xf32>
    %133 = vector.broadcast %127 : f32 to vector<1x256xf32>
    %134 = arith.mulf %133, %132 : vector<1x256xf32>
    %135 = arith.addf %131, %134 : vector<1x256xf32>
    %c8 = arith.constant 8 : index
    %136 = memref.load %arg1[%c8] : memref<98xf32, #tpu.memory_space<smem>>
    %c57 = arith.constant 57 : index
    %137 = memref.load %arg1[%c57] : memref<98xf32, #tpu.memory_space<smem>>
    %138 = vector.extract_strided_slice %10 {offsets = [0, 17], sizes = [1, 256], strides = [1, 1]} : vector<1x358xf32> to vector<1x256xf32>
    %139 = vector.broadcast %136 : f32 to vector<1x256xf32>
    %140 = arith.mulf %139, %138 : vector<1x256xf32>
    %141 = arith.addf %135, %140 : vector<1x256xf32>
    %142 = vector.extract_strided_slice %11 {offsets = [0, 17], sizes = [1, 256], strides = [1, 1]} : vector<1x358xf32> to vector<1x256xf32>
    %143 = vector.broadcast %137 : f32 to vector<1x256xf32>
    %144 = arith.mulf %143, %142 : vector<1x256xf32>
    %145 = arith.addf %141, %144 : vector<1x256xf32>
    %c15 = arith.constant 15 : index
    %146 = memref.load %arg1[%c15] : memref<98xf32, #tpu.memory_space<smem>>
    %c64 = arith.constant 64 : index
    %147 = memref.load %arg1[%c64] : memref<98xf32, #tpu.memory_space<smem>>
    %148 = vector.extract_strided_slice %10 {offsets = [0, 33], sizes = [1, 256], strides = [1, 1]} : vector<1x358xf32> to vector<1x256xf32>
    %149 = vector.broadcast %146 : f32 to vector<1x256xf32>
    %150 = arith.mulf %149, %148 : vector<1x256xf32>
    %151 = arith.addf %145, %150 : vector<1x256xf32>
    %152 = vector.extract_strided_slice %11 {offsets = [0, 33], sizes = [1, 256], strides = [1, 1]} : vector<1x358xf32> to vector<1x256xf32>
    %153 = vector.broadcast %147 : f32 to vector<1x256xf32>
    %154 = arith.mulf %153, %152 : vector<1x256xf32>
    %155 = arith.addf %151, %154 : vector<1x256xf32>
    %c22 = arith.constant 22 : index
    %156 = memref.load %arg1[%c22] : memref<98xf32, #tpu.memory_space<smem>>
    %c71 = arith.constant 71 : index
    %157 = memref.load %arg1[%c71] : memref<98xf32, #tpu.memory_space<smem>>
    %158 = vector.extract_strided_slice %10 {offsets = [0, 49], sizes = [1, 256], strides = [1, 1]} : vector<1x358xf32> to vector<1x256xf32>
    %159 = vector.broadcast %156 : f32 to vector<1x256xf32>
    %160 = arith.mulf %159, %158 : vector<1x256xf32>
    %161 = arith.addf %155, %160 : vector<1x256xf32>
    %162 = vector.extract_strided_slice %11 {offsets = [0, 49], sizes = [1, 256], strides = [1, 1]} : vector<1x358xf32> to vector<1x256xf32>
    %163 = vector.broadcast %157 : f32 to vector<1x256xf32>
    %164 = arith.mulf %163, %162 : vector<1x256xf32>
    %165 = arith.addf %161, %164 : vector<1x256xf32>
    %c29 = arith.constant 29 : index
    %166 = memref.load %arg1[%c29] : memref<98xf32, #tpu.memory_space<smem>>
    %c78 = arith.constant 78 : index
    %167 = memref.load %arg1[%c78] : memref<98xf32, #tpu.memory_space<smem>>
    %168 = vector.extract_strided_slice %10 {offsets = [0, 65], sizes = [1, 256], strides = [1, 1]} : vector<1x358xf32> to vector<1x256xf32>
    %169 = vector.broadcast %166 : f32 to vector<1x256xf32>
    %170 = arith.mulf %169, %168 : vector<1x256xf32>
    %171 = arith.addf %165, %170 : vector<1x256xf32>
    %172 = vector.extract_strided_slice %11 {offsets = [0, 65], sizes = [1, 256], strides = [1, 1]} : vector<1x358xf32> to vector<1x256xf32>
    %173 = vector.broadcast %167 : f32 to vector<1x256xf32>
    %174 = arith.mulf %173, %172 : vector<1x256xf32>
    %175 = arith.addf %171, %174 : vector<1x256xf32>
    %c36 = arith.constant 36 : index
    %176 = memref.load %arg1[%c36] : memref<98xf32, #tpu.memory_space<smem>>
    %c85 = arith.constant 85 : index
    %177 = memref.load %arg1[%c85] : memref<98xf32, #tpu.memory_space<smem>>
    %178 = vector.extract_strided_slice %10 {offsets = [0, 81], sizes = [1, 256], strides = [1, 1]} : vector<1x358xf32> to vector<1x256xf32>
    %179 = vector.broadcast %176 : f32 to vector<1x256xf32>
    %180 = arith.mulf %179, %178 : vector<1x256xf32>
    %181 = arith.addf %175, %180 : vector<1x256xf32>
    %182 = vector.extract_strided_slice %11 {offsets = [0, 81], sizes = [1, 256], strides = [1, 1]} : vector<1x358xf32> to vector<1x256xf32>
    %183 = vector.broadcast %177 : f32 to vector<1x256xf32>
    %184 = arith.mulf %183, %182 : vector<1x256xf32>
    %185 = arith.addf %181, %184 : vector<1x256xf32>
    %c43 = arith.constant 43 : index
    %186 = memref.load %arg1[%c43] : memref<98xf32, #tpu.memory_space<smem>>
    %c92 = arith.constant 92 : index
    %187 = memref.load %arg1[%c92] : memref<98xf32, #tpu.memory_space<smem>>
    %188 = vector.extract_strided_slice %10 {offsets = [0, 97], sizes = [1, 256], strides = [1, 1]} : vector<1x358xf32> to vector<1x256xf32>
    %189 = vector.broadcast %186 : f32 to vector<1x256xf32>
    %190 = arith.mulf %189, %188 : vector<1x256xf32>
    %191 = arith.addf %185, %190 : vector<1x256xf32>
    %192 = vector.extract_strided_slice %11 {offsets = [0, 97], sizes = [1, 256], strides = [1, 1]} : vector<1x358xf32> to vector<1x256xf32>
    %193 = vector.broadcast %187 : f32 to vector<1x256xf32>
    %194 = arith.mulf %193, %192 : vector<1x256xf32>
    %195 = arith.addf %191, %194 : vector<1x256xf32>
    %196 = arith.mulf %124, %195 : vector<1x256xf32>
    %197 = arith.addf %113, %196 : vector<1x256xf32>
    %c-1_i32 = arith.constant -1 : i32
    %198 = vector.broadcast %c-1_i32 : i32 to vector<1x256xi32>
    %199 = arith.addi %28, %198 : vector<1x256xi32>
    %c0_i32_20 = arith.constant 0 : i32
    %200 = vector.broadcast %c0_i32_20 : i32 to vector<1x256xi32>
    %201 = arith.cmpi sge, %199, %200 : vector<1x256xi32>
    %c-1_i32_21 = arith.constant -1 : i32
    %202 = vector.broadcast %c-1_i32_21 : i32 to vector<1x256xi32>
    %203 = arith.addi %28, %202 : vector<1x256xi32>
    %c16_i32_22 = arith.constant 16 : i32
    %204 = vector.broadcast %c16_i32_22 : i32 to vector<1x256xi32>
    %205 = arith.cmpi slt, %203, %204 : vector<1x256xi32>
    %206 = arith.andi %201, %205 : vector<1x256xi1>
    %207 = arith.extui %206 : vector<1x256xi1> to vector<1x256xi32>
    %208 = arith.sitofp %207 : vector<1x256xi32> to vector<1x256xf32>
    %cst_23 = arith.constant 0.000000e+00 : f32
    %209 = vector.broadcast %cst_23 : f32 to vector<1x256xf32>
    %c2 = arith.constant 2 : index
    %210 = memref.load %arg1[%c2] : memref<98xf32, #tpu.memory_space<smem>>
    %c51 = arith.constant 51 : index
    %211 = memref.load %arg1[%c51] : memref<98xf32, #tpu.memory_space<smem>>
    %212 = vector.extract_strided_slice %10 {offsets = [0, 2], sizes = [1, 256], strides = [1, 1]} : vector<1x358xf32> to vector<1x256xf32>
    %213 = vector.broadcast %210 : f32 to vector<1x256xf32>
    %214 = arith.mulf %213, %212 : vector<1x256xf32>
    %215 = arith.addf %209, %214 : vector<1x256xf32>
    %216 = vector.extract_strided_slice %11 {offsets = [0, 2], sizes = [1, 256], strides = [1, 1]} : vector<1x358xf32> to vector<1x256xf32>
    %217 = vector.broadcast %211 : f32 to vector<1x256xf32>
    %218 = arith.mulf %217, %216 : vector<1x256xf32>
    %219 = arith.addf %215, %218 : vector<1x256xf32>
    %c9 = arith.constant 9 : index
    %220 = memref.load %arg1[%c9] : memref<98xf32, #tpu.memory_space<smem>>
    %c58 = arith.constant 58 : index
    %221 = memref.load %arg1[%c58] : memref<98xf32, #tpu.memory_space<smem>>
    %222 = vector.extract_strided_slice %10 {offsets = [0, 18], sizes = [1, 256], strides = [1, 1]} : vector<1x358xf32> to vector<1x256xf32>
    %223 = vector.broadcast %220 : f32 to vector<1x256xf32>
    %224 = arith.mulf %223, %222 : vector<1x256xf32>
    %225 = arith.addf %219, %224 : vector<1x256xf32>
    %226 = vector.extract_strided_slice %11 {offsets = [0, 18], sizes = [1, 256], strides = [1, 1]} : vector<1x358xf32> to vector<1x256xf32>
    %227 = vector.broadcast %221 : f32 to vector<1x256xf32>
    %228 = arith.mulf %227, %226 : vector<1x256xf32>
    %229 = arith.addf %225, %228 : vector<1x256xf32>
    %c16 = arith.constant 16 : index
    %230 = memref.load %arg1[%c16] : memref<98xf32, #tpu.memory_space<smem>>
    %c65 = arith.constant 65 : index
    %231 = memref.load %arg1[%c65] : memref<98xf32, #tpu.memory_space<smem>>
    %232 = vector.extract_strided_slice %10 {offsets = [0, 34], sizes = [1, 256], strides = [1, 1]} : vector<1x358xf32> to vector<1x256xf32>
    %233 = vector.broadcast %230 : f32 to vector<1x256xf32>
    %234 = arith.mulf %233, %232 : vector<1x256xf32>
    %235 = arith.addf %229, %234 : vector<1x256xf32>
    %236 = vector.extract_strided_slice %11 {offsets = [0, 34], sizes = [1, 256], strides = [1, 1]} : vector<1x358xf32> to vector<1x256xf32>
    %237 = vector.broadcast %231 : f32 to vector<1x256xf32>
    %238 = arith.mulf %237, %236 : vector<1x256xf32>
    %239 = arith.addf %235, %238 : vector<1x256xf32>
    %c23 = arith.constant 23 : index
    %240 = memref.load %arg1[%c23] : memref<98xf32, #tpu.memory_space<smem>>
    %c72 = arith.constant 72 : index
    %241 = memref.load %arg1[%c72] : memref<98xf32, #tpu.memory_space<smem>>
    %242 = vector.extract_strided_slice %10 {offsets = [0, 50], sizes = [1, 256], strides = [1, 1]} : vector<1x358xf32> to vector<1x256xf32>
    %243 = vector.broadcast %240 : f32 to vector<1x256xf32>
    %244 = arith.mulf %243, %242 : vector<1x256xf32>
    %245 = arith.addf %239, %244 : vector<1x256xf32>
    %246 = vector.extract_strided_slice %11 {offsets = [0, 50], sizes = [1, 256], strides = [1, 1]} : vector<1x358xf32> to vector<1x256xf32>
    %247 = vector.broadcast %241 : f32 to vector<1x256xf32>
    %248 = arith.mulf %247, %246 : vector<1x256xf32>
    %249 = arith.addf %245, %248 : vector<1x256xf32>
    %c30 = arith.constant 30 : index
    %250 = memref.load %arg1[%c30] : memref<98xf32, #tpu.memory_space<smem>>
    %c79 = arith.constant 79 : index
    %251 = memref.load %arg1[%c79] : memref<98xf32, #tpu.memory_space<smem>>
    %252 = vector.extract_strided_slice %10 {offsets = [0, 66], sizes = [1, 256], strides = [1, 1]} : vector<1x358xf32> to vector<1x256xf32>
    %253 = vector.broadcast %250 : f32 to vector<1x256xf32>
    %254 = arith.mulf %253, %252 : vector<1x256xf32>
    %255 = arith.addf %249, %254 : vector<1x256xf32>
    %256 = vector.extract_strided_slice %11 {offsets = [0, 66], sizes = [1, 256], strides = [1, 1]} : vector<1x358xf32> to vector<1x256xf32>
    %257 = vector.broadcast %251 : f32 to vector<1x256xf32>
    %258 = arith.mulf %257, %256 : vector<1x256xf32>
    %259 = arith.addf %255, %258 : vector<1x256xf32>
    %c37 = arith.constant 37 : index
    %260 = memref.load %arg1[%c37] : memref<98xf32, #tpu.memory_space<smem>>
    %c86 = arith.constant 86 : index
    %261 = memref.load %arg1[%c86] : memref<98xf32, #tpu.memory_space<smem>>
    %262 = vector.extract_strided_slice %10 {offsets = [0, 82], sizes = [1, 256], strides = [1, 1]} : vector<1x358xf32> to vector<1x256xf32>
    %263 = vector.broadcast %260 : f32 to vector<1x256xf32>
    %264 = arith.mulf %263, %262 : vector<1x256xf32>
    %265 = arith.addf %259, %264 : vector<1x256xf32>
    %266 = vector.extract_strided_slice %11 {offsets = [0, 82], sizes = [1, 256], strides = [1, 1]} : vector<1x358xf32> to vector<1x256xf32>
    %267 = vector.broadcast %261 : f32 to vector<1x256xf32>
    %268 = arith.mulf %267, %266 : vector<1x256xf32>
    %269 = arith.addf %265, %268 : vector<1x256xf32>
    %c44 = arith.constant 44 : index
    %270 = memref.load %arg1[%c44] : memref<98xf32, #tpu.memory_space<smem>>
    %c93 = arith.constant 93 : index
    %271 = memref.load %arg1[%c93] : memref<98xf32, #tpu.memory_space<smem>>
    %272 = vector.extract_strided_slice %10 {offsets = [0, 98], sizes = [1, 256], strides = [1, 1]} : vector<1x358xf32> to vector<1x256xf32>
    %273 = vector.broadcast %270 : f32 to vector<1x256xf32>
    %274 = arith.mulf %273, %272 : vector<1x256xf32>
    %275 = arith.addf %269, %274 : vector<1x256xf32>
    %276 = vector.extract_strided_slice %11 {offsets = [0, 98], sizes = [1, 256], strides = [1, 1]} : vector<1x358xf32> to vector<1x256xf32>
    %277 = vector.broadcast %271 : f32 to vector<1x256xf32>
    %278 = arith.mulf %277, %276 : vector<1x256xf32>
    %279 = arith.addf %275, %278 : vector<1x256xf32>
    %280 = arith.mulf %208, %279 : vector<1x256xf32>
    %281 = arith.addf %197, %280 : vector<1x256xf32>
    %c0_i32_24 = arith.constant 0 : i32
    %282 = vector.broadcast %c0_i32_24 : i32 to vector<1x256xi32>
    %283 = arith.addi %28, %282 : vector<1x256xi32>
    %c0_i32_25 = arith.constant 0 : i32
    %284 = vector.broadcast %c0_i32_25 : i32 to vector<1x256xi32>
    %285 = arith.cmpi sge, %283, %284 : vector<1x256xi32>
    %c0_i32_26 = arith.constant 0 : i32
    %286 = vector.broadcast %c0_i32_26 : i32 to vector<1x256xi32>
    %287 = arith.addi %28, %286 : vector<1x256xi32>
    %c16_i32_27 = arith.constant 16 : i32
    %288 = vector.broadcast %c16_i32_27 : i32 to vector<1x256xi32>
    %289 = arith.cmpi slt, %287, %288 : vector<1x256xi32>
    %290 = arith.andi %285, %289 : vector<1x256xi1>
    %291 = arith.extui %290 : vector<1x256xi1> to vector<1x256xi32>
    %292 = arith.sitofp %291 : vector<1x256xi32> to vector<1x256xf32>
    %cst_28 = arith.constant 0.000000e+00 : f32
    %293 = vector.broadcast %cst_28 : f32 to vector<1x256xf32>
    %c3 = arith.constant 3 : index
    %294 = memref.load %arg1[%c3] : memref<98xf32, #tpu.memory_space<smem>>
    %c52 = arith.constant 52 : index
    %295 = memref.load %arg1[%c52] : memref<98xf32, #tpu.memory_space<smem>>
    %296 = vector.extract_strided_slice %10 {offsets = [0, 3], sizes = [1, 256], strides = [1, 1]} : vector<1x358xf32> to vector<1x256xf32>
    %297 = vector.broadcast %294 : f32 to vector<1x256xf32>
    %298 = arith.mulf %297, %296 : vector<1x256xf32>
    %299 = arith.addf %293, %298 : vector<1x256xf32>
    %300 = vector.extract_strided_slice %11 {offsets = [0, 3], sizes = [1, 256], strides = [1, 1]} : vector<1x358xf32> to vector<1x256xf32>
    %301 = vector.broadcast %295 : f32 to vector<1x256xf32>
    %302 = arith.mulf %301, %300 : vector<1x256xf32>
    %303 = arith.addf %299, %302 : vector<1x256xf32>
    %c10 = arith.constant 10 : index
    %304 = memref.load %arg1[%c10] : memref<98xf32, #tpu.memory_space<smem>>
    %c59 = arith.constant 59 : index
    %305 = memref.load %arg1[%c59] : memref<98xf32, #tpu.memory_space<smem>>
    %306 = vector.extract_strided_slice %10 {offsets = [0, 19], sizes = [1, 256], strides = [1, 1]} : vector<1x358xf32> to vector<1x256xf32>
    %307 = vector.broadcast %304 : f32 to vector<1x256xf32>
    %308 = arith.mulf %307, %306 : vector<1x256xf32>
    %309 = arith.addf %303, %308 : vector<1x256xf32>
    %310 = vector.extract_strided_slice %11 {offsets = [0, 19], sizes = [1, 256], strides = [1, 1]} : vector<1x358xf32> to vector<1x256xf32>
    %311 = vector.broadcast %305 : f32 to vector<1x256xf32>
    %312 = arith.mulf %311, %310 : vector<1x256xf32>
    %313 = arith.addf %309, %312 : vector<1x256xf32>
    %c17 = arith.constant 17 : index
    %314 = memref.load %arg1[%c17] : memref<98xf32, #tpu.memory_space<smem>>
    %c66 = arith.constant 66 : index
    %315 = memref.load %arg1[%c66] : memref<98xf32, #tpu.memory_space<smem>>
    %316 = vector.extract_strided_slice %10 {offsets = [0, 35], sizes = [1, 256], strides = [1, 1]} : vector<1x358xf32> to vector<1x256xf32>
    %317 = vector.broadcast %314 : f32 to vector<1x256xf32>
    %318 = arith.mulf %317, %316 : vector<1x256xf32>
    %319 = arith.addf %313, %318 : vector<1x256xf32>
    %320 = vector.extract_strided_slice %11 {offsets = [0, 35], sizes = [1, 256], strides = [1, 1]} : vector<1x358xf32> to vector<1x256xf32>
    %321 = vector.broadcast %315 : f32 to vector<1x256xf32>
    %322 = arith.mulf %321, %320 : vector<1x256xf32>
    %323 = arith.addf %319, %322 : vector<1x256xf32>
    %c24 = arith.constant 24 : index
    %324 = memref.load %arg1[%c24] : memref<98xf32, #tpu.memory_space<smem>>
    %c73 = arith.constant 73 : index
    %325 = memref.load %arg1[%c73] : memref<98xf32, #tpu.memory_space<smem>>
    %326 = vector.extract_strided_slice %10 {offsets = [0, 51], sizes = [1, 256], strides = [1, 1]} : vector<1x358xf32> to vector<1x256xf32>
    %327 = vector.broadcast %324 : f32 to vector<1x256xf32>
    %328 = arith.mulf %327, %326 : vector<1x256xf32>
    %329 = arith.addf %323, %328 : vector<1x256xf32>
    %330 = vector.extract_strided_slice %11 {offsets = [0, 51], sizes = [1, 256], strides = [1, 1]} : vector<1x358xf32> to vector<1x256xf32>
    %331 = vector.broadcast %325 : f32 to vector<1x256xf32>
    %332 = arith.mulf %331, %330 : vector<1x256xf32>
    %333 = arith.addf %329, %332 : vector<1x256xf32>
    %c31 = arith.constant 31 : index
    %334 = memref.load %arg1[%c31] : memref<98xf32, #tpu.memory_space<smem>>
    %c80 = arith.constant 80 : index
    %335 = memref.load %arg1[%c80] : memref<98xf32, #tpu.memory_space<smem>>
    %336 = vector.extract_strided_slice %10 {offsets = [0, 67], sizes = [1, 256], strides = [1, 1]} : vector<1x358xf32> to vector<1x256xf32>
    %337 = vector.broadcast %334 : f32 to vector<1x256xf32>
    %338 = arith.mulf %337, %336 : vector<1x256xf32>
    %339 = arith.addf %333, %338 : vector<1x256xf32>
    %340 = vector.extract_strided_slice %11 {offsets = [0, 67], sizes = [1, 256], strides = [1, 1]} : vector<1x358xf32> to vector<1x256xf32>
    %341 = vector.broadcast %335 : f32 to vector<1x256xf32>
    %342 = arith.mulf %341, %340 : vector<1x256xf32>
    %343 = arith.addf %339, %342 : vector<1x256xf32>
    %c38 = arith.constant 38 : index
    %344 = memref.load %arg1[%c38] : memref<98xf32, #tpu.memory_space<smem>>
    %c87 = arith.constant 87 : index
    %345 = memref.load %arg1[%c87] : memref<98xf32, #tpu.memory_space<smem>>
    %346 = vector.extract_strided_slice %10 {offsets = [0, 83], sizes = [1, 256], strides = [1, 1]} : vector<1x358xf32> to vector<1x256xf32>
    %347 = vector.broadcast %344 : f32 to vector<1x256xf32>
    %348 = arith.mulf %347, %346 : vector<1x256xf32>
    %349 = arith.addf %343, %348 : vector<1x256xf32>
    %350 = vector.extract_strided_slice %11 {offsets = [0, 83], sizes = [1, 256], strides = [1, 1]} : vector<1x358xf32> to vector<1x256xf32>
    %351 = vector.broadcast %345 : f32 to vector<1x256xf32>
    %352 = arith.mulf %351, %350 : vector<1x256xf32>
    %353 = arith.addf %349, %352 : vector<1x256xf32>
    %c45 = arith.constant 45 : index
    %354 = memref.load %arg1[%c45] : memref<98xf32, #tpu.memory_space<smem>>
    %c94 = arith.constant 94 : index
    %355 = memref.load %arg1[%c94] : memref<98xf32, #tpu.memory_space<smem>>
    %356 = vector.extract_strided_slice %10 {offsets = [0, 99], sizes = [1, 256], strides = [1, 1]} : vector<1x358xf32> to vector<1x256xf32>
    %357 = vector.broadcast %354 : f32 to vector<1x256xf32>
    %358 = arith.mulf %357, %356 : vector<1x256xf32>
    %359 = arith.addf %353, %358 : vector<1x256xf32>
    %360 = vector.extract_strided_slice %11 {offsets = [0, 99], sizes = [1, 256], strides = [1, 1]} : vector<1x358xf32> to vector<1x256xf32>
    %361 = vector.broadcast %355 : f32 to vector<1x256xf32>
    %362 = arith.mulf %361, %360 : vector<1x256xf32>
    %363 = arith.addf %359, %362 : vector<1x256xf32>
    %364 = arith.mulf %292, %363 : vector<1x256xf32>
    %365 = arith.addf %281, %364 : vector<1x256xf32>
    %c1_i32_29 = arith.constant 1 : i32
    %366 = vector.broadcast %c1_i32_29 : i32 to vector<1x256xi32>
    %367 = arith.addi %28, %366 : vector<1x256xi32>
    %c0_i32_30 = arith.constant 0 : i32
    %368 = vector.broadcast %c0_i32_30 : i32 to vector<1x256xi32>
    %369 = arith.cmpi sge, %367, %368 : vector<1x256xi32>
    %c1_i32_31 = arith.constant 1 : i32
    %370 = vector.broadcast %c1_i32_31 : i32 to vector<1x256xi32>
    %371 = arith.addi %28, %370 : vector<1x256xi32>
    %c16_i32_32 = arith.constant 16 : i32
    %372 = vector.broadcast %c16_i32_32 : i32 to vector<1x256xi32>
    %373 = arith.cmpi slt, %371, %372 : vector<1x256xi32>
    %374 = arith.andi %369, %373 : vector<1x256xi1>
    %375 = arith.extui %374 : vector<1x256xi1> to vector<1x256xi32>
    %376 = arith.sitofp %375 : vector<1x256xi32> to vector<1x256xf32>
    %cst_33 = arith.constant 0.000000e+00 : f32
    %377 = vector.broadcast %cst_33 : f32 to vector<1x256xf32>
    %c4 = arith.constant 4 : index
    %378 = memref.load %arg1[%c4] : memref<98xf32, #tpu.memory_space<smem>>
    %c53 = arith.constant 53 : index
    %379 = memref.load %arg1[%c53] : memref<98xf32, #tpu.memory_space<smem>>
    %380 = vector.extract_strided_slice %10 {offsets = [0, 4], sizes = [1, 256], strides = [1, 1]} : vector<1x358xf32> to vector<1x256xf32>
    %381 = vector.broadcast %378 : f32 to vector<1x256xf32>
    %382 = arith.mulf %381, %380 : vector<1x256xf32>
    %383 = arith.addf %377, %382 : vector<1x256xf32>
    %384 = vector.extract_strided_slice %11 {offsets = [0, 4], sizes = [1, 256], strides = [1, 1]} : vector<1x358xf32> to vector<1x256xf32>
    %385 = vector.broadcast %379 : f32 to vector<1x256xf32>
    %386 = arith.mulf %385, %384 : vector<1x256xf32>
    %387 = arith.addf %383, %386 : vector<1x256xf32>
    %c11 = arith.constant 11 : index
    %388 = memref.load %arg1[%c11] : memref<98xf32, #tpu.memory_space<smem>>
    %c60 = arith.constant 60 : index
    %389 = memref.load %arg1[%c60] : memref<98xf32, #tpu.memory_space<smem>>
    %390 = vector.extract_strided_slice %10 {offsets = [0, 20], sizes = [1, 256], strides = [1, 1]} : vector<1x358xf32> to vector<1x256xf32>
    %391 = vector.broadcast %388 : f32 to vector<1x256xf32>
    %392 = arith.mulf %391, %390 : vector<1x256xf32>
    %393 = arith.addf %387, %392 : vector<1x256xf32>
    %394 = vector.extract_strided_slice %11 {offsets = [0, 20], sizes = [1, 256], strides = [1, 1]} : vector<1x358xf32> to vector<1x256xf32>
    %395 = vector.broadcast %389 : f32 to vector<1x256xf32>
    %396 = arith.mulf %395, %394 : vector<1x256xf32>
    %397 = arith.addf %393, %396 : vector<1x256xf32>
    %c18 = arith.constant 18 : index
    %398 = memref.load %arg1[%c18] : memref<98xf32, #tpu.memory_space<smem>>
    %c67 = arith.constant 67 : index
    %399 = memref.load %arg1[%c67] : memref<98xf32, #tpu.memory_space<smem>>
    %400 = vector.extract_strided_slice %10 {offsets = [0, 36], sizes = [1, 256], strides = [1, 1]} : vector<1x358xf32> to vector<1x256xf32>
    %401 = vector.broadcast %398 : f32 to vector<1x256xf32>
    %402 = arith.mulf %401, %400 : vector<1x256xf32>
    %403 = arith.addf %397, %402 : vector<1x256xf32>
    %404 = vector.extract_strided_slice %11 {offsets = [0, 36], sizes = [1, 256], strides = [1, 1]} : vector<1x358xf32> to vector<1x256xf32>
    %405 = vector.broadcast %399 : f32 to vector<1x256xf32>
    %406 = arith.mulf %405, %404 : vector<1x256xf32>
    %407 = arith.addf %403, %406 : vector<1x256xf32>
    %c25 = arith.constant 25 : index
    %408 = memref.load %arg1[%c25] : memref<98xf32, #tpu.memory_space<smem>>
    %c74 = arith.constant 74 : index
    %409 = memref.load %arg1[%c74] : memref<98xf32, #tpu.memory_space<smem>>
    %410 = vector.extract_strided_slice %10 {offsets = [0, 52], sizes = [1, 256], strides = [1, 1]} : vector<1x358xf32> to vector<1x256xf32>
    %411 = vector.broadcast %408 : f32 to vector<1x256xf32>
    %412 = arith.mulf %411, %410 : vector<1x256xf32>
    %413 = arith.addf %407, %412 : vector<1x256xf32>
    %414 = vector.extract_strided_slice %11 {offsets = [0, 52], sizes = [1, 256], strides = [1, 1]} : vector<1x358xf32> to vector<1x256xf32>
    %415 = vector.broadcast %409 : f32 to vector<1x256xf32>
    %416 = arith.mulf %415, %414 : vector<1x256xf32>
    %417 = arith.addf %413, %416 : vector<1x256xf32>
    %c32 = arith.constant 32 : index
    %418 = memref.load %arg1[%c32] : memref<98xf32, #tpu.memory_space<smem>>
    %c81 = arith.constant 81 : index
    %419 = memref.load %arg1[%c81] : memref<98xf32, #tpu.memory_space<smem>>
    %420 = vector.extract_strided_slice %10 {offsets = [0, 68], sizes = [1, 256], strides = [1, 1]} : vector<1x358xf32> to vector<1x256xf32>
    %421 = vector.broadcast %418 : f32 to vector<1x256xf32>
    %422 = arith.mulf %421, %420 : vector<1x256xf32>
    %423 = arith.addf %417, %422 : vector<1x256xf32>
    %424 = vector.extract_strided_slice %11 {offsets = [0, 68], sizes = [1, 256], strides = [1, 1]} : vector<1x358xf32> to vector<1x256xf32>
    %425 = vector.broadcast %419 : f32 to vector<1x256xf32>
    %426 = arith.mulf %425, %424 : vector<1x256xf32>
    %427 = arith.addf %423, %426 : vector<1x256xf32>
    %c39 = arith.constant 39 : index
    %428 = memref.load %arg1[%c39] : memref<98xf32, #tpu.memory_space<smem>>
    %c88 = arith.constant 88 : index
    %429 = memref.load %arg1[%c88] : memref<98xf32, #tpu.memory_space<smem>>
    %430 = vector.extract_strided_slice %10 {offsets = [0, 84], sizes = [1, 256], strides = [1, 1]} : vector<1x358xf32> to vector<1x256xf32>
    %431 = vector.broadcast %428 : f32 to vector<1x256xf32>
    %432 = arith.mulf %431, %430 : vector<1x256xf32>
    %433 = arith.addf %427, %432 : vector<1x256xf32>
    %434 = vector.extract_strided_slice %11 {offsets = [0, 84], sizes = [1, 256], strides = [1, 1]} : vector<1x358xf32> to vector<1x256xf32>
    %435 = vector.broadcast %429 : f32 to vector<1x256xf32>
    %436 = arith.mulf %435, %434 : vector<1x256xf32>
    %437 = arith.addf %433, %436 : vector<1x256xf32>
    %c46 = arith.constant 46 : index
    %438 = memref.load %arg1[%c46] : memref<98xf32, #tpu.memory_space<smem>>
    %c95 = arith.constant 95 : index
    %439 = memref.load %arg1[%c95] : memref<98xf32, #tpu.memory_space<smem>>
    %440 = vector.extract_strided_slice %10 {offsets = [0, 100], sizes = [1, 256], strides = [1, 1]} : vector<1x358xf32> to vector<1x256xf32>
    %441 = vector.broadcast %438 : f32 to vector<1x256xf32>
    %442 = arith.mulf %441, %440 : vector<1x256xf32>
    %443 = arith.addf %437, %442 : vector<1x256xf32>
    %444 = vector.extract_strided_slice %11 {offsets = [0, 100], sizes = [1, 256], strides = [1, 1]} : vector<1x358xf32> to vector<1x256xf32>
    %445 = vector.broadcast %439 : f32 to vector<1x256xf32>
    %446 = arith.mulf %445, %444 : vector<1x256xf32>
    %447 = arith.addf %443, %446 : vector<1x256xf32>
    %448 = arith.mulf %376, %447 : vector<1x256xf32>
    %449 = arith.addf %365, %448 : vector<1x256xf32>
    %c2_i32 = arith.constant 2 : i32
    %450 = vector.broadcast %c2_i32 : i32 to vector<1x256xi32>
    %451 = arith.addi %28, %450 : vector<1x256xi32>
    %c0_i32_34 = arith.constant 0 : i32
    %452 = vector.broadcast %c0_i32_34 : i32 to vector<1x256xi32>
    %453 = arith.cmpi sge, %451, %452 : vector<1x256xi32>
    %c2_i32_35 = arith.constant 2 : i32
    %454 = vector.broadcast %c2_i32_35 : i32 to vector<1x256xi32>
    %455 = arith.addi %28, %454 : vector<1x256xi32>
    %c16_i32_36 = arith.constant 16 : i32
    %456 = vector.broadcast %c16_i32_36 : i32 to vector<1x256xi32>
    %457 = arith.cmpi slt, %455, %456 : vector<1x256xi32>
    %458 = arith.andi %453, %457 : vector<1x256xi1>
    %459 = arith.extui %458 : vector<1x256xi1> to vector<1x256xi32>
    %460 = arith.sitofp %459 : vector<1x256xi32> to vector<1x256xf32>
    %cst_37 = arith.constant 0.000000e+00 : f32
    %461 = vector.broadcast %cst_37 : f32 to vector<1x256xf32>
    %c5 = arith.constant 5 : index
    %462 = memref.load %arg1[%c5] : memref<98xf32, #tpu.memory_space<smem>>
    %c54 = arith.constant 54 : index
    %463 = memref.load %arg1[%c54] : memref<98xf32, #tpu.memory_space<smem>>
    %464 = vector.extract_strided_slice %10 {offsets = [0, 5], sizes = [1, 256], strides = [1, 1]} : vector<1x358xf32> to vector<1x256xf32>
    %465 = vector.broadcast %462 : f32 to vector<1x256xf32>
    %466 = arith.mulf %465, %464 : vector<1x256xf32>
    %467 = arith.addf %461, %466 : vector<1x256xf32>
    %468 = vector.extract_strided_slice %11 {offsets = [0, 5], sizes = [1, 256], strides = [1, 1]} : vector<1x358xf32> to vector<1x256xf32>
    %469 = vector.broadcast %463 : f32 to vector<1x256xf32>
    %470 = arith.mulf %469, %468 : vector<1x256xf32>
    %471 = arith.addf %467, %470 : vector<1x256xf32>
    %c12 = arith.constant 12 : index
    %472 = memref.load %arg1[%c12] : memref<98xf32, #tpu.memory_space<smem>>
    %c61 = arith.constant 61 : index
    %473 = memref.load %arg1[%c61] : memref<98xf32, #tpu.memory_space<smem>>
    %474 = vector.extract_strided_slice %10 {offsets = [0, 21], sizes = [1, 256], strides = [1, 1]} : vector<1x358xf32> to vector<1x256xf32>
    %475 = vector.broadcast %472 : f32 to vector<1x256xf32>
    %476 = arith.mulf %475, %474 : vector<1x256xf32>
    %477 = arith.addf %471, %476 : vector<1x256xf32>
    %478 = vector.extract_strided_slice %11 {offsets = [0, 21], sizes = [1, 256], strides = [1, 1]} : vector<1x358xf32> to vector<1x256xf32>
    %479 = vector.broadcast %473 : f32 to vector<1x256xf32>
    %480 = arith.mulf %479, %478 : vector<1x256xf32>
    %481 = arith.addf %477, %480 : vector<1x256xf32>
    %c19 = arith.constant 19 : index
    %482 = memref.load %arg1[%c19] : memref<98xf32, #tpu.memory_space<smem>>
    %c68 = arith.constant 68 : index
    %483 = memref.load %arg1[%c68] : memref<98xf32, #tpu.memory_space<smem>>
    %484 = vector.extract_strided_slice %10 {offsets = [0, 37], sizes = [1, 256], strides = [1, 1]} : vector<1x358xf32> to vector<1x256xf32>
    %485 = vector.broadcast %482 : f32 to vector<1x256xf32>
    %486 = arith.mulf %485, %484 : vector<1x256xf32>
    %487 = arith.addf %481, %486 : vector<1x256xf32>
    %488 = vector.extract_strided_slice %11 {offsets = [0, 37], sizes = [1, 256], strides = [1, 1]} : vector<1x358xf32> to vector<1x256xf32>
    %489 = vector.broadcast %483 : f32 to vector<1x256xf32>
    %490 = arith.mulf %489, %488 : vector<1x256xf32>
    %491 = arith.addf %487, %490 : vector<1x256xf32>
    %c26 = arith.constant 26 : index
    %492 = memref.load %arg1[%c26] : memref<98xf32, #tpu.memory_space<smem>>
    %c75 = arith.constant 75 : index
    %493 = memref.load %arg1[%c75] : memref<98xf32, #tpu.memory_space<smem>>
    %494 = vector.extract_strided_slice %10 {offsets = [0, 53], sizes = [1, 256], strides = [1, 1]} : vector<1x358xf32> to vector<1x256xf32>
    %495 = vector.broadcast %492 : f32 to vector<1x256xf32>
    %496 = arith.mulf %495, %494 : vector<1x256xf32>
    %497 = arith.addf %491, %496 : vector<1x256xf32>
    %498 = vector.extract_strided_slice %11 {offsets = [0, 53], sizes = [1, 256], strides = [1, 1]} : vector<1x358xf32> to vector<1x256xf32>
    %499 = vector.broadcast %493 : f32 to vector<1x256xf32>
    %500 = arith.mulf %499, %498 : vector<1x256xf32>
    %501 = arith.addf %497, %500 : vector<1x256xf32>
    %c33 = arith.constant 33 : index
    %502 = memref.load %arg1[%c33] : memref<98xf32, #tpu.memory_space<smem>>
    %c82 = arith.constant 82 : index
    %503 = memref.load %arg1[%c82] : memref<98xf32, #tpu.memory_space<smem>>
    %504 = vector.extract_strided_slice %10 {offsets = [0, 69], sizes = [1, 256], strides = [1, 1]} : vector<1x358xf32> to vector<1x256xf32>
    %505 = vector.broadcast %502 : f32 to vector<1x256xf32>
    %506 = arith.mulf %505, %504 : vector<1x256xf32>
    %507 = arith.addf %501, %506 : vector<1x256xf32>
    %508 = vector.extract_strided_slice %11 {offsets = [0, 69], sizes = [1, 256], strides = [1, 1]} : vector<1x358xf32> to vector<1x256xf32>
    %509 = vector.broadcast %503 : f32 to vector<1x256xf32>
    %510 = arith.mulf %509, %508 : vector<1x256xf32>
    %511 = arith.addf %507, %510 : vector<1x256xf32>
    %c40 = arith.constant 40 : index
    %512 = memref.load %arg1[%c40] : memref<98xf32, #tpu.memory_space<smem>>
    %c89 = arith.constant 89 : index
    %513 = memref.load %arg1[%c89] : memref<98xf32, #tpu.memory_space<smem>>
    %514 = vector.extract_strided_slice %10 {offsets = [0, 85], sizes = [1, 256], strides = [1, 1]} : vector<1x358xf32> to vector<1x256xf32>
    %515 = vector.broadcast %512 : f32 to vector<1x256xf32>
    %516 = arith.mulf %515, %514 : vector<1x256xf32>
    %517 = arith.addf %511, %516 : vector<1x256xf32>
    %518 = vector.extract_strided_slice %11 {offsets = [0, 85], sizes = [1, 256], strides = [1, 1]} : vector<1x358xf32> to vector<1x256xf32>
    %519 = vector.broadcast %513 : f32 to vector<1x256xf32>
    %520 = arith.mulf %519, %518 : vector<1x256xf32>
    %521 = arith.addf %517, %520 : vector<1x256xf32>
    %c47 = arith.constant 47 : index
    %522 = memref.load %arg1[%c47] : memref<98xf32, #tpu.memory_space<smem>>
    %c96 = arith.constant 96 : index
    %523 = memref.load %arg1[%c96] : memref<98xf32, #tpu.memory_space<smem>>
    %524 = vector.extract_strided_slice %10 {offsets = [0, 101], sizes = [1, 256], strides = [1, 1]} : vector<1x358xf32> to vector<1x256xf32>
    %525 = vector.broadcast %522 : f32 to vector<1x256xf32>
    %526 = arith.mulf %525, %524 : vector<1x256xf32>
    %527 = arith.addf %521, %526 : vector<1x256xf32>
    %528 = vector.extract_strided_slice %11 {offsets = [0, 101], sizes = [1, 256], strides = [1, 1]} : vector<1x358xf32> to vector<1x256xf32>
    %529 = vector.broadcast %523 : f32 to vector<1x256xf32>
    %530 = arith.mulf %529, %528 : vector<1x256xf32>
    %531 = arith.addf %527, %530 : vector<1x256xf32>
    %532 = arith.mulf %460, %531 : vector<1x256xf32>
    %533 = arith.addf %449, %532 : vector<1x256xf32>
    %c3_i32 = arith.constant 3 : i32
    %534 = vector.broadcast %c3_i32 : i32 to vector<1x256xi32>
    %535 = arith.addi %28, %534 : vector<1x256xi32>
    %c0_i32_38 = arith.constant 0 : i32
    %536 = vector.broadcast %c0_i32_38 : i32 to vector<1x256xi32>
    %537 = arith.cmpi sge, %535, %536 : vector<1x256xi32>
    %c3_i32_39 = arith.constant 3 : i32
    %538 = vector.broadcast %c3_i32_39 : i32 to vector<1x256xi32>
    %539 = arith.addi %28, %538 : vector<1x256xi32>
    %c16_i32_40 = arith.constant 16 : i32
    %540 = vector.broadcast %c16_i32_40 : i32 to vector<1x256xi32>
    %541 = arith.cmpi slt, %539, %540 : vector<1x256xi32>
    %542 = arith.andi %537, %541 : vector<1x256xi1>
    %543 = arith.extui %542 : vector<1x256xi1> to vector<1x256xi32>
    %544 = arith.sitofp %543 : vector<1x256xi32> to vector<1x256xf32>
    %cst_41 = arith.constant 0.000000e+00 : f32
    %545 = vector.broadcast %cst_41 : f32 to vector<1x256xf32>
    %c6 = arith.constant 6 : index
    %546 = memref.load %arg1[%c6] : memref<98xf32, #tpu.memory_space<smem>>
    %c55 = arith.constant 55 : index
    %547 = memref.load %arg1[%c55] : memref<98xf32, #tpu.memory_space<smem>>
    %548 = vector.extract_strided_slice %10 {offsets = [0, 6], sizes = [1, 256], strides = [1, 1]} : vector<1x358xf32> to vector<1x256xf32>
    %549 = vector.broadcast %546 : f32 to vector<1x256xf32>
    %550 = arith.mulf %549, %548 : vector<1x256xf32>
    %551 = arith.addf %545, %550 : vector<1x256xf32>
    %552 = vector.extract_strided_slice %11 {offsets = [0, 6], sizes = [1, 256], strides = [1, 1]} : vector<1x358xf32> to vector<1x256xf32>
    %553 = vector.broadcast %547 : f32 to vector<1x256xf32>
    %554 = arith.mulf %553, %552 : vector<1x256xf32>
    %555 = arith.addf %551, %554 : vector<1x256xf32>
    %c13 = arith.constant 13 : index
    %556 = memref.load %arg1[%c13] : memref<98xf32, #tpu.memory_space<smem>>
    %c62 = arith.constant 62 : index
    %557 = memref.load %arg1[%c62] : memref<98xf32, #tpu.memory_space<smem>>
    %558 = vector.extract_strided_slice %10 {offsets = [0, 22], sizes = [1, 256], strides = [1, 1]} : vector<1x358xf32> to vector<1x256xf32>
    %559 = vector.broadcast %556 : f32 to vector<1x256xf32>
    %560 = arith.mulf %559, %558 : vector<1x256xf32>
    %561 = arith.addf %555, %560 : vector<1x256xf32>
    %562 = vector.extract_strided_slice %11 {offsets = [0, 22], sizes = [1, 256], strides = [1, 1]} : vector<1x358xf32> to vector<1x256xf32>
    %563 = vector.broadcast %557 : f32 to vector<1x256xf32>
    %564 = arith.mulf %563, %562 : vector<1x256xf32>
    %565 = arith.addf %561, %564 : vector<1x256xf32>
    %c20 = arith.constant 20 : index
    %566 = memref.load %arg1[%c20] : memref<98xf32, #tpu.memory_space<smem>>
    %c69 = arith.constant 69 : index
    %567 = memref.load %arg1[%c69] : memref<98xf32, #tpu.memory_space<smem>>
    %568 = vector.extract_strided_slice %10 {offsets = [0, 38], sizes = [1, 256], strides = [1, 1]} : vector<1x358xf32> to vector<1x256xf32>
    %569 = vector.broadcast %566 : f32 to vector<1x256xf32>
    %570 = arith.mulf %569, %568 : vector<1x256xf32>
    %571 = arith.addf %565, %570 : vector<1x256xf32>
    %572 = vector.extract_strided_slice %11 {offsets = [0, 38], sizes = [1, 256], strides = [1, 1]} : vector<1x358xf32> to vector<1x256xf32>
    %573 = vector.broadcast %567 : f32 to vector<1x256xf32>
    %574 = arith.mulf %573, %572 : vector<1x256xf32>
    %575 = arith.addf %571, %574 : vector<1x256xf32>
    %c27 = arith.constant 27 : index
    %576 = memref.load %arg1[%c27] : memref<98xf32, #tpu.memory_space<smem>>
    %c76 = arith.constant 76 : index
    %577 = memref.load %arg1[%c76] : memref<98xf32, #tpu.memory_space<smem>>
    %578 = vector.extract_strided_slice %10 {offsets = [0, 54], sizes = [1, 256], strides = [1, 1]} : vector<1x358xf32> to vector<1x256xf32>
    %579 = vector.broadcast %576 : f32 to vector<1x256xf32>
    %580 = arith.mulf %579, %578 : vector<1x256xf32>
    %581 = arith.addf %575, %580 : vector<1x256xf32>
    %582 = vector.extract_strided_slice %11 {offsets = [0, 54], sizes = [1, 256], strides = [1, 1]} : vector<1x358xf32> to vector<1x256xf32>
    %583 = vector.broadcast %577 : f32 to vector<1x256xf32>
    %584 = arith.mulf %583, %582 : vector<1x256xf32>
    %585 = arith.addf %581, %584 : vector<1x256xf32>
    %c34 = arith.constant 34 : index
    %586 = memref.load %arg1[%c34] : memref<98xf32, #tpu.memory_space<smem>>
    %c83 = arith.constant 83 : index
    %587 = memref.load %arg1[%c83] : memref<98xf32, #tpu.memory_space<smem>>
    %588 = vector.extract_strided_slice %10 {offsets = [0, 70], sizes = [1, 256], strides = [1, 1]} : vector<1x358xf32> to vector<1x256xf32>
    %589 = vector.broadcast %586 : f32 to vector<1x256xf32>
    %590 = arith.mulf %589, %588 : vector<1x256xf32>
    %591 = arith.addf %585, %590 : vector<1x256xf32>
    %592 = vector.extract_strided_slice %11 {offsets = [0, 70], sizes = [1, 256], strides = [1, 1]} : vector<1x358xf32> to vector<1x256xf32>
    %593 = vector.broadcast %587 : f32 to vector<1x256xf32>
    %594 = arith.mulf %593, %592 : vector<1x256xf32>
    %595 = arith.addf %591, %594 : vector<1x256xf32>
    %c41 = arith.constant 41 : index
    %596 = memref.load %arg1[%c41] : memref<98xf32, #tpu.memory_space<smem>>
    %c90 = arith.constant 90 : index
    %597 = memref.load %arg1[%c90] : memref<98xf32, #tpu.memory_space<smem>>
    %598 = vector.extract_strided_slice %10 {offsets = [0, 86], sizes = [1, 256], strides = [1, 1]} : vector<1x358xf32> to vector<1x256xf32>
    %599 = vector.broadcast %596 : f32 to vector<1x256xf32>
    %600 = arith.mulf %599, %598 : vector<1x256xf32>
    %601 = arith.addf %595, %600 : vector<1x256xf32>
    %602 = vector.extract_strided_slice %11 {offsets = [0, 86], sizes = [1, 256], strides = [1, 1]} : vector<1x358xf32> to vector<1x256xf32>
    %603 = vector.broadcast %597 : f32 to vector<1x256xf32>
    %604 = arith.mulf %603, %602 : vector<1x256xf32>
    %605 = arith.addf %601, %604 : vector<1x256xf32>
    %c48 = arith.constant 48 : index
    %606 = memref.load %arg1[%c48] : memref<98xf32, #tpu.memory_space<smem>>
    %c97 = arith.constant 97 : index
    %607 = memref.load %arg1[%c97] : memref<98xf32, #tpu.memory_space<smem>>
    %608 = vector.extract_strided_slice %10 {offsets = [0, 102], sizes = [1, 256], strides = [1, 1]} : vector<1x358xf32> to vector<1x256xf32>
    %609 = vector.broadcast %606 : f32 to vector<1x256xf32>
    %610 = arith.mulf %609, %608 : vector<1x256xf32>
    %611 = arith.addf %605, %610 : vector<1x256xf32>
    %612 = vector.extract_strided_slice %11 {offsets = [0, 102], sizes = [1, 256], strides = [1, 1]} : vector<1x358xf32> to vector<1x256xf32>
    %613 = vector.broadcast %607 : f32 to vector<1x256xf32>
    %614 = arith.mulf %613, %612 : vector<1x256xf32>
    %615 = arith.addf %611, %614 : vector<1x256xf32>
    %616 = arith.mulf %544, %615 : vector<1x256xf32>
    %617 = arith.addf %533, %616 : vector<1x256xf32>
    %618 = arith.negf %617 : vector<1x256xf32>
    %619 = math.exp %618 : vector<1x256xf32>
    %cst_42 = arith.constant 1.000000e+00 : f32
    %620 = vector.broadcast %cst_42 : f32 to vector<1x256xf32>
    %621 = arith.addf %620, %619 : vector<1x256xf32>
    %622 = arith.divf %620, %621 : vector<1x256xf32>
    %c0_43 = arith.constant 0 : index
    %c0_44 = arith.constant 0 : index
    %c0_45 = arith.constant 0 : index
    %623 = vector.load %arg3[%c0_43, %c0_44, %c0_45] : memref<1x1x256xf32, #tpu.memory_space<vmem>>, vector<1x1x256xf32>
    %624 = vector.shape_cast %623 : vector<1x1x256xf32> to vector<1x256xf32>
    %625 = vector.shape_cast %622 : vector<1x256xf32> to vector<1x1x256xf32>
    tpu.vector_store %arg3[%c0_43, %c0_44, %c0_45], %625 {strides = array<i32>} : memref<1x1x256xf32, #tpu.memory_space<vmem>>, vector<1x1x256xf32>,
    return
  }
  func.func @transform_0(%arg0: i32) -> i32 {
    %c0_i32 = arith.constant 0 : i32
    %c0_i32_0 = arith.constant 0 : i32
    return %c0_i32 : i32
  }
  func.func @transform_1(%arg0: i32) -> (i32, i32, i32) {
    %c0_i32 = arith.constant 0 : i32
    %c0_i32_0 = arith.constant 0 : i32
    %c0_i32_1 = arith.constant 0 : i32
    return %arg0, %c0_i32, %c0_i32_0 : i32, i32, i32
  }
  func.func @transform_2(%arg0: i32) -> (i32, i32, i32) {
    %c0_i32 = arith.constant 0 : i32
    %c0_i32_0 = arith.constant 0 : i32
    %c0_i32_1 = arith.constant 0 : i32
    return %arg0, %c0_i32, %c0_i32_0 : i32, i32, i32
  }
}

</mosaic_0001>

<bundles_post_ra>
// kernel: tpu_custom_call.1
= control target key start
LH: loop header
LB: loop body
LE: loop exit
PB: predicated region body
PF: predicated region fallthrough
CT: control target
= control target key end

     0   :  { %7 = vsyncpa [#allocation5], 0  ;;  %s4276_s0 = inlined_call_operand.hbm [shape: f32[98], index: 0, kind: input, shape index: {}]   ;;  %s4277_s1 = inlined_call_operand.hbm [shape: f32[2,4,256], index: 1, kind: input, shape index: {}]   ;;  %s4278_s2 = inlined_call_operand.hbm [shape: f32[2,1,256], index: 2, kind: output, shape index: {}]  }
   0x1   :  { %8 = vsyncpa [#allocation3], 0 }
   0x2   :  { %10 = vsyncpa [#allocation3 + $0x1], 0 }
   0x3   :  { %11 = vsyncpa [#allocation4], 0 }
   0x4   :  { %13 = vsyncpa [#allocation4 + $0x1], 0  ;;  %s2905_s9 = smov 0   ;;  %s2907_s10 = smov 0  }
   0x5   :  { %s2909_s11 = smov 0   ;;  %s2911_s12 = smov 0  }
   0x6 LB: > { %s2926_s13 = sadd.s32 4294967295, %s2873_s12   ;;  %s2552_s14 = sadd.s32 4294967294, %s2873_s12   ;;  %s2873_s12 = sphi %s2911_s12, %s4349_s12   ;;  %s2869_s11 = sphi %s2909_s11, %s4348_s11   ;;  %s2865_s10 = sphi %s2907_s10, %s4347_s10   ;;  %s2861_s9 = sphi %s2905_s9, %s4346_s9  }
   0x7   : > { %p60_p0 = scmp.ne.s32.totalorder %s2865_s10, %s2861_s9  ;;  %p61_p1 = scmp.eq.s32.totalorder %s2926_s13, 0 }
   0x8   : > { %p84_p2 = scmp.eq.s32.totalorder %s2926_s13, 1  ;;  %p90_p3 = scmp.eq.s32.totalorder %s2552_s14, 1 }
   0x9   : > { %p2935_p4 = por %p61_p1, %p60_p0  ;;  %p2553_p5 = scmp.ge.s32.totalorder %s2873_s12, 1 }
   0xa   : > { %p2940_p6 = por %p90_p3, %p60_p0  ;;  %p97_p7 = scmp.lt.s32.totalorder %s2873_s12, 3 }
   0xb   : > { %s109_s19 = sshll.u32 %s4276_s0, 4  ;;  %s2956_s21 = sadd.s32 1, %s2873_s12   ;;  %s110_s19 = int_to_ptr.hbm [resolvable:$true] %s109_s19 }
   0xc   : > { %p2948_p8 = pnand %p2553_p5, %p97_p7  ;;  %s44_s22 = ssub.s32 %s2873_s12, %s2956_s21 }
   0xd   : > { %p45_p12 = scmp.eq.s32.totalorder %s44_s22, 0  ;;  %s47_s23 = sadd.s32 1, %s2869_s11 }
   0xe   : > { %p2687_p10 = pneg %p2948_p8  ;;  %p54_p13 = scmp.ne.s32.totalorder %s2869_s11, %s2865_s10 }
   0xf   : > { %s2875_s24 = smov [#allocation2]   ;;  %p55_p0 = scmp.eq.s32.totalorder %s2873_s12, 0 }
  0x10   : > { %p2688_p11 = pnand %p2687_p10, %p61_p1  ;;  %p2971_p3 = por %p84_p2, %p54_p13 }
  0x11   : > { %s2966_s25 = scalar_select %p45_p12, %s2869_s11, %s47_s23  }
  0x12   : > { %2690 = dma.hbm_to_smem (!%p2688_p11), %s110_s19, 16, %s2875_s24, [#allocation5]  }
  0x13   : > { %s120_s27 = sand.u32 1, %s2869_s11   ;;  %p56_p5 = por %p55_p0, %p54_p13 }
  0x14   : > { %p2700_p7 = scmp.lt.s32.totalorder %s2873_s12, 2  ;;  %s2556_s28 = sshll.u32 %s120_s27, 3 }
  0x15   : > { %s2678_s29 = sshll.u32 %s2873_s12, 3  ;;  %s124_s6 = scalar_lea.vmem [#allocation6], %s2556_s28 }
  0x16   : > { %s129_s4 = scalar_lea.hbm %s4277_s1, %s2678_s29  ;;  %s133_s7 = sshll.u32 %s124_s6, 4  ;;  %s134_s7 = int_to_ptr.vmem [resolvable:$true] %s133_s7 }
  0x17   : > { %s131_s5 = sshll.u32 %s129_s4, 4  ;;  %p2981_p10 = pnand %p2700_p7, %p56_p5  ;;  %s132_s5 = int_to_ptr.hbm [resolvable:$true] %s131_s5 }
  0x18   : > { %s121_s14 = scalar_lea.sflag [#allocation3], %s120_s27  ;;  %s2773_s17 = sshra.s32 %s132_s5, 4  ;;  %s2774_s17 = int_to_ptr.hbm [resolvable:$true] %s2773_s17 }
  0x19   : > { %s2775_s18 = scalar_lea.hbm %s2774_s17, 8  ;;  %p2777_p11 = pneg %p2981_p10 }
  0x1a   : > { %p2776_p2 = scmp.ne.s32.totalorder %s2774_s17, %s2775_s18  ;;  %s2780_s23 = scalar_lea.hbm %s4277_s1, 16 }
  0x1b   : > { %p2781_p0 = scmp.lt.s32.totalorder %s2774_s17, %s4277_s1  ;;  %p2782_p5 = scmp.lt.s32.totalorder %s2780_s23, %s2775_s18 }
  0x1c   : > { %p2778_p12 = pnand %p2777_p11, %p2776_p2 }
  0x1d   : > { %p2783_p7 = por %p2782_p5, %p2781_p0 }
  0x1e   : > { %p2779_p13 = pneg %p2778_p12 }
  0x20   : > { %p2784_p9 = pnand %p2783_p7, %p2779_p13 }
  0x22   : > { %2787 = shalt.err (!%p2784_p9)
}
  0x23   : > { %2694 = dma.hbm_to_vmem [thread:$0]  (!%p2981_p10), %s132_s5, 128, %s134_s7, %s121_s14  }
  0x24   : > { %142 = sbr.rel (%p2948_p8) target bundleno = 1528 (0x5f8), region = 28 }
  0x29   : > { %2848 = dma.done.wait (%p61_p1), [#allocation5], 16  }
  0x2a   : > { %2850 = vsyncadd (%p61_p1), [#allocation5], 4294967280  ;;  %s3002_s27 = sand.u32 1, %s2865_s10  }
  0x2b   : > { %s2561_s29 = sshll.u32 %s3002_s27, 3  ;;  %s150_s30 = scalar_lea.sflag [#allocation3], %s3002_s27 }
  0x2c   : > { %s153_s3 = scalar_lea.vmem [#allocation6], %s2561_s29 }
  0x2d   : > { %2852 = dma.done.wait (%p2935_p4), %s150_s30, 128  }
  0x2e   : > { %2854 = vsyncadd (%p2935_p4), %s150_s30, 4294967168 }
  0x2f   : > { %159 = sfence }
  0x30   : > { %v176_v0 = vld [vmem:[%s153_s3] sm:$0xff]  ;;  %vm183_vm0 = vcmask 1043456   ;;  %s2876_s15 = smov 51   ;;  %s2568_s20 = sld [smem:[#allocation2 + $0xe]]  ;;  %vm227_vm1 = vcmask 416768   ;;  %vm312_vm2 = vcmask 916480  }
  0x31   : > { %178 = vst [vmem:[#allocation1] ss:$2 sm:$0xff] %v176_v0  ;;  %s2566_s4 = sld [smem:[#allocation2 + $0x7]]  ;;  %s2877_s6 = smov 96   ;;  %vm353_vm3 = vcmask 785408   ;;  %vm394_vm4 = vcmask 654336  }
  0x32   : > { %s2570_s5 = sld [smem:[#allocation2 + $0x15]]  ;;  %s2878_s7 = smov 112   ;;  %vm435_vm5 = vcmask 523264   ;;  %vm476_vm6 = vcmask 392192   ;;  %vm517_vm7 = vcmask 261120   ;;  %vm1466_vm8 = vcmask 1022976  }
  0x33   : > { %s2572_s8 = sld [smem:[#allocation2 + $0x1c]]  ;;  %s2879_s14 = smov 80   ;;  %vm848_vm10 = vcmask 1039360   ;;  %vm1158_vm13 = vcmask 1031168   ;;  %vm1776_vm15 = vcmask 1014784  }
  0x34   : > { %s2574_s17 = sld [smem:[#allocation2 + $0x23]]  ;;  %s2880_s18 = smov 64  }
  0x35   : > { %s2576_s19 = sld [smem:[#allocation2 + $0x2a]]  ;;  %s2881_s22 = smov 48  }
  0x36   : > { %v340_v35 = vstv %s2568_s20  ;;  %s2582_s23 = sld [smem:[#allocation2 + $0x8]]  ;;  %s2882_s24 = smov 32  }
  0x37   : > { %v299_v36 = vstv %s2566_s4  ;;  %s2584_s28 = sld [smem:[#allocation2 + $0xf]] }
  0x38   : > { %v179_v1 = vld.sshfl [vmem:[#allocation1] sm:$0xff pattern:$0x75316420]  ;;  %v180_v2 = vld.sshfl [vmem:[#allocation1 + $0x8] sm:$0xff pattern:$0x75316420]  ;;  %v381_v41 = vstv %s2570_s5 }
  0x39   : > { %v184_v3 = vsel %vm183_vm0, %v179_v1, 0.0  ;;  %200 = vst [vmem:[#allocation1] ss:$2 sm:$0xff] %v176_v0  ;;  %v191_v4 = vsel %vm183_vm0, %v180_v2, 0.0  ;;  %v422_v48 = vstv %s2572_s8  ;;  %s2586_s29 = sld [smem:[#allocation2 + $0x16]] }
  0x3a   : > { %v185_v5 = vrot.slane %v184_v3, 4  ;;  %v192_v6 = vrot.slane %v191_v4, 4  ;;  %v463_v52 = vstv %s2574_s17  ;;  %s2567_s30 = sld [smem:[#allocation2 + $0x38]] }
  0x3b   : > { %v504_v56 = vstv %s2576_s19  ;;  %s2569_s3 = sld [smem:[#allocation2 + $0x3f]] }
  0x3c   : > { %v186_v7 = vadd.f32 %v185_v5, %v184_v3  ;;  %v193_v8 = vadd.f32 %v192_v6, %v191_v4  ;;  %v577_v60 = vstv %s2582_s23  ;;  %s2573_s20 = sld [smem:[#allocation2 + $0x4d]] }
  0x3d   : > { %v621_v0 = vstv %s2584_s28  ;;  %s2575_s4 = sld [smem:[#allocation2 + $0x54]] }
  0x3e   : > { %v187_v9 = vrot.slane %v186_v7, 2  ;;  %v194_v10 = vrot.slane %v193_v8, 2  ;;  %s2577_s5 = sld [smem:[#allocation2 + $0x5b]] }
  0x3f   : > { %v665_v4 = vstv %s2586_s29  ;;  %s2583_s8 = sld [smem:[#allocation2 + $0x39]] }
  0x40   : > { %v188_v11 = vadd.f32 %v187_v9, %v186_v7  ;;  %v201_v12 = vld.sshfl [vmem:[#allocation1] sm:$0xff pattern:$0x75316420]  ;;  %v195_v13 = vadd.f32 %v194_v10, %v193_v8  ;;  %v202_v14 = vld.sshfl [vmem:[#allocation1 + $0x8] sm:$0xff pattern:$0x75316420]  ;;  %v319_v9 = vstv %s2567_s30 }
  0x41   : > { %v205_v15 = vsel %vm183_vm0, %v201_v12, -inf  ;;  %v212_v16 = vsel %vm183_vm0, %v202_v14, -inf  ;;  %v360_v14 = vstv %s2569_s3  ;;  %s2585_s17 = sld [smem:[#allocation2 + $0x40]] }
  0x42   : > { %v189_v17 = vrot.slane %v188_v11, 1  ;;  %v206_v18 = vrot.slane %v205_v15, 4  ;;  %v213_v19 = vrot.slane %v212_v16, 4  ;;  %v196_v22 = vrot.slane %v195_v13, 1  ;;  %s2587_s19 = sld [smem:[#allocation2 + $0x47]] }
  0x43   : > { %s2588_s23 = sld [smem:[#allocation2 + $0x1d]] }
  0x44   : > { %v190_v20 = vadd.f32 %v189_v17, %v188_v11  ;;  %v207_v21 = vmax.f32 %v205_v15, %v206_v18  ;;  %v214_v23 = vmax.f32 %v212_v16, %v213_v19  ;;  %v197_v28 = vadd.f32 %v196_v22, %v195_v13  ;;  %s2589_s28 = sld [smem:[#allocation2 + $0x4e]] }
  0x45   : > { %s2590_s29 = sld [smem:[#allocation2 + $0x24]] }
  0x46   : > { %v219_v24 = vmul.f32 0.25, %v190_v20  ;;  %v208_v25 = vrot.slane %v207_v21, 2  ;;  %v215_v26 = vrot.slane %v214_v23, 2  ;;  %v220_v32 = vmul.f32 0.25, %v197_v28  ;;  %s2591_s30 = sld [smem:[#allocation2 + $0x55]] }
  0x47   : > { %s2592_s3 = sld [smem:[#allocation2 + $0x2b]] }
  0x48   : > { %223 = vrot.lane.b32.xlu0 %v219_v24, %s2876_s15  ;;  %v209_v27 = vmax.f32 %v207_v21, %v208_v25  ;;  %v216_v30 = vmax.f32 %v214_v23, %v215_v26  ;;  %v442_v25 = vstv %s2573_s20  ;;  %s2598_s20 = sld [smem:[#allocation2 + $0x9]] }
  0x4a   : > { %v210_v29 = vrot.slane %v209_v27, 1  ;;  %v217_v33 = vrot.slane %v216_v30, 1 }
  0x4c   : > { %v211_v31 = vmax.f32 %v209_v27, %v210_v29  ;;  %v218_v34 = vmax.f32 %v216_v30, %v217_v33  ;;  %v483_v30 = vstv %s2575_s4  ;;  %s2599_s4 = sld [smem:[#allocation2 + $0x3a]] }
  0x4e   : > { %236 = vrot.lane.b32.xlu1 %v211_v31, %s2876_s15 }
  0x50   : > { %225 = vrot.lane.b32.xlu0 %v220_v32, %s2876_s15 }
  0x56   : > { %238 = vrot.lane.b32.xlu1 %v218_v34, %s2876_s15  ;;  %s2571_s15 = sld [smem:[#allocation2 + $0x46]] }
  0x5c   : > { %v401_v20 = vstv %s2571_s15  ;;  %s2593_s15 = sld [smem:[#allocation2 + $0x5c]] }
  0xba   : > { %v224_v37 = vpop.permute.xlu0 %223 }
  0xbb   : > { %v3015_v38 = vsel %vm227_vm1, 0.0, %v224_v37 }
  0xbc   : > { %v341_v39 = vmul.f32 %v340_v35, %v3015_v38  ;;  %v300_v40 = vmul.f32 %v299_v36, %v3015_v38  ;;  %v382_v45 = vmul.f32 %v381_v41, %v3015_v38  ;;  %v423_v49 = vmul.f32 %v422_v48, %v3015_v38 }
  0xbd   : > { %v464_v53 = vmul.f32 %v463_v52, %v3015_v38  ;;  %v505_v57 = vmul.f32 %v504_v56, %v3015_v38  ;;  %v578_v61 = vmul.f32 %v577_v60, %v3015_v38  ;;  %v622_v1 = vmul.f32 %v621_v0, %v3015_v38 }
  0xbe   : > { %347 = vrot.lane.b32.xlu1 %v341_v39, %s2877_s6  ;;  %306 = vrot.lane.b32.xlu2 %v300_v40, %s2878_s7  ;;  %v666_v5 = vmul.f32 %v665_v4, %v3015_v38 }
  0xc0   : > { %v237_v8 = vpop.permute.xlu1 %236 }
  0xc1   : > { %v3070_v10 = vsel %vm227_vm1, 0.0, %v237_v8 }
  0xc2   : > { %v226_v42 = vpop.permute.xlu0 %225  ;;  %v320_v11 = vmul.f32 %v319_v9, %v3070_v10  ;;  %v361_v15 = vmul.f32 %v360_v14, %v3070_v10  ;;  %v402_v23 = vmul.f32 %v401_v20, %v3070_v10  ;;  %v443_v26 = vmul.f32 %v442_v25, %v3070_v10 }
  0xc3   : > { %v3022_v43 = vsel %vm227_vm1, %v224_v37, %v226_v42  ;;  %v3025_v44 = vsel %vm227_vm1, %v226_v42, 0.0  ;;  %v484_v31 = vmul.f32 %v483_v30, %v3070_v10 }
  0xc4   : > { %v302_v46 = vmul.f32 %v299_v36, %v3025_v44  ;;  %v301_v47 = vmul.f32 %v299_v36, %v3022_v43  ;;  %v343_v50 = vmul.f32 %v340_v35, %v3025_v44  ;;  %v342_v51 = vmul.f32 %v340_v35, %v3022_v43 }
  0xc5   : > { %v384_v54 = vmul.f32 %v381_v41, %v3025_v44  ;;  %v383_v55 = vmul.f32 %v381_v41, %v3022_v43  ;;  %v425_v58 = vmul.f32 %v422_v48, %v3025_v44  ;;  %v424_v59 = vmul.f32 %v422_v48, %v3022_v43 }
  0xc6   : > { %388 = vrot.lane.b32.xlu1 %v382_v45, %s2879_s14  ;;  %310 = vrot.lane.b32.xlu0 %v302_v46, %s2878_s7  ;;  %v466_v62 = vmul.f32 %v463_v52, %v3025_v44  ;;  %v465_v63 = vmul.f32 %v463_v52, %v3022_v43  ;;  %v507_v2 = vmul.f32 %v504_v56, %v3025_v44  ;;  %v524_v35 = vstv %s2577_s5  ;;  %s2600_s5 = sld [smem:[#allocation2 + $0x10]] }
  0xc7   : > { %308 = vrot.lane.b32.xlu2 %v301_v47, %s2878_s7  ;;  %v506_v3 = vmul.f32 %v504_v56, %v3022_v43  ;;  %v580_v6 = vmul.f32 %v577_v60, %v3025_v44  ;;  %v579_v7 = vmul.f32 %v577_v60, %v3022_v43  ;;  %v624_v12 = vmul.f32 %v621_v0, %v3025_v44 }
  0xc8   : > { %v623_v13 = vmul.f32 %v621_v0, %v3022_v43  ;;  %v668_v16 = vmul.f32 %v665_v4, %v3025_v44  ;;  %v667_v17 = vmul.f32 %v665_v4, %v3022_v43  ;;  %v239_v18 = vpop.permute.xlu1 %238  ;;  %v525_v36 = vmul.f32 %v524_v35, %v3070_v10 }
  0xc9   : > { %v3085_v19 = vsel %vm227_vm1, %v239_v18, 0.0  ;;  %v3089_v22 = vsel %vm227_vm1, %v237_v8, %v239_v18  ;;  %v598_v41 = vstv %s2583_s8  ;;  %v686_v56 = vstv %s2587_s19  ;;  %s2601_s8 = sld [smem:[#allocation2 + $0x41]] }
  0xca   : > { %v322_v21 = vmul.f32 %v319_v9, %v3085_v19  ;;  %v321_v24 = vmul.f32 %v319_v9, %v3089_v22  ;;  %v363_v27 = vmul.f32 %v360_v14, %v3085_v19  ;;  %v362_v28 = vmul.f32 %v360_v14, %v3089_v22  ;;  %s2603_s19 = sld [smem:[#allocation2 + $0x48]] }
  0xcb   : > { %v404_v32 = vmul.f32 %v401_v20, %v3085_v19  ;;  %v403_v33 = vmul.f32 %v401_v20, %v3089_v22  ;;  %v445_v37 = vmul.f32 %v442_v25, %v3085_v19  ;;  %v444_v39 = vmul.f32 %v442_v25, %v3089_v22 }
  0xcc   : > { %v599_v42 = vmul.f32 %v598_v41, %v3070_v10  ;;  %v486_v45 = vmul.f32 %v483_v30, %v3085_v19  ;;  %v485_v46 = vmul.f32 %v483_v30, %v3089_v22  ;;  %v526_v52 = vmul.f32 %v524_v35, %v3089_v22 }
  0xcd   : > { %v689_v8 = vmul.f32 %v686_v56, %v3085_v19  ;;  %v688_v9 = vmul.f32 %v686_v56, %v3089_v22  ;;  %v753_v14 = vstv %s2590_s29  ;;  %s2606_s29 = sld [smem:[#allocation2 + $0x25]] }
  0xce   : > { %429 = vrot.lane.b32.xlu1 %v423_v49, %s2880_s18  ;;  %351 = vrot.lane.b32.xlu0 %v343_v50, %s2877_s6  ;;  %v642_v49 = vstv %s2585_s17  ;;  %s2602_s17 = sld [smem:[#allocation2 + $0x17]] }
  0xcf   : > { %349 = vrot.lane.b32.xlu2 %v342_v51, %s2877_s6  ;;  %v643_v50 = vmul.f32 %v642_v49, %v3070_v10  ;;  %v527_v51 = vmul.f32 %v524_v35, %v3085_v19  ;;  %v755_v35 = vmul.f32 %v753_v14, %v3022_v43 }
  0xd6   : > { %470 = vrot.lane.b32.xlu1 %v464_v53, %s2881_s22  ;;  %392 = vrot.lane.b32.xlu0 %v384_v54, %s2879_s14 }
  0xd7   : > { %390 = vrot.lane.b32.xlu2 %v383_v55, %s2879_s14 }
  0xde   : > { %511 = vrot.lane.b32.xlu1 %v505_v57, %s2882_s24  ;;  %433 = vrot.lane.b32.xlu0 %v425_v58, %s2880_s18  ;;  %v687_v57 = vmul.f32 %v686_v56, %v3070_v10  ;;  %v601_v58 = vmul.f32 %v598_v41, %v3085_v19 }
  0xdf   : > { %431 = vrot.lane.b32.xlu2 %v424_v59, %s2880_s18  ;;  %v600_v59 = vmul.f32 %v598_v41, %v3089_v22  ;;  %v818_v41 = vstv %s2593_s15  ;;  %s2580_s15 = sld [smem:[#allocation2 + $0x1]] }
  0xe6   : > { %584 = vrot.lane.b32.xlu1 %v578_v61, %s2878_s7  ;;  %474 = vrot.lane.b32.xlu0 %v466_v62, %s2881_s22 }
  0xe7   : > { %472 = vrot.lane.b32.xlu2 %v465_v63, %s2881_s22  ;;  %v709_v63 = vstv %s2588_s23  ;;  %s2604_s23 = sld [smem:[#allocation2 + $0x1e]] }
  0xe8   : > { %v710_v0 = vmul.f32 %v709_v63, %v3015_v38 }
  0xee   : > { %628 = vrot.lane.b32.xlu1 %v622_v1, %s2877_s6  ;;  %515 = vrot.lane.b32.xlu0 %v507_v2, %s2882_s24  ;;  %v645_v1 = vmul.f32 %v642_v49, %v3085_v19  ;;  %v644_v2 = vmul.f32 %v642_v49, %v3089_v22 }
  0xef   : > { %513 = vrot.lane.b32.xlu2 %v506_v3, %s2882_s24 }
  0xf6   : > { %672 = vrot.lane.b32.xlu1 %v666_v5, %s2879_s14  ;;  %588 = vrot.lane.b32.xlu0 %v580_v6, %s2878_s7  ;;  %v730_v6 = vstv %s2589_s28  ;;  %s2605_s28 = sld [smem:[#allocation2 + $0x4f]] }
  0xf7   : > { %586 = vrot.lane.b32.xlu2 %v579_v7, %s2878_s7  ;;  %v731_v7 = vmul.f32 %v730_v6, %v3070_v10  ;;  %v733_v25 = vmul.f32 %v730_v6, %v3085_v19 }
  0xfe   : > { %326 = vrot.lane.b32.xlu1 %v320_v11, %s2878_s7  ;;  %632 = vrot.lane.b32.xlu0 %v624_v12, %s2877_s6 }
  0xff   : > { %630 = vrot.lane.b32.xlu2 %v623_v13, %s2877_s6 }
 0x106   : > { %367 = vrot.lane.b32.xlu1 %v361_v15, %s2877_s6  ;;  %676 = vrot.lane.b32.xlu0 %v668_v16, %s2879_s14  ;;  %v754_v15 = vmul.f32 %v753_v14, %v3015_v38  ;;  %v712_v16 = vmul.f32 %v709_v63, %v3025_v44 }
 0x107   : > { %674 = vrot.lane.b32.xlu2 %v667_v17, %s2879_s14  ;;  %v711_v17 = vmul.f32 %v709_v63, %v3022_v43 }
 0x10e   : > { %408 = vrot.lane.b32.xlu1 %v402_v23, %s2879_s14  ;;  %330 = vrot.lane.b32.xlu0 %v322_v21, %s2878_s7  ;;  %v774_v23 = vstv %s2591_s30  ;;  %s2607_s30 = sld [smem:[#allocation2 + $0x56]] }
 0x10f   : > { %328 = vrot.lane.b32.xlu2 %v321_v24, %s2878_s7  ;;  %v775_v24 = vmul.f32 %v774_v23, %v3070_v10 }
 0x116   : > { %449 = vrot.lane.b32.xlu1 %v443_v26, %s2880_s18  ;;  %371 = vrot.lane.b32.xlu0 %v363_v27, %s2877_s6  ;;  %v732_v26 = vmul.f32 %v730_v6, %v3089_v22  ;;  %v821_v6 = vmul.f32 %v818_v41, %v3085_v19 }
 0x117   : > { %369 = vrot.lane.b32.xlu2 %v362_v28, %s2877_s6 }
 0x118   : > { %v3102_v29 = vpop.permute.xlu2 %306 }
 0x11e   : > { %490 = vrot.lane.b32.xlu1 %v484_v31, %s2881_s22  ;;  %412 = vrot.lane.b32.xlu0 %v404_v32, %s2879_s14  ;;  %v797_v31 = vstv %s2592_s3  ;;  %s2581_s3 = sld [smem:[#allocation2 + $0x32]] }
 0x11f   : > { %410 = vrot.lane.b32.xlu2 %v403_v33, %s2879_s14  ;;  %v798_v32 = vmul.f32 %v797_v31, %v3015_v38  ;;  %v756_v33 = vmul.f32 %v753_v14, %v3025_v44 }
 0x121   : > { %v3110_v34 = vpop.permute.xlu2 %308 }
 0x126   : > { %531 = vrot.lane.b32.xlu1 %v525_v36, %s2882_s24  ;;  %453 = vrot.lane.b32.xlu0 %v445_v37, %s2880_s18 }
 0x127   : > { %451 = vrot.lane.b32.xlu2 %v444_v39, %s2880_s18 }
 0x129   : > { %v3118_v40 = vpop.permute.xlu2 %349 }
 0x12e   : > { %605 = vrot.lane.b32.xlu1 %v599_v42, %s2878_s7  ;;  %494 = vrot.lane.b32.xlu0 %v486_v45, %s2881_s22  ;;  %v819_v42 = vmul.f32 %v818_v41, %v3070_v10  ;;  %v777_v45 = vmul.f32 %v774_v23, %v3085_v19 }
 0x12f   : > { %492 = vrot.lane.b32.xlu2 %v485_v46, %s2881_s22  ;;  %v776_v46 = vmul.f32 %v774_v23, %v3089_v22 }
 0x130   : > { %v3126_v47 = vpop.permute.xlu1 %347 }
 0x131   : > { %v3128_v48 = vpop.permute.xlu2 %390 }
 0x136   : > { %649 = vrot.lane.b32.xlu1 %v643_v50, %s2877_s6  ;;  %535 = vrot.lane.b32.xlu0 %v527_v51, %s2882_s24 }
 0x137   : > { %533 = vrot.lane.b32.xlu2 %v526_v52, %s2882_s24  ;;  %v887_v52 = vstv %s2598_s20  ;;  %s2608_s20 = sld [smem:[#allocation2 + $0x2c]] }
 0x138   : > { %v3136_v53 = vpop.permute.xlu1 %388  ;;  %v3138_v54 = vpop.permute.xlu0 %310  ;;  %v888_v56 = vmul.f32 %v887_v52, %v3015_v38  ;;  %v889_v23 = vmul.f32 %v887_v52, %v3022_v43 }
 0x139   : > { %v3140_v55 = vpop.permute.xlu2 %431 }
 0x13e   : > { %693 = vrot.lane.b32.xlu1 %v687_v57, %s2879_s14  ;;  %609 = vrot.lane.b32.xlu0 %v601_v58, %s2878_s7  ;;  %v800_v57 = vmul.f32 %v797_v31, %v3025_v44  ;;  %v799_v58 = vmul.f32 %v797_v31, %v3022_v43  ;;  %v952_v31 = vstv %s2601_s8  ;;  %s2597_s8 = sld [smem:[#allocation2 + $0x33]] }
 0x13f   : > { %607 = vrot.lane.b32.xlu2 %v600_v59, %s2878_s7 }
 0x140   : > { %v3148_v60 = vpop.permute.xlu1 %429  ;;  %v3150_v61 = vpop.permute.xlu0 %351 }
 0x141   : > { %4291 = vst [vmem:[#allocation11_spill] sm:$0xff] %v3150_v61  ;;  %v3152_v62 = vpop.permute.xlu2 %472 }
 0x142   : > { %4292 = vst [vmem:[#allocation12_spill] sm:$0xff] %v3152_v62 }
 0x146   : > { %716 = vrot.lane.b32.xlu1 %v710_v0, %s2880_s18  ;;  %653 = vrot.lane.b32.xlu0 %v645_v1, %s2877_s6  ;;  %v908_v1 = vstv %s2599_s4  ;;  %s2883_s4 = smov 127  }
 0x147   : > { %651 = vrot.lane.b32.xlu2 %v644_v2, %s2877_s6  ;;  %v909_v2 = vmul.f32 %v908_v1, %v3070_v10 }
 0x148   : > { %v3160_v3 = vpop.permute.xlu1 %470  ;;  %v3162_v4 = vpop.permute.xlu0 %392 }
 0x149   : > { %4293 = vst [vmem:[#allocation13_spill] sm:$0xff] %v3160_v3  ;;  %v3164_v5 = vpop.permute.xlu2 %513 }
 0x14a   : > { %4294 = vst [vmem:[#allocation14_spill] sm:$0xff] %v3162_v4  ;;  %v561_v4 = vstv %s2580_s15  ;;  %s2617_s15 = sld [smem:[#allocation2 + $0x49]] }
 0x14b   : > { %4295 = vst [vmem:[#allocation15_spill] sm:$0xff] %v3164_v5 }
 0x14e   : > { %737 = vrot.lane.b32.xlu1 %v731_v7, %s2880_s18  ;;  %697 = vrot.lane.b32.xlu0 %v689_v8, %s2879_s14  ;;  %v820_v7 = vmul.f32 %v818_v41, %v3089_v22 }
 0x14f   : > { %695 = vrot.lane.b32.xlu2 %v688_v9, %s2879_s14 }
 0x150   : > { %v3172_v11 = vpop.permute.xlu1 %511  ;;  %v3174_v12 = vpop.permute.xlu0 %433 }
 0x151   : > { %4296 = vst [vmem:[#allocation16_spill] sm:$0xff] %v3172_v11  ;;  %v3176_v13 = vpop.permute.xlu2 %586  ;;  %v562_v11 = vmul.f32 %v561_v4, %v3015_v38 }
 0x152   : > { %4297 = vst [vmem:[#allocation17_spill] sm:$0xff] %v3174_v12 }
 0x156   : > { %760 = vrot.lane.b32.xlu1 %v754_v15, %s2881_s22  ;;  %720 = vrot.lane.b32.xlu0 %v712_v16, %s2880_s18  ;;  %v931_v15 = vstv %s2600_s5  ;;  %s2609_s5 = sld [smem:[#allocation2 + $0x5d]] }
 0x157   : > { %718 = vrot.lane.b32.xlu2 %v711_v17, %s2880_s18  ;;  %v932_v16 = vmul.f32 %v931_v15, %v3015_v38  ;;  %v890_v17 = vmul.f32 %v887_v52, %v3025_v44 }
 0x158   : > { %v3184_v18 = vpop.permute.xlu1 %584  ;;  %v3186_v20 = vpop.permute.xlu0 %474 }
 0x159   : > { %4298 = vst [vmem:[#allocation18_spill] sm:$0xff] %v3186_v20  ;;  %v3188_v21 = vpop.permute.xlu2 %630 }
 0x15e   : > { %781 = vrot.lane.b32.xlu1 %v775_v24, %s2881_s22  ;;  %741 = vrot.lane.b32.xlu0 %v733_v25, %s2880_s18 }
 0x15f   : > { %739 = vrot.lane.b32.xlu2 %v732_v26, %s2880_s18 }
 0x160   : > { %v3196_v27 = vpop.permute.xlu1 %628  ;;  %v3198_v28 = vpop.permute.xlu0 %515 }
 0x161   : > { %4299 = vst [vmem:[#allocation19_spill] sm:$0xff] %v3198_v28  ;;  %v3200_v30 = vpop.permute.xlu2 %674 }
 0x166   : > { %804 = vrot.lane.b32.xlu1 %v798_v32, %s2882_s24  ;;  %764 = vrot.lane.b32.xlu0 %v756_v33, %s2881_s22  ;;  %v953_v32 = vmul.f32 %v952_v31, %v3070_v10  ;;  %v911_v33 = vmul.f32 %v908_v1, %v3085_v19 }
 0x167   : > { %762 = vrot.lane.b32.xlu2 %v755_v35, %s2881_s22  ;;  %v910_v35 = vmul.f32 %v908_v1, %v3089_v22 }
 0x168   : > { %v3208_v36 = vpop.permute.xlu1 %672  ;;  %v3210_v37 = vpop.permute.xlu0 %588 }
 0x169   : > { %v3212_v39 = vpop.permute.xlu2 %328 }
 0x16e   : > { %825 = vrot.lane.b32.xlu1 %v819_v42, %s2882_s24  ;;  %785 = vrot.lane.b32.xlu0 %v777_v45, %s2881_s22 }
 0x16f   : > { %783 = vrot.lane.b32.xlu2 %v776_v46, %s2881_s22  ;;  %v975_v46 = vstv %s2602_s17  ;;  %s2596_s17 = sld [smem:[#allocation2 + $0x2]] }
 0x170   : > { %v3220_v49 = vpop.permute.xlu1 %326  ;;  %v3222_v50 = vpop.permute.xlu0 %632  ;;  %v976_v52 = vmul.f32 %v975_v46, %v3015_v38 }
 0x171   : > { %v3224_v51 = vpop.permute.xlu2 %369 }
 0x176   : > { %894 = vrot.lane.b32.xlu1 %v888_v56, %s2878_s7  ;;  %808 = vrot.lane.b32.xlu0 %v800_v57, %s2882_s24  ;;  %v934_v56 = vmul.f32 %v931_v15, %v3025_v44  ;;  %v933_v57 = vmul.f32 %v931_v15, %v3022_v43  ;;  %v954_v15 = vmul.f32 %v952_v31, %v3089_v22 }
 0x177   : > { %806 = vrot.lane.b32.xlu2 %v799_v58, %s2882_s24 }
 0x178   : > { %v3232_v59 = vpop.permute.xlu1 %367  ;;  %v3234_v63 = vpop.permute.xlu0 %676 }
 0x179   : > { %v3236_v0 = vpop.permute.xlu2 %410 }
 0x17e   : > { %915 = vrot.lane.b32.xlu1 %v909_v2, %s2878_s7  ;;  %829 = vrot.lane.b32.xlu0 %v821_v6, %s2882_s24  ;;  %v996_v6 = vstv %s2603_s19  ;;  %s2612_s19 = sld [smem:[#allocation2 + $0xa]] }
 0x17f   : > { %827 = vrot.lane.b32.xlu2 %v820_v7, %s2882_s24  ;;  %v997_v7 = vmul.f32 %v996_v6, %v3070_v10  ;;  %v999_v28 = vmul.f32 %v996_v6, %v3085_v19 }
 0x180   : > { %v3244_v8 = vpop.permute.xlu1 %408  ;;  %v3246_v9 = vpop.permute.xlu0 %330 }
 0x181   : > { %4300 = vst [vmem:[#allocation20_spill] sm:$0xff] %v3246_v9  ;;  %v3248_v14 = vpop.permute.xlu2 %451 }
 0x182   : > { %4301 = vst [vmem:[#allocation21_spill] sm:$0xff] %v3248_v14 }
 0x186   : > { %938 = vrot.lane.b32.xlu1 %v932_v16, %s2877_s6  ;;  %898 = vrot.lane.b32.xlu0 %v890_v17, %s2878_s7  ;;  %v955_v16 = vmul.f32 %v952_v31, %v3085_v19 }
 0x187   : > { %896 = vrot.lane.b32.xlu2 %v889_v23, %s2878_s7 }
 0x188   : > { %v3256_v24 = vpop.permute.xlu1 %449  ;;  %v3258_v25 = vpop.permute.xlu0 %371 }
 0x189   : > { %4302 = vst [vmem:[#allocation22_spill] sm:$0xff] %v3256_v24  ;;  %v3260_v26 = vpop.permute.xlu2 %492 }
 0x18a   : > { %4303 = vst [vmem:[#allocation23_spill] sm:$0xff] %v3258_v25 }
 0x18b   : > { %4304 = vst [vmem:[#allocation24_spill] sm:$0xff] %v3260_v26 }
 0x18e   : > { %959 = vrot.lane.b32.xlu1 %v953_v32, %s2877_s6  ;;  %919 = vrot.lane.b32.xlu0 %v911_v33, %s2878_s7  ;;  %v1019_v33 = vstv %s2604_s23  ;;  %s2884_s23 = smov 126  }
 0x18f   : > { %917 = vrot.lane.b32.xlu2 %v910_v35, %s2878_s7  ;;  %v1020_v35 = vmul.f32 %v1019_v33, %v3015_v38  ;;  %v1022_v20 = vmul.f32 %v1019_v33, %v3025_v44 }
 0x190   : > { %v3268_v41 = vpop.permute.xlu1 %490  ;;  %v3270_v42 = vpop.permute.xlu0 %412 }
 0x191   : > { %4305 = vst [vmem:[#allocation25_spill] sm:$0xff] %v3268_v41  ;;  %v3272_v45 = vpop.permute.xlu2 %533 }
 0x192   : > { %4306 = vst [vmem:[#allocation26_spill] sm:$0xff] %v3270_v42 }
 0x193   : > { %4307 = vst [vmem:[#allocation27_spill] sm:$0xff] %v3272_v45 }
 0x196   : > { %982 = vrot.lane.b32.xlu1 %v976_v52, %s2879_s14  ;;  %942 = vrot.lane.b32.xlu0 %v934_v56, %s2877_s6  ;;  %v978_v52 = vmul.f32 %v975_v46, %v3025_v44  ;;  %v977_v56 = vmul.f32 %v975_v46, %v3022_v43 }
 0x197   : > { %940 = vrot.lane.b32.xlu2 %v933_v57, %s2877_s6 }
 0x198   : > { %v3280_v58 = vpop.permute.xlu1 %531  ;;  %v3282_v1 = vpop.permute.xlu0 %453 }
 0x199   : > { %4308 = vst [vmem:[#allocation28_spill] sm:$0xff] %v3280_v58  ;;  %v3284_v2 = vpop.permute.xlu2 %607 }
 0x19a   : > { %4309 = vst [vmem:[#allocation29_spill] sm:$0xff] %v3282_v1  ;;  %v1021_v1 = vmul.f32 %v1019_v33, %v3022_v43 }
 0x19e   : > { %1003 = vrot.lane.b32.xlu1 %v997_v7, %s2879_s14  ;;  %963 = vrot.lane.b32.xlu0 %v955_v16, %s2877_s6  ;;  %v1040_v16 = vstv %s2605_s28  ;;  %s2613_s28 = sld [smem:[#allocation2 + $0x3b]] }
 0x19f   : > { %961 = vrot.lane.b32.xlu2 %v954_v15, %s2877_s6  ;;  %v1041_v15 = vmul.f32 %v1040_v16, %v3070_v10  ;;  %v1043_v33 = vmul.f32 %v1040_v16, %v3085_v19 }
 0x1a0   : > { %v606_v17 = vpop.permute.xlu1 %605  ;;  %v3292_v23 = vpop.permute.xlu0 %494 }
 0x1a1   : > { %4310 = vst [vmem:[#allocation30_spill] sm:$0xff] %v3292_v23  ;;  %v3294_v32 = vpop.permute.xlu2 %651  ;;  %v998_v23 = vmul.f32 %v996_v6, %v3089_v22  ;;  %v611_v5 = vsel %vm312_vm2, %v606_v17, %v3284_v2 }
 0x1a6   : > { %1026 = vrot.lane.b32.xlu1 %v1020_v35, %s2880_s18  ;;  %986 = vrot.lane.b32.xlu0 %v978_v52, %s2879_s14 }
 0x1a7   : > { %984 = vrot.lane.b32.xlu2 %v977_v56, %s2879_s14  ;;  %v1063_v56 = vstv %s2606_s29  ;;  %s2614_s29 = sld [smem:[#allocation2 + $0x11]] }
 0x1a8   : > { %v650_v31 = vpop.permute.xlu1 %649  ;;  %v3302_v57 = vpop.permute.xlu0 %535 }
 0x1a9   : > { %4311 = vst [vmem:[#allocation31_spill] sm:$0xff] %v3302_v57  ;;  %v3304_v7 = vpop.permute.xlu2 %695  ;;  %v1064_v57 = vmul.f32 %v1063_v56, %v3015_v38 }
 0x1ae   : > { %1047 = vrot.lane.b32.xlu1 %v1041_v15, %s2880_s18  ;;  %1007 = vrot.lane.b32.xlu0 %v999_v28, %s2879_s14  ;;  %v3326_v15 = vstv %s2607_s30  ;;  %s2615_s30 = sld [smem:[#allocation2 + $0x42]] }
 0x1af   : > { %1005 = vrot.lane.b32.xlu2 %v998_v23, %s2879_s14  ;;  %v1085_v12 = vmul.f32 %v3326_v15, %v3070_v10 }
 0x1b0   : > { %v694_v46 = vpop.permute.xlu1 %693  ;;  %v3312_v35 = vpop.permute.xlu0 %609 }
 0x1b1   : > { %v3314_v52 = vpop.permute.xlu2 %718 }
 0x1b6   : > { %1070 = vrot.lane.b32.xlu1 %v1064_v57, %s2881_s22  ;;  %1030 = vrot.lane.b32.xlu0 %v1022_v20, %s2880_s18  ;;  %v1042_v57 = vmul.f32 %v1040_v16, %v3089_v22  ;;  %v568_v20 = vstv %s2581_s3  ;;  %v1066_v16 = vmul.f32 %v1063_v56, %v3025_v44  ;;  %s2616_s3 = sld [smem:[#allocation2 + $0x18]] }
 0x1b7   : > { %1028 = vrot.lane.b32.xlu2 %v1021_v1, %s2880_s18  ;;  %v569_v45 = vmul.f32 %v568_v20, %v3070_v10 }
 0x1b8   : > { %v717_v28 = vpop.permute.xlu1 %716  ;;  %v3322_v6 = vpop.permute.xlu0 %653 }
 0x1b9   : > { %v3324_v23 = vpop.permute.xlu2 %739 }
 0x1be   : > { %1091 = vrot.lane.b32.xlu1 %v1085_v12, %s2881_s22  ;;  %1051 = vrot.lane.b32.xlu0 %v1043_v33, %s2880_s18  ;;  %v590_v12 = vsel %vm312_vm2, %v3184_v18, %v3176_v13  ;;  %v1065_v33 = vmul.f32 %v1063_v56, %v3022_v43  ;;  %v634_v18 = vsel %vm353_vm3, %v3196_v27, %v3188_v21 }
 0x1bf   : > { %1049 = vrot.lane.b32.xlu2 %v1042_v57, %s2880_s18  ;;  %v572_v57 = vadd.f32 %v569_v45, %v562_v11  ;;  %v655_v11 = vsel %vm353_vm3, %v650_v31, %v3294_v32  ;;  %v1086_v45 = vmul.f32 %v3326_v15, %v3089_v22  ;;  %v678_v27 = vsel %vm394_vm4, %v3208_v36, %v3200_v30 }
 0x1c0   : > { %v738_v1 = vpop.permute.xlu1 %737  ;;  %v3335_v42 = vpop.permute.xlu0 %697  ;;  %v564_v31 = vmul.f32 %v561_v4, %v3025_v44 }
 0x1c1   : > { %v3337_v58 = vpop.permute.xlu2 %762  ;;  %v595_v25 = vadd.f32 %v590_v12, %v572_v57 }
 0x1c3   : > { %v616_v26 = vadd.f32 %v611_v5, %v595_v25  ;;  %v571_v5 = vmul.f32 %v568_v20, %v3085_v19  ;;  %v570_v25 = vmul.f32 %v568_v20, %v3089_v22  ;;  %v722_v20 = vsel %vm435_vm5, %v717_v28, %v3314_v52 }
 0x1c5   : > { %v639_v17 = vadd.f32 %v634_v18, %v616_v26  ;;  %v563_v26 = vmul.f32 %v561_v4, %v3022_v43  ;;  %v574_v18 = vadd.f32 %v571_v5, %v564_v31  ;;  %v743_v4 = vsel %vm435_vm5, %v738_v1, %v3324_v23 }
 0x1c6   : > { %1074 = vrot.lane.b32.xlu0 %v1066_v16, %s2881_s22  ;;  %v635_v1 = vsel %vm353_vm3, %v3188_v21, %v3222_v50 }
 0x1c7   : > { %1072 = vrot.lane.b32.xlu2 %v1065_v33, %s2881_s22  ;;  %v660_v56 = vadd.f32 %v655_v11, %v639_v17  ;;  %v699_v33 = vsel %vm394_vm4, %v694_v46, %v3304_v7  ;;  %v591_v11 = vsel %vm312_vm2, %v3176_v13, %v3210_v37  ;;  %v573_v17 = vadd.f32 %v570_v25, %v563_v26 }
 0x1c8   : > { %v761_v61 = vpop.permute.xlu1 %760  ;;  %v3350_v41 = vpop.permute.xlu0 %720  ;;  %v597_v62 = vadd.f32 %v3210_v37, %v574_v18  ;;  %v612_v46 = vsel %vm312_vm2, %v3284_v2, %v3312_v35 }
 0x1c9   : > { %v3352_v3 = vpop.permute.xlu2 %783  ;;  %v683_v57 = vadd.f32 %v678_v27, %v660_v56  ;;  %v596_v56 = vadd.f32 %v591_v11, %v573_v17  ;;  %v766_v28 = vsel %vm476_vm6, %v761_v61, %v3337_v58 }
 0x1ca   : > { %v618_v31 = vadd.f32 %v3312_v35, %v597_v62  ;;  %v656_v62 = vsel %vm353_vm3, %v3294_v32, %v3322_v6 }
 0x1cb   : > { %v704_v36 = vadd.f32 %v699_v33, %v683_v57  ;;  %v617_v25 = vadd.f32 %v612_v46, %v596_v56 }
 0x1cc   : > { %v641_v26 = vadd.f32 %v3222_v50, %v618_v31  ;;  %v679_v50 = vsel %vm394_vm4, %v3200_v30, %v3234_v63 }
 0x1cd   : > { %v727_v5 = vadd.f32 %v722_v20, %v704_v36  ;;  %v640_v61 = vadd.f32 %v635_v1, %v617_v25 }
 0x1ce   : > { %v662_v18 = vadd.f32 %v3322_v6, %v641_v26 }
 0x1cf   : > { %1093 = vrot.lane.b32.xlu2 %v1086_v45, %s2881_s22  ;;  %v748_v33 = vadd.f32 %v743_v4, %v727_v5  ;;  %v700_v4 = vsel %vm394_vm4, %v3304_v7, %v3335_v42  ;;  %v723_v5 = vsel %vm435_vm5, %v3314_v52, %v3350_v41 }
 0x1d0   : > { %v782_v16 = vpop.permute.xlu1 %781  ;;  %v742_v12 = vpop.permute.xlu0 %741  ;;  %v685_v32 = vadd.f32 %v3234_v63, %v662_v18  ;;  %v1107_v63 = vstv %s2608_s20  ;;  %s2618_s20 = sld [smem:[#allocation2 + $0x1f]] }
 0x1d1   : > { %v807_v45 = vpop.permute.xlu2 %806  ;;  %v787_v37 = vsel %vm476_vm6, %v782_v16, %v3352_v3  ;;  %v771_v2 = vadd.f32 %v766_v28, %v748_v33  ;;  %v661_v16 = vadd.f32 %v656_v62, %v640_v61  ;;  %v744_v30 = vsel %vm435_vm5, %v3324_v23, %v742_v12 }
 0x1d2   : > { %v706_v56 = vadd.f32 %v3335_v42, %v685_v32  ;;  %v1108_v42 = vmul.f32 %v1107_v63, %v3015_v38 }
 0x1d3   : > { %v792_v57 = vadd.f32 %v787_v37, %v771_v2  ;;  %v684_v6 = vadd.f32 %v679_v50, %v661_v16 }
 0x1d4   : > { %v729_v31 = vadd.f32 %v3350_v41, %v706_v56 }
 0x1d6   : > { %v750_v25 = vadd.f32 %v742_v12, %v729_v31 }
 0x1d8   : > { %v805_v27 = vpop.permute.xlu1 %804  ;;  %v765_v13 = vpop.permute.xlu0 %764 }
 0x1d9   : > { %v810_v35 = vsel %vm517_vm7, %v805_v27, %v807_v45  ;;  %v828_v11 = vpop.permute.xlu2 %827  ;;  %v705_v27 = vadd.f32 %v700_v4, %v684_v6  ;;  %v767_v33 = vsel %vm476_vm6, %v3337_v58, %v765_v13  ;;  %v773_v2 = vadd.f32 %v765_v13, %v750_v25 }
 0x1da   : > { %v815_v20 = vadd.f32 %v810_v35, %v792_v57  ;;  %v1128_v35 = vstv %s2609_s5  ;;  %s2620_s5 = sld [smem:[#allocation2 + $0x26]] }
 0x1db   : > { %v728_v28 = vadd.f32 %v723_v5, %v705_v27  ;;  %v1129_v16 = vmul.f32 %v1128_v35, %v3070_v10  ;;  %v1131_v50 = vmul.f32 %v1128_v35, %v3085_v19 }
 0x1dd   : > { %v749_v37 = vadd.f32 %v744_v30, %v728_v28 }
 0x1df   : > { %v772_v1 = vadd.f32 %v767_v33, %v749_v37 }
 0x1e0   : > { %v826_v17 = vpop.permute.xlu1 %825  ;;  %v786_v36 = vpop.permute.xlu0 %785 }
 0x1e1   : > { %v831_v21 = vsel %vm517_vm7, %v826_v17, %v828_v11  ;;  %v788_v52 = vsel %vm476_vm6, %v3352_v3, %v786_v36  ;;  %v794_v41 = vadd.f32 %v786_v36, %v773_v2  ;;  %v3419_v12 = vpop.permute.xlu2 %896  ;;  %v1109_v17 = vmul.f32 %v1107_v63, %v3022_v43 }
 0x1e2   : > { %v836_v46 = vadd.f32 %v831_v21, %v815_v20  ;;  %v793_v26 = vadd.f32 %v788_v52, %v772_v1  ;;  %v1110_v36 = vmul.f32 %v1107_v63, %v3025_v44  ;;  %v1130_v21 = vmul.f32 %v1128_v35, %v3089_v22 }
 0x1e4   : > { %842 = vrot.lane.b32.xlu1 %v836_v46, %s2883_s4 }
 0x1e8   : > { %v809_v7 = vpop.permute.xlu0 %808  ;;  %v895_v3 = vpop.permute.xlu1 %894 }
 0x1e9   : > { %v811_v23 = vsel %vm517_vm7, %v807_v45, %v809_v7  ;;  %v817_v62 = vadd.f32 %v809_v7, %v794_v41  ;;  %v1087_v45 = vmul.f32 %v3326_v15, %v3085_v19  ;;  %v3428_v20 = vpop.permute.xlu2 %917  ;;  %v878_v41 = vstv %s2597_s8  ;;  %s2621_s8 = sld [smem:[#allocation2 + $0x57]] }
 0x1ea   : > { %v816_v61 = vadd.f32 %v811_v23, %v793_v26  ;;  %v879_v35 = vmul.f32 %v878_v41, %v3070_v10 }
 0x1ec   : > { %1114 = vrot.lane.b32.xlu1 %v1108_v42, %s2882_s24 }
 0x1f0   : > { %v830_v58 = vpop.permute.xlu0 %829 }
 0x1f1   : > { %v832_v57 = vsel %vm517_vm7, %v828_v11, %v830_v58  ;;  %v838_v18 = vadd.f32 %v830_v58, %v817_v62  ;;  %v916_v11 = vpop.permute.xlu1 %915  ;;  %v3436_v46 = vpop.permute.xlu2 %940  ;;  %v871_v62 = vstv %s2596_s17  ;;  %s2622_s17 = sld [smem:[#allocation2 + $0x2d]] }
 0x1f2   : > { %v837_v13 = vadd.f32 %v832_v57, %v816_v61  ;;  %v872_v61 = vmul.f32 %v871_v62, %v3015_v38  ;;  %v900_v57 = vsel %vm312_vm2, %v895_v3, %v3419_v12 }
 0x1f3   : > { %846 = vrot.lane.b32.xlu0 %v838_v18, %s2883_s4 }
 0x1f4   : > { %844 = vrot.lane.b32.xlu2 %v837_v13, %s2883_s4  ;;  %1135 = vrot.lane.b32.xlu1 %v1129_v16, %s2882_s24  ;;  %v882_v18 = vadd.f32 %v879_v35, %v872_v61  ;;  %v921_v13 = vsel %vm312_vm2, %v916_v11, %v3428_v20  ;;  %s2619_s4 = sld [smem:[#allocation2 + $0x50]] }
 0x1f6   : > { %v905_v16 = vadd.f32 %v900_v57, %v882_v18 }
 0x1f8   : > { %v3441_v32 = vpop.permute.xlu0 %898 }
 0x1f9   : > { %v939_v15 = vpop.permute.xlu1 %938  ;;  %v3443_v4 = vpop.permute.xlu2 %961 }
 0x1fb   : > { %1095 = vrot.lane.b32.xlu0 %v1087_v45, %s2881_s22 }
 0x1fc   : > { %1116 = vrot.lane.b32.xlu2 %v1109_v17, %s2882_s24  ;;  %v944_v17 = vsel %vm353_vm3, %v939_v15, %v3436_v46 }
 0x200   : > { %v3445_v56 = vpop.permute.xlu0 %919 }
 0x201   : > { %v960_v6 = vpop.permute.xlu1 %959  ;;  %v3447_v5 = vpop.permute.xlu2 %984 }
 0x203   : > { %1118 = vrot.lane.b32.xlu0 %v1110_v36, %s2882_s24 }
 0x204   : > { %1137 = vrot.lane.b32.xlu2 %v1130_v21, %s2882_s24  ;;  %v926_v21 = vadd.f32 %v921_v13, %v905_v16 }
 0x206   : > { %v949_v9 = vadd.f32 %v944_v17, %v926_v21  ;;  %v881_v21 = vmul.f32 %v878_v41, %v3085_v19 }
 0x208   : > { %v3449_v31 = vpop.permute.xlu0 %942 }
 0x209   : > { %v983_v27 = vpop.permute.xlu1 %982  ;;  %v3451_v30 = vpop.permute.xlu2 %1005 }
 0x20a   : > { %v988_v3 = vsel %vm394_vm4, %v983_v27, %v3447_v5 }
 0x20b   : > { %1139 = vrot.lane.b32.xlu0 %v1131_v50, %s2882_s24  ;;  %v965_v50 = vsel %vm353_vm3, %v960_v6, %v3443_v4 }
 0x20c   : > { %v970_v35 = vadd.f32 %v965_v50, %v949_v9 }
 0x20e   : > { %v993_v61 = vadd.f32 %v988_v3, %v970_v35 }
 0x210   : > { %v3453_v28 = vpop.permute.xlu0 %963 }
 0x211   : > { %v1004_v63 = vpop.permute.xlu1 %1003  ;;  %v3455_v7 = vpop.permute.xlu2 %1028 }
 0x212   : > { %v1009_v11 = vsel %vm394_vm4, %v1004_v63, %v3451_v30 }
 0x213   : > { %v1014_v57 = vadd.f32 %v1009_v11, %v993_v61  ;;  %v873_v11 = vmul.f32 %v871_v62, %v3022_v43 }
 0x218   : > { %v3457_v33 = vpop.permute.xlu0 %986 }
 0x219   : > { %v1027_v25 = vpop.permute.xlu1 %1026  ;;  %v3459_v37 = vpop.permute.xlu2 %1049 }
 0x21a   : > { %v1032_v15 = vsel %vm435_vm5, %v1027_v25, %v3455_v7  ;;  %v880_v25 = vmul.f32 %v878_v41, %v3089_v22 }
 0x21b   : > { %v1037_v16 = vadd.f32 %v1032_v15, %v1014_v57 }
 0x21c   : > { %v883_v41 = vadd.f32 %v880_v25, %v873_v11 }
 0x220   : > { %v3461_v2 = vpop.permute.xlu0 %1007 }
 0x221   : > { %v1048_v42 = vpop.permute.xlu1 %1047  ;;  %v3463_v52 = vpop.permute.xlu2 %1072 }
 0x222   : > { %v1053_v6 = vsel %vm435_vm5, %v1048_v42, %v3459_v37  ;;  %v874_v42 = vmul.f32 %v871_v62, %v3025_v44  ;;  %v922_v62 = vsel %vm312_vm2, %v3428_v20, %v3445_v56 }
 0x223   : > { %v1058_v9 = vadd.f32 %v1053_v6, %v1037_v16 }
 0x228   : > { %v3465_v23 = vpop.permute.xlu0 %1030 }
 0x229   : > { %v1071_v1 = vpop.permute.xlu1 %1070  ;;  %v3467_v26 = vpop.permute.xlu2 %1093 }
 0x22a   : > { %v1076_v27 = vsel %vm476_vm6, %v1071_v1, %v3463_v52  ;;  %v884_v1 = vadd.f32 %v881_v21, %v874_v42 }
 0x22b   : > { %v1081_v50 = vadd.f32 %v1076_v27, %v1058_v9 }
 0x230   : > { %v3479_v36 = vpop.permute.xlu0 %1051 }
 0x231   : > { %v1092_v58 = vpop.permute.xlu1 %1091 }
 0x232   : > { %v1097_v63 = vsel %vm476_vm6, %v1092_v58, %v3467_v26  ;;  %v901_v58 = vsel %vm312_vm2, %v3419_v12, %v3441_v32  ;;  %v945_v12 = vsel %vm353_vm3, %v3436_v46, %v3449_v31  ;;  %v989_v46 = vsel %vm394_vm4, %v3447_v5, %v3457_v33 }
 0x233   : > { %v1102_v35 = vadd.f32 %v1097_v63, %v1081_v50  ;;  %v906_v9 = vadd.f32 %v901_v58, %v883_v41 }
 0x235   : > { %v927_v21 = vadd.f32 %v922_v62, %v906_v9 }
 0x237   : > { %v950_v25 = vadd.f32 %v945_v12, %v927_v21  ;;  %v1239_v21 = vstv %s2614_s29  ;;  %s2628_s29 = sld [smem:[#allocation2 + $0xb]] }
 0x238   : > { %v1075_v13 = vpop.permute.xlu0 %1074 }
 0x24e   : > { %v3475_v45 = vpop.permute.xlu2 %844 }
 0x24f   : > { %4312 = vst [vmem:[#allocation32_spill] sm:$0xff] %v3475_v45 }
 0x256   : > { %v3483_v24 = vpop.permute.xlu1 %842  ;;  %v3491_v18 = vpop.permute.xlu2 %1116 }
 0x257   : > { %4313 = vst [vmem:[#allocation33_spill] sm:$0xff] %v3483_v24 }
 0x25e   : > { %v1115_v17 = vpop.permute.xlu1 %1114  ;;  %v1138_v57 = vpop.permute.xlu2 %1137 }
 0x25f   : > { %v1120_v3 = vsel %vm517_vm7, %v1115_v17, %v3491_v18  ;;  %v907_v17 = vadd.f32 %v3441_v32, %v884_v1  ;;  %v966_v32 = vsel %vm353_vm3, %v3443_v4, %v3453_v28 }
 0x260   : > { %v1125_v15 = vadd.f32 %v1120_v3, %v1102_v35  ;;  %v1195_v3 = vstv %s2612_s19  ;;  %v971_v42 = vadd.f32 %v966_v32, %v950_v25  ;;  %s2623_s19 = sld [smem:[#allocation2 + $0x5e]] }
 0x261   : > { %v928_v63 = vadd.f32 %v3445_v56, %v907_v17  ;;  %v1196_v11 = vmul.f32 %v1195_v3, %v3015_v38  ;;  %v1198_v32 = vmul.f32 %v1195_v3, %v3025_v44  ;;  %v1197_v25 = vmul.f32 %v1195_v3, %v3022_v43 }
 0x262   : > { %v994_v4 = vadd.f32 %v989_v46, %v971_v42  ;;  %v1304_v3 = vstv %s2617_s15  ;;  %s2630_s15 = sld [smem:[#allocation2 + $0x12]] }
 0x263   : > { %v951_v50 = vadd.f32 %v3449_v31, %v928_v63  ;;  %v1010_v31 = vsel %vm394_vm4, %v3451_v30, %v3461_v2 }
 0x264   : > { %v1015_v58 = vadd.f32 %v1010_v31, %v994_v4  ;;  %v1241_v31 = vmul.f32 %v1239_v21, %v3022_v43  ;;  %v1327_v4 = vstv %s2618_s20  ;;  %s2631_s20 = sld [smem:[#allocation2 + $0x43]] }
 0x265   : > { %v3505_v61 = vpop.permute.xlu0 %846  ;;  %v972_v56 = vadd.f32 %v3453_v28, %v951_v50  ;;  %v1033_v28 = vsel %vm435_vm5, %v3455_v7, %v3465_v23 }
 0x266   : > { %4314 = vst [vmem:[#allocation34_spill] sm:$0xff] %v3505_v61  ;;  %v1136_v6 = vpop.permute.xlu1 %1135 }
 0x267   : > { %v1141_v16 = vsel %vm517_vm7, %v1136_v6, %v1138_v57  ;;  %v995_v35 = vadd.f32 %v3457_v33, %v972_v56  ;;  %v1054_v33 = vsel %vm435_vm5, %v3459_v37, %v3479_v36  ;;  %v1216_v6 = vstv %s2613_s28  ;;  %s2610_s28 = sld [smem:[#allocation2 + $0x3]] }
 0x268   : > { %v1146_v27 = vadd.f32 %v1141_v16, %v1125_v15  ;;  %v1038_v15 = vadd.f32 %v1033_v28, %v1015_v58  ;;  %v1219_v56 = vmul.f32 %v1216_v6, %v3085_v19  ;;  %v1218_v46 = vmul.f32 %v1216_v6, %v3089_v22 }
 0x269   : > { %v1016_v1 = vadd.f32 %v3461_v2, %v995_v35  ;;  %v1077_v2 = vsel %vm476_vm6, %v3463_v52, %v1075_v13  ;;  %v1242_v35 = vmul.f32 %v1239_v21, %v3025_v44  ;;  %v1328_v58 = vmul.f32 %v1327_v4, %v3015_v38 }
 0x26a   : > { %1152 = vrot.lane.b32.xlu1 %v1146_v27, %s2884_s23  ;;  %v1059_v16 = vadd.f32 %v1054_v33, %v1038_v15 }
 0x26b   : > { %v1039_v5 = vadd.f32 %v3465_v23, %v1016_v1  ;;  %v1217_v23 = vmul.f32 %v1216_v6, %v3070_v10  ;;  %v1371_v6 = vstv %s2620_s5  ;;  %s2633_s5 = sld [smem:[#allocation2 + $0x4a]] }
 0x26c   : > { %v1082_v62 = vadd.f32 %v1077_v2, %v1059_v16  ;;  %v1306_v2 = vmul.f32 %v1304_v3, %v3089_v22  ;;  %v1372_v16 = vmul.f32 %v1371_v6, %v3015_v38 }
 0x26d   : > { %v1096_v20 = vpop.permute.xlu0 %1095  ;;  %v1060_v41 = vadd.f32 %v3479_v36, %v1039_v5  ;;  %v1348_v5 = vstv %s2619_s4  ;;  %s2632_s4 = sld [smem:[#allocation2 + $0x19]] }
 0x26e   : > { %v1098_v17 = vsel %vm476_vm6, %v3467_v26, %v1096_v20  ;;  %v1240_v26 = vmul.f32 %v1239_v21, %v3015_v38  ;;  %v1373_v21 = vmul.f32 %v1371_v6, %v3022_v43 }
 0x26f   : > { %v1083_v7 = vadd.f32 %v1075_v13, %v1060_v41  ;;  %v1103_v9 = vadd.f32 %v1098_v17, %v1082_v62  ;;  %v1307_v41 = vmul.f32 %v1304_v3, %v3085_v19  ;;  %v1330_v17 = vmul.f32 %v1327_v4, %v3025_v44 }
 0x271   : > { %v1104_v27 = vadd.f32 %v1096_v20, %v1083_v7  ;;  %v1283_v20 = vstv %s2616_s3  ;;  %v1392_v7 = vstv %s2621_s8  ;;  %s2629_s3 = sld [smem:[#allocation2 + $0x3c]] }
 0x272   : > { %1202 = vrot.lane.b32.xlu1 %v1196_v11, %s2878_s7  ;;  %v1284_v42 = vmul.f32 %v1283_v20, %v3015_v38  ;;  %v1305_v11 = vmul.f32 %v1304_v3, %v3070_v10  ;;  %v1286_v33 = vmul.f32 %v1283_v20, %v3025_v44  ;;  %v1285_v15 = vmul.f32 %v1283_v20, %v3022_v43  ;;  %s2634_s8 = sld [smem:[#allocation2 + $0x20]] }
 0x273   : > { %v1393_v62 = vmul.f32 %v1392_v7, %v3070_v10 }
 0x275   : > { %v1119_v30 = vpop.permute.xlu0 %1118 }
 0x276   : > { %v1121_v37 = vsel %vm517_vm7, %v3491_v18, %v1119_v30  ;;  %v1127_v63 = vadd.f32 %v1119_v30, %v1104_v27  ;;  %v1260_v18 = vstv %s2615_s30  ;;  %v1349_v30 = vmul.f32 %v1348_v5, %v3070_v10  ;;  %s2885_s30 = smov 125  }
 0x277   : > { %v1126_v36 = vadd.f32 %v1121_v37, %v1103_v9  ;;  %v1263_v1 = vmul.f32 %v1260_v18, %v3085_v19  ;;  %v1262_v28 = vmul.f32 %v1260_v18, %v3089_v22  ;;  %v1415_v27 = vstv %s2622_s17  ;;  %s2635_s17 = sld [smem:[#allocation2 + $0x51]] }
 0x278   : > { %v1351_v37 = vmul.f32 %v1348_v5, %v3085_v19  ;;  %v1350_v9 = vmul.f32 %v1348_v5, %v3089_v22 }
 0x27a   : > { %1223 = vrot.lane.b32.xlu1 %v1217_v23, %s2878_s7  ;;  %v1329_v23 = vmul.f32 %v1327_v4, %v3022_v43 }
 0x27d   : > { %v1140_v12 = vpop.permute.xlu0 %1139 }
 0x27e   : > { %v1142_v52 = vsel %vm517_vm7, %v1138_v57, %v1140_v12  ;;  %v1148_v13 = vadd.f32 %v1140_v12, %v1127_v63  ;;  %v1261_v57 = vmul.f32 %v1260_v18, %v3070_v10  ;;  %v1416_v63 = vmul.f32 %v1415_v27, %v3015_v38 }
 0x27f   : > { %v1147_v50 = vadd.f32 %v1142_v52, %v1126_v36  ;;  %v1436_v36 = vstv %s2623_s19  ;;  %v1374_v12 = vmul.f32 %v1371_v6, %v3025_v44  ;;  %v1417_v18 = vmul.f32 %v1415_v27, %v3022_v43  ;;  %s2636_s19 = sld [smem:[#allocation2 + $0x27]] }
 0x280   : > { %1156 = vrot.lane.b32.xlu0 %v1148_v13, %s2884_s23  ;;  %v1437_v52 = vmul.f32 %v1436_v36, %v3070_v10  ;;  %v1395_v13 = vmul.f32 %v1392_v7, %v3085_v19  ;;  %v1438_v20 = vmul.f32 %v1436_v36, %v3089_v22 }
 0x281   : > { %1154 = vrot.lane.b32.xlu2 %v1147_v50, %s2884_s23  ;;  %v1394_v50 = vmul.f32 %v1392_v7, %v3089_v22  ;;  %s2611_s23 = sld [smem:[#allocation2 + $0x34]] }
 0x282   : > { %1246 = vrot.lane.b32.xlu1 %v1240_v26, %s2877_s6  ;;  %v1418_v26 = vmul.f32 %v1415_v27, %v3025_v44 }
 0x288   : > { %1206 = vrot.lane.b32.xlu0 %v1198_v32, %s2878_s7 }
 0x289   : > { %1204 = vrot.lane.b32.xlu2 %v1197_v25, %s2878_s7 }
 0x28a   : > { %1267 = vrot.lane.b32.xlu1 %v1261_v57, %s2877_s6  ;;  %v1439_v57 = vmul.f32 %v1436_v36, %v3085_v19 }
 0x290   : > { %1227 = vrot.lane.b32.xlu0 %v1219_v56, %s2878_s7 }
 0x291   : > { %1225 = vrot.lane.b32.xlu2 %v1218_v46, %s2878_s7 }
 0x292   : > { %1290 = vrot.lane.b32.xlu1 %v1284_v42, %s2879_s14 }
 0x298   : > { %1250 = vrot.lane.b32.xlu0 %v1242_v35, %s2877_s6 }
 0x299   : > { %1248 = vrot.lane.b32.xlu2 %v1241_v31, %s2877_s6 }
 0x29a   : > { %1311 = vrot.lane.b32.xlu1 %v1305_v11, %s2879_s14 }
 0x2a0   : > { %1271 = vrot.lane.b32.xlu0 %v1263_v1, %s2877_s6 }
 0x2a1   : > { %1269 = vrot.lane.b32.xlu2 %v1262_v28, %s2877_s6 }
 0x2a2   : > { %1334 = vrot.lane.b32.xlu1 %v1328_v58, %s2880_s18 }
 0x2a8   : > { %1294 = vrot.lane.b32.xlu0 %v1286_v33, %s2879_s14 }
 0x2a9   : > { %1292 = vrot.lane.b32.xlu2 %v1285_v15, %s2879_s14 }
 0x2aa   : > { %1355 = vrot.lane.b32.xlu1 %v1349_v30, %s2880_s18 }
 0x2b0   : > { %1315 = vrot.lane.b32.xlu0 %v1307_v41, %s2879_s14  ;;  %v1186_v41 = vstv %s2611_s23  ;;  %s2637_s23 = sld [smem:[#allocation2 + $0x58]] }
 0x2b1   : > { %1313 = vrot.lane.b32.xlu2 %v1306_v2, %s2879_s14  ;;  %v1188_v2 = vmul.f32 %v1186_v41, %v3089_v22 }
 0x2b2   : > { %1378 = vrot.lane.b32.xlu1 %v1372_v16, %s2881_s22  ;;  %v1179_v16 = vstv %s2610_s28  ;;  %s2638_s28 = sld [smem:[#allocation2 + $0x2e]] }
 0x2b3   : > { %v1181_v7 = vmul.f32 %v1179_v16, %v3022_v43 }
 0x2b8   : > { %1338 = vrot.lane.b32.xlu0 %v1330_v17, %s2880_s18 }
 0x2b9   : > { %1336 = vrot.lane.b32.xlu2 %v1329_v23, %s2880_s18  ;;  %v1191_v23 = vadd.f32 %v1188_v2, %v1181_v7  ;;  %v1187_v2 = vmul.f32 %v1186_v41, %v3070_v10 }
 0x2ba   : > { %1399 = vrot.lane.b32.xlu1 %v1393_v62, %s2881_s22 }
 0x2c0   : > { %1359 = vrot.lane.b32.xlu0 %v1351_v37, %s2880_s18 }
 0x2c1   : > { %1357 = vrot.lane.b32.xlu2 %v1350_v9, %s2880_s18 }
 0x2c2   : > { %1422 = vrot.lane.b32.xlu1 %v1416_v63, %s2882_s24 }
 0x2c8   : > { %1382 = vrot.lane.b32.xlu0 %v1374_v12, %s2881_s22 }
 0x2c9   : > { %1380 = vrot.lane.b32.xlu2 %v1373_v21, %s2881_s22 }
 0x2ca   : > { %1443 = vrot.lane.b32.xlu1 %v1437_v52, %s2882_s24 }
 0x2d0   : > { %1403 = vrot.lane.b32.xlu0 %v1395_v13, %s2881_s22 }
 0x2d1   : > { %1401 = vrot.lane.b32.xlu2 %v1394_v50, %s2881_s22 }
 0x2d8   : > { %1426 = vrot.lane.b32.xlu0 %v1418_v26, %s2882_s24 }
 0x2d9   : > { %1424 = vrot.lane.b32.xlu2 %v1417_v18, %s2882_s24 }
 0x2db   : > { %v3618_v32 = vpop.permute.xlu2 %1154 }
 0x2dc   : > { %4315 = vst [vmem:[#allocation35_spill] sm:$0xff] %v3618_v32  ;;  %v3620_v25 = vpop.permute.xlu1 %1152 }
 0x2dd   : > { %4316 = vst [vmem:[#allocation36_spill] sm:$0xff] %v3620_v25 }
 0x2e0   : > { %1447 = vrot.lane.b32.xlu0 %v1439_v57, %s2882_s24 }
 0x2e1   : > { %1445 = vrot.lane.b32.xlu2 %v1438_v20, %s2882_s24 }
 0x2e3   : > { %v1205_v56 = vpop.permute.xlu2 %1204 }
 0x2e4   : > { %v1203_v46 = vpop.permute.xlu1 %1202 }
 0x2eb   : > { %v1226_v42 = vpop.permute.xlu2 %1225 }
 0x2ec   : > { %v1224_v3 = vpop.permute.xlu1 %1223 }
 0x2f2   : > { %v3626_v35 = vpop.permute.xlu0 %1156 }
 0x2f3   : > { %4317 = vst [vmem:[#allocation37_spill] sm:$0xff] %v3626_v35  ;;  %v1249_v31 = vpop.permute.xlu2 %1248 }
 0x2f4   : > { %v1247_v11 = vpop.permute.xlu1 %1246 }
 0x2fa   : > { %v3628_v4 = vpop.permute.xlu0 %1206 }
 0x2fb   : > { %v1270_v1 = vpop.permute.xlu2 %1269  ;;  %v1209_v17 = vsel %vm312_vm2, %v1205_v56, %v3628_v4 }
 0x2fc   : > { %v1268_v28 = vpop.permute.xlu1 %1267  ;;  %v1214_v9 = vadd.f32 %v1209_v17, %v1191_v23  ;;  %v1180_v23 = vmul.f32 %v1179_v16, %v3015_v38 }
 0x2fe   : > { %v1190_v35 = vadd.f32 %v1187_v2, %v1180_v23 }
 0x302   : > { %v3630_v58 = vpop.permute.xlu0 %1227 }
 0x303   : > { %v1293_v5 = vpop.permute.xlu2 %1292  ;;  %v1230_v27 = vsel %vm312_vm2, %v1226_v42, %v3630_v58 }
 0x304   : > { %v1291_v33 = vpop.permute.xlu1 %1290  ;;  %v1235_v12 = vadd.f32 %v1230_v27, %v1214_v9  ;;  %v1208_v9 = vsel %vm312_vm2, %v1203_v46, %v1205_v56 }
 0x305   : > { %v1296_v24 = vsel %vm394_vm4, %v1291_v33, %v1293_v5 }
 0x30a   : > { %v3632_v15 = vpop.permute.xlu0 %1250 }
 0x30b   : > { %v3634_v30 = vpop.permute.xlu2 %1313  ;;  %v1253_v36 = vsel %vm353_vm3, %v1249_v31, %v3632_v15 }
 0x30c   : > { %v1312_v6 = vpop.permute.xlu1 %1311  ;;  %v1258_v52 = vadd.f32 %v1253_v36, %v1235_v12  ;;  %v1229_v36 = vsel %vm312_vm2, %v1224_v3, %v1226_v42  ;;  %v1213_v12 = vadd.f32 %v1208_v9, %v1190_v35 }
 0x30d   : > { %v1317_v14 = vsel %vm394_vm4, %v1312_v6, %v3634_v30 }
 0x312   : > { %v3640_v62 = vpop.permute.xlu0 %1271 }
 0x313   : > { %v3644_v37 = vpop.permute.xlu2 %1336  ;;  %v1274_v21 = vsel %vm353_vm3, %v1270_v1, %v3640_v62 }
 0x314   : > { %v1335_v63 = vpop.permute.xlu1 %1334  ;;  %v1279_v13 = vadd.f32 %v1274_v21, %v1258_v52  ;;  %v1252_v21 = vsel %vm353_vm3, %v1247_v11, %v1249_v31  ;;  %v1234_v52 = vadd.f32 %v1229_v36, %v1213_v12 }
 0x315   : > { %v1340_v46 = vsel %vm435_vm5, %v1335_v63, %v3644_v37 }
 0x316   : > { %v1257_v25 = vadd.f32 %v1252_v21, %v1234_v52  ;;  %v1505_v52 = vstv %s2628_s29  ;;  %s2639_s29 = sld [smem:[#allocation2 + $0x5f]] }
 0x31a   : > { %v1295_v50 = vpop.permute.xlu0 %1294 }
 0x31b   : > { %v1297_v26 = vsel %vm394_vm4, %v1293_v5, %v1295_v50  ;;  %v3651_v18 = vpop.permute.xlu2 %1357 }
 0x31c   : > { %v1302_v57 = vadd.f32 %v1297_v26, %v1279_v13  ;;  %v1356_v20 = vpop.permute.xlu1 %1355  ;;  %v1273_v13 = vsel %vm353_vm3, %v1268_v28, %v1270_v1 }
 0x31d   : > { %v1278_v45 = vadd.f32 %v1273_v13, %v1257_v25  ;;  %v1361_v35 = vsel %vm435_vm5, %v1356_v20, %v3651_v18  ;;  %v1189_v25 = vmul.f32 %v1186_v41, %v3085_v19 }
 0x31f   : > { %v1301_v56 = vadd.f32 %v1296_v24, %v1278_v45  ;;  %v1182_v45 = vmul.f32 %v1179_v16, %v3025_v44 }
 0x321   : > { %v1322_v42 = vadd.f32 %v1317_v14, %v1301_v56  ;;  %v1192_v2 = vadd.f32 %v1189_v25, %v1182_v45 }
 0x322   : > { %v1316_v7 = vpop.permute.xlu0 %1315 }
 0x323   : > { %v3654_v17 = vpop.permute.xlu2 %1380  ;;  %v1345_v11 = vadd.f32 %v1340_v46, %v1322_v42  ;;  %v1215_v36 = vadd.f32 %v3628_v4, %v1192_v2  ;;  %v1318_v56 = vsel %vm394_vm4, %v3634_v30, %v1316_v7  ;;  %v1506_v4 = vmul.f32 %v1505_v52, %v3015_v38 }
 0x324   : > { %v1379_v27 = vpop.permute.xlu1 %1378  ;;  %v1323_v42 = vadd.f32 %v1318_v56, %v1302_v57  ;;  %v1526_v30 = vstv %s2629_s3  ;;  %v1507_v2 = vmul.f32 %v1505_v52, %v3022_v43  ;;  %s2626_s3 = sld [smem:[#allocation2 + $0x4]] }
 0x325   : > { %v1384_v28 = vsel %vm476_vm6, %v1379_v27, %v3654_v17  ;;  %v1366_v5 = vadd.f32 %v1361_v35, %v1345_v11  ;;  %v1236_v41 = vadd.f32 %v3630_v58, %v1215_v36  ;;  %v1527_v57 = vmul.f32 %v1526_v30, %v3070_v10 }
 0x326   : > { %v1528_v36 = vmul.f32 %v1526_v30, %v3089_v22 }
 0x327   : > { %v1389_v24 = vadd.f32 %v1384_v28, %v1366_v5 }
 0x32a   : > { %v1339_v61 = vpop.permute.xlu0 %1338 }
 0x32b   : > { %v1402_v26 = vpop.permute.xlu2 %1401  ;;  %v1341_v58 = vsel %vm435_vm5, %v3644_v37, %v1339_v61 }
 0x32c   : > { %v1400_v32 = vpop.permute.xlu1 %1399 }
 0x32d   : > { %v1405_v33 = vsel %vm476_vm6, %v1400_v32, %v1402_v26  ;;  %v1259_v32 = vadd.f32 %v3632_v15, %v1236_v41  ;;  %v1614_v41 = vstv %s2633_s5  ;;  %s2646_s5 = sld [smem:[#allocation2 + $0x13]] }
 0x32e   : > { %v1410_v6 = vadd.f32 %v1405_v33, %v1389_v24 }
 0x32f   : > { %v1280_v21 = vadd.f32 %v3640_v62, %v1259_v32  ;;  %v1346_v62 = vadd.f32 %v1341_v58, %v1323_v42 }
 0x331   : > { %v1303_v13 = vadd.f32 %v1295_v50, %v1280_v21 }
 0x332   : > { %v1360_v3 = vpop.permute.xlu0 %1359 }
 0x333   : > { %v1425_v31 = vpop.permute.xlu2 %1424  ;;  %v1324_v46 = vadd.f32 %v1316_v7, %v1303_v13  ;;  %v1362_v15 = vsel %vm435_vm5, %v3651_v18, %v1360_v3 }
 0x334   : > { %v1423_v1 = vpop.permute.xlu1 %1422  ;;  %v1367_v28 = vadd.f32 %v1362_v15, %v1346_v62  ;;  %v1681_v15 = vstv %s2636_s19  ;;  %v1616_v62 = vmul.f32 %v1614_v41, %v3089_v22  ;;  %s2649_s19 = sld [smem:[#allocation2 + $0x4b]] }
 0x335   : > { %v1428_v14 = vsel %vm517_vm7, %v1423_v1, %v1425_v31  ;;  %v1347_v35 = vadd.f32 %v1339_v61, %v1324_v46  ;;  %v1658_v46 = vstv %s2635_s17  ;;  %s2648_s17 = sld [smem:[#allocation2 + $0x1a]] }
 0x336   : > { %v1433_v23 = vadd.f32 %v1428_v14, %v1410_v6  ;;  %v1549_v14 = vstv %s2630_s15  ;;  %v1659_v42 = vmul.f32 %v1658_v46, %v3070_v10  ;;  %s2644_s15 = sld [smem:[#allocation2 + $0xc]] }
 0x337   : > { %v1368_v1 = vadd.f32 %v1360_v3, %v1347_v35  ;;  %v1551_v32 = vmul.f32 %v1549_v14, %v3022_v43  ;;  %v1617_v35 = vmul.f32 %v1614_v41, %v3085_v19 }
 0x33a   : > { %v1383_v63 = vpop.permute.xlu0 %1382 }
 0x33b   : > { %v1446_v20 = vpop.permute.xlu2 %1445  ;;  %v1385_v50 = vsel %vm476_vm6, %v3654_v17, %v1383_v63  ;;  %v1391_v7 = vadd.f32 %v1383_v63, %v1368_v1  ;;  %v1570_v63 = vstv %s2631_s20  ;;  %s2886_s20 = smov 124  }
 0x33c   : > { %v1444_v9 = vpop.permute.xlu1 %1443  ;;  %v1390_v37 = vadd.f32 %v1385_v50, %v1367_v28  ;;  %v1573_v21 = vmul.f32 %v1570_v63, %v3085_v19  ;;  %v1572_v13 = vmul.f32 %v1570_v63, %v3089_v22  ;;  %v1702_v50 = vstv %s2637_s23  ;;  %s2650_s23 = sld [smem:[#allocation2 + $0x21]] }
 0x33d   : > { %v1449_v27 = vsel %vm517_vm7, %v1444_v9, %v1446_v20  ;;  %v1593_v9 = vstv %s2632_s4  ;;  %v1703_v28 = vmul.f32 %v1702_v50, %v3070_v10  ;;  %s2645_s4 = sld [smem:[#allocation2 + $0x3d]] }
 0x33e   : > { %v1454_v12 = vadd.f32 %v1449_v27, %v1433_v23  ;;  %v1529_v23 = vmul.f32 %v1526_v30, %v3085_v19  ;;  %v1594_v27 = vmul.f32 %v1593_v9, %v3015_v38  ;;  %v1595_v58 = vmul.f32 %v1593_v9, %v3022_v43 }
 0x340   : > { %1460 = vrot.lane.b32.xlu1 %v1454_v12, %s2885_s30  ;;  %v1552_v12 = vmul.f32 %v1549_v14, %v3025_v44 }
 0x342   : > { %v1404_v16 = vpop.permute.xlu0 %1403 }
 0x343   : > { %v1406_v5 = vsel %vm476_vm6, %v1402_v26, %v1404_v16  ;;  %v1412_v25 = vadd.f32 %v1404_v16, %v1391_v7  ;;  %v1550_v26 = vmul.f32 %v1549_v14, %v3015_v38  ;;  %v1615_v16 = vmul.f32 %v1614_v41, %v3070_v10 }
 0x344   : > { %v1411_v33 = vadd.f32 %v1406_v5, %v1390_v37  ;;  %v1661_v7 = vmul.f32 %v1658_v46, %v3085_v19  ;;  %v1725_v5 = vstv %s2638_s28  ;;  %v1660_v37 = vmul.f32 %v1658_v46, %v3089_v22  ;;  %s2651_s28 = sld [smem:[#allocation2 + $0x52]] }
 0x348   : > { %1512 = vrot.lane.b32.xlu1 %v1506_v4, %s2878_s7  ;;  %v1596_v4 = vmul.f32 %v1593_v9, %v3025_v44 }
 0x34a   : > { %v1427_v11 = vpop.permute.xlu0 %1426 }
 0x34b   : > { %v1429_v61 = vsel %vm517_vm7, %v1425_v31, %v1427_v11  ;;  %v1435_v18 = vadd.f32 %v1427_v11, %v1412_v25  ;;  %v1508_v31 = vmul.f32 %v1505_v52, %v3025_v44  ;;  %v1637_v52 = vstv %s2634_s8  ;;  %s2647_s8 = sld [smem:[#allocation2 + $0x44]] }
 0x34c   : > { %v1434_v3 = vadd.f32 %v1429_v61, %v1411_v33  ;;  %v1638_v56 = vmul.f32 %v1637_v52, %v3015_v38  ;;  %v1682_v11 = vmul.f32 %v1681_v15, %v3015_v38  ;;  %v1640_v1 = vmul.f32 %v1637_v52, %v3025_v44 }
 0x34d   : > { %v1639_v30 = vmul.f32 %v1637_v52, %v3022_v43  ;;  %v1684_v25 = vmul.f32 %v1681_v15, %v3025_v44  ;;  %v1746_v61 = vstv %s2639_s29  ;;  %v1683_v33 = vmul.f32 %v1681_v15, %v3022_v43  ;;  %s3856_s29 = sld [smem:[#allocation2 + $0x31]] }
 0x350   : > { %1533 = vrot.lane.b32.xlu1 %v1527_v57, %s2878_s7  ;;  %v1726_v57 = vmul.f32 %v1725_v5, %v3015_v38 }
 0x352   : > { %v1448_v24 = vpop.permute.xlu0 %1447 }
 0x353   : > { %v1450_v17 = vsel %vm517_vm7, %v1446_v20, %v1448_v24  ;;  %v1456_v45 = vadd.f32 %v1448_v24, %v1435_v18  ;;  %v1571_v20 = vmul.f32 %v1570_v63, %v3070_v10  ;;  %v1747_v18 = vmul.f32 %v1746_v61, %v3070_v10 }
 0x354   : > { %v1455_v6 = vadd.f32 %v1450_v17, %v1434_v3  ;;  %v1705_v3 = vmul.f32 %v1702_v50, %v3085_v19  ;;  %v1704_v24 = vmul.f32 %v1702_v50, %v3089_v22  ;;  %v1728_v17 = vmul.f32 %v1725_v5, %v3025_v44 }
 0x355   : > { %1464 = vrot.lane.b32.xlu0 %v1456_v45, %s2885_s30  ;;  %v1727_v45 = vmul.f32 %v1725_v5, %v3022_v43  ;;  %v1748_v63 = vmul.f32 %v1746_v61, %v3089_v22 }
 0x356   : > { %1462 = vrot.lane.b32.xlu2 %v1455_v6, %s2885_s30  ;;  %s2627_s30 = sld [smem:[#allocation2 + $0x35]] }
 0x358   : > { %1556 = vrot.lane.b32.xlu1 %v1550_v26, %s2877_s6 }
 0x35d   : > { %1516 = vrot.lane.b32.xlu0 %v1508_v31, %s2878_s7  ;;  %v1749_v31 = vmul.f32 %v1746_v61, %v3085_v19 }
 0x35e   : > { %1514 = vrot.lane.b32.xlu2 %v1507_v2, %s2878_s7 }
 0x360   : > { %1577 = vrot.lane.b32.xlu1 %v1571_v20, %s2877_s6 }
 0x365   : > { %1537 = vrot.lane.b32.xlu0 %v1529_v23, %s2878_s7 }
 0x366   : > { %1535 = vrot.lane.b32.xlu2 %v1528_v36, %s2878_s7 }
 0x368   : > { %1600 = vrot.lane.b32.xlu1 %v1594_v27, %s2879_s14 }
 0x36d   : > { %1560 = vrot.lane.b32.xlu0 %v1552_v12, %s2877_s6 }
 0x36e   : > { %1558 = vrot.lane.b32.xlu2 %v1551_v32, %s2877_s6 }
 0x370   : > { %1621 = vrot.lane.b32.xlu1 %v1615_v16, %s2879_s14 }
 0x375   : > { %1581 = vrot.lane.b32.xlu0 %v1573_v21, %s2877_s6  ;;  %v1496_v21 = vstv %s2627_s30  ;;  %s3858_s30 = sld [smem:[#allocation2]] }
 0x376   : > { %1579 = vrot.lane.b32.xlu2 %v1572_v13, %s2877_s6 }
 0x378   : > { %1644 = vrot.lane.b32.xlu1 %v1638_v56, %s2880_s18  ;;  %v1498_v56 = vmul.f32 %v1496_v21, %v3089_v22 }
 0x37d   : > { %1604 = vrot.lane.b32.xlu0 %v1596_v4, %s2879_s14  ;;  %v1489_v4 = vstv %s2626_s3  ;;  %s2652_s3 = sld [smem:[#allocation2 + $0x28]] }
 0x37e   : > { %1602 = vrot.lane.b32.xlu2 %v1595_v58, %s2879_s14  ;;  %v1491_v58 = vmul.f32 %v1489_v4, %v3022_v43 }
 0x380   : > { %1665 = vrot.lane.b32.xlu1 %v1659_v42, %s2880_s18  ;;  %v1501_v42 = vadd.f32 %v1498_v56, %v1491_v58 }
 0x385   : > { %1625 = vrot.lane.b32.xlu0 %v1617_v35, %s2879_s14 }
 0x386   : > { %1623 = vrot.lane.b32.xlu2 %v1616_v62, %s2879_s14 }
 0x388   : > { %1688 = vrot.lane.b32.xlu1 %v1682_v11, %s2881_s22 }
 0x38d   : > { %1648 = vrot.lane.b32.xlu0 %v1640_v1, %s2880_s18 }
 0x38e   : > { %1646 = vrot.lane.b32.xlu2 %v1639_v30, %s2880_s18 }
 0x390   : > { %1709 = vrot.lane.b32.xlu1 %v1703_v28, %s2881_s22 }
 0x395   : > { %1669 = vrot.lane.b32.xlu0 %v1661_v7, %s2880_s18 }
 0x396   : > { %1667 = vrot.lane.b32.xlu2 %v1660_v37, %s2880_s18 }
 0x398   : > { %1732 = vrot.lane.b32.xlu1 %v1726_v57, %s2882_s24 }
 0x39d   : > { %1692 = vrot.lane.b32.xlu0 %v1684_v25, %s2881_s22 }
 0x39e   : > { %1690 = vrot.lane.b32.xlu2 %v1683_v33, %s2881_s22 }
 0x3a0   : > { %1753 = vrot.lane.b32.xlu1 %v1747_v18, %s2882_s24 }
 0x3a5   : > { %1713 = vrot.lane.b32.xlu0 %v1705_v3, %s2881_s22 }
 0x3a6   : > { %1711 = vrot.lane.b32.xlu2 %v1704_v24, %s2881_s22 }
 0x3ad   : > { %1736 = vrot.lane.b32.xlu0 %v1728_v17, %s2882_s24 }
 0x3ae   : > { %1734 = vrot.lane.b32.xlu2 %v1727_v45, %s2882_s24 }
 0x3b0   : > { %v1463_v14 = vpop.permute.xlu2 %1462 }
 0x3b2   : > { %v1461_v6 = vpop.permute.xlu1 %1460 }
 0x3b3   : > { %v3761_v26 = vsel %vm1466_vm8, %v1461_v6, %v1463_v14 }
 0x3b5   : > { %1757 = vrot.lane.b32.xlu0 %v1749_v31, %s2882_s24  ;;  %v1490_v31 = vmul.f32 %v1489_v4, %v3015_v38 }
 0x3b6   : > { %1755 = vrot.lane.b32.xlu2 %v1748_v63, %s2882_s24 }
 0x3b8   : > { %v1515_v2 = vpop.permute.xlu2 %1514 }
 0x3ba   : > { %v1513_v20 = vpop.permute.xlu1 %1512 }
 0x3bb   : > { %v1518_v23 = vsel %vm312_vm2, %v1513_v20, %v1515_v2 }
 0x3c0   : > { %v1536_v9 = vpop.permute.xlu2 %1535 }
 0x3c2   : > { %v1534_v36 = vpop.permute.xlu1 %1533 }
 0x3c3   : > { %v1539_v20 = vsel %vm312_vm2, %v1534_v36, %v1536_v9 }
 0x3c7   : > { %v1465_v27 = vpop.permute.xlu0 %1464 }
 0x3c8   : > { %v3768_v12 = vsel %vm1466_vm8, %v1463_v14, %v1465_v27  ;;  %v1559_v41 = vpop.permute.xlu2 %1558  ;;  %v1497_v14 = vmul.f32 %v1496_v21, %v3070_v10 }
 0x3ca   : > { %v1557_v32 = vpop.permute.xlu1 %1556 }
 0x3cf   : > { %v3770_v16 = vpop.permute.xlu0 %1516 }
 0x3d0   : > { %v1519_v52 = vsel %vm312_vm2, %v1515_v2, %v3770_v16  ;;  %v1580_v13 = vpop.permute.xlu2 %1579  ;;  %v1500_v2 = vadd.f32 %v1497_v14, %v1490_v31 }
 0x3d1   : > { %v1524_v35 = vadd.f32 %v1519_v52, %v1501_v42  ;;  %v1562_v52 = vsel %vm353_vm3, %v1557_v32, %v1559_v41 }
 0x3d2   : > { %v1578_v46 = vpop.permute.xlu1 %1577  ;;  %v1523_v27 = vadd.f32 %v1518_v23, %v1500_v2 }
 0x3d4   : > { %v1544_v58 = vadd.f32 %v1539_v20, %v1523_v27  ;;  %v1492_v20 = vmul.f32 %v1489_v4, %v3025_v44 }
 0x3d7   : > { %v1538_v15 = vpop.permute.xlu0 %1537 }
 0x3d8   : > { %v1540_v62 = vsel %vm312_vm2, %v1536_v9, %v1538_v15  ;;  %v3777_v11 = vpop.permute.xlu2 %1602 }
 0x3d9   : > { %v1545_v1 = vadd.f32 %v1540_v62, %v1524_v35  ;;  %v1583_v35 = vsel %vm353_vm3, %v1578_v46, %v1580_v13  ;;  %v1567_v62 = vadd.f32 %v1562_v52, %v1544_v58 }
 0x3da   : > { %v1601_v50 = vpop.permute.xlu1 %1600 }
 0x3df   : > { %v1561_v30 = vpop.permute.xlu0 %1560 }
 0x3e0   : > { %v1563_v28 = vsel %vm353_vm3, %v1559_v41, %v1561_v30  ;;  %v3780_v7 = vpop.permute.xlu2 %1623 }
 0x3e1   : > { %v1568_v5 = vadd.f32 %v1563_v28, %v1545_v1  ;;  %v1606_v28 = vsel %vm394_vm4, %v1601_v50, %v3777_v11  ;;  %v1499_v50 = vmul.f32 %v1496_v21, %v3085_v19 }
 0x3e2   : > { %v1622_v37 = vpop.permute.xlu1 %1621 }
 0x3e3   : > { %v1502_v58 = vadd.f32 %v1499_v50, %v1492_v20 }
 0x3e7   : > { %v1582_v57 = vpop.permute.xlu0 %1581 }
 0x3e8   : > { %v1584_v25 = vsel %vm353_vm3, %v1580_v13, %v1582_v57  ;;  %v3783_v61 = vpop.permute.xlu2 %1646 }
 0x3e9   : > { %v1589_v33 = vadd.f32 %v1584_v25, %v1568_v5  ;;  %v1588_v5 = vadd.f32 %v1583_v35, %v1567_v62  ;;  %v1627_v25 = vsel %vm394_vm4, %v1622_v37, %v3780_v7 }
 0x3ea   : > { %v1645_v18 = vpop.permute.xlu1 %1644 }
 0x3eb   : > { %v1611_v14 = vadd.f32 %v1606_v28, %v1588_v5  ;;  %v1650_v23 = vsel %vm435_vm5, %v1645_v18, %v3783_v61 }
 0x3ed   : > { %v1632_v36 = vadd.f32 %v1627_v25, %v1611_v14 }
 0x3ef   : > { %v1605_v3 = vpop.permute.xlu0 %1604  ;;  %v1655_v13 = vadd.f32 %v1650_v23, %v1632_v36  ;;  %v1815_v36 = vstv %s2644_s15  ;;  %s2653_s15 = sld [smem:[#allocation2 + $0x59]] }
 0x3f0   : > { %v3785_v24 = vpop.permute.xlu2 %1667  ;;  %v1607_v23 = vsel %vm394_vm4, %v3777_v11, %v1605_v3 }
 0x3f2   : > { %v1666_v17 = vpop.permute.xlu1 %1665 }
 0x3f3   : > { %v1671_v32 = vsel %vm435_vm5, %v1666_v17, %v3785_v24  ;;  %v1525_v17 = vadd.f32 %v3770_v16, %v1502_v58 }
 0x3f4   : > { %v1676_v2 = vadd.f32 %v1671_v32, %v1655_v13  ;;  %v1612_v13 = vadd.f32 %v1607_v23, %v1589_v33 }
 0x3f5   : > { %v1546_v21 = vadd.f32 %v1538_v15, %v1525_v17 }
 0x3f7   : > { %v1626_v45 = vpop.permute.xlu0 %1625  ;;  %v1569_v14 = vadd.f32 %v1561_v30, %v1546_v21  ;;  %v1816_v30 = vmul.f32 %v1815_v36, %v3015_v38 }
 0x3f8   : > { %v3788_v6 = vpop.permute.xlu2 %1690  ;;  %v1628_v16 = vsel %vm394_vm4, %v3780_v7, %v1626_v45 }
 0x3fa   : > { %v1689_v63 = vpop.permute.xlu1 %1688 }
 0x3fb   : > { %v1694_v31 = vsel %vm476_vm6, %v1689_v63, %v3788_v6 }
 0x3fc   : > { %v1699_v27 = vadd.f32 %v1694_v31, %v1676_v2  ;;  %v1633_v31 = vadd.f32 %v1628_v16, %v1612_v13 }
 0x3ff   : > { %v1649_v56 = vpop.permute.xlu0 %1648 }
 0x400   : > { %v1712_v42 = vpop.permute.xlu2 %1711  ;;  %v1651_v15 = vsel %vm435_vm5, %v3783_v61, %v1649_v56 }
 0x401   : > { %v1656_v11 = vadd.f32 %v1651_v15, %v1633_v31 }
 0x402   : > { %v1710_v1 = vpop.permute.xlu1 %1709 }
 0x403   : > { %v1715_v37 = vsel %vm476_vm6, %v1710_v1, %v1712_v42  ;;  %v1590_v1 = vadd.f32 %v1582_v57, %v1569_v14  ;;  %v1903_v14 = vstv %s2648_s17  ;;  %s2663_s17 = sld [smem:[#allocation2 + $0x45]] }
 0x404   : > { %v1720_v35 = vadd.f32 %v1715_v37, %v1699_v27  ;;  %v1905_v31 = vmul.f32 %v1903_v14, %v3022_v43 }
 0x405   : > { %v1613_v32 = vadd.f32 %v1605_v3, %v1590_v1 }
 0x407   : > { %v1670_v9 = vpop.permute.xlu0 %1669 }
 0x408   : > { %v1735_v41 = vpop.permute.xlu2 %1734  ;;  %v1672_v57 = vsel %vm435_vm5, %v3785_v24, %v1670_v9 }
 0x409   : > { %v1677_v33 = vadd.f32 %v1672_v57, %v1656_v11  ;;  %v292_v11 = vstv %s3856_s29  ;;  %s2665_s29 = sld [smem:[#allocation2 + $0x4c]] }
 0x40a   : > { %v1733_v46 = vpop.permute.xlu1 %1732 }
 0x40b   : > { %v1738_v18 = vsel %vm517_vm7, %v1733_v46, %v1735_v41  ;;  %v1634_v46 = vadd.f32 %v1626_v45, %v1613_v32  ;;  %v1836_v45 = vstv %s2645_s4  ;;  %s2660_s4 = sld [smem:[#allocation2 + $0xd]] }
 0x40c   : > { %v1743_v62 = vadd.f32 %v1738_v18, %v1720_v35  ;;  %v1837_v24 = vmul.f32 %v1836_v45, %v3070_v10  ;;  %v1839_v21 = vmul.f32 %v1836_v45, %v3085_v19 }
 0x40d   : > { %v1657_v50 = vadd.f32 %v1649_v56, %v1634_v46  ;;  %v1947_v46 = vstv %s2650_s23  ;;  %s2642_s23 = sld [smem:[#allocation2 + $0x5]] }
 0x40e   : > { %v1948_v15 = vmul.f32 %v1947_v46, %v3015_v38 }
 0x40f   : > { %v1693_v52 = vpop.permute.xlu0 %1692  ;;  %v1678_v3 = vadd.f32 %v1670_v9, %v1657_v50  ;;  %v1968_v50 = vstv %s2651_s28  ;;  %s2664_s28 = sld [smem:[#allocation2 + $0x1b]] }
 0x410   : > { %v1756_v28 = vpop.permute.xlu2 %1755  ;;  %v1695_v7 = vsel %vm476_vm6, %v3788_v6, %v1693_v52  ;;  %v1969_v57 = vmul.f32 %v1968_v50, %v3070_v10 }
 0x411   : > { %v1701_v37 = vadd.f32 %v1693_v52, %v1678_v3  ;;  %v1700_v20 = vadd.f32 %v1695_v7, %v1677_v33  ;;  %v1817_v52 = vmul.f32 %v1815_v36, %v3022_v43  ;;  %v287_v3 = vstv %s3858_s30  ;;  %s2667_s30 = sld [smem:[#allocation2 + $0x53]] }
 0x412   : > { %v1754_v5 = vpop.permute.xlu1 %1753  ;;  %v1991_v33 = vstv %s2652_s3  ;;  %s2669_s3 = sld [smem:[#allocation2 + $0x5a]] }
 0x413   : > { %v1759_v63 = vsel %vm517_vm7, %v1754_v5, %v1756_v28  ;;  %v1859_v5 = vstv %s2646_s5  ;;  %s2661_s5 = sld [smem:[#allocation2 + $0x3e]] }
 0x414   : > { %v1764_v25 = vadd.f32 %v1759_v63, %v1743_v62  ;;  %v1880_v63 = vstv %s2647_s8  ;;  %v1862_v1 = vmul.f32 %v1859_v5, %v3025_v44  ;;  %v1861_v23 = vmul.f32 %v1859_v5, %v3022_v43  ;;  %s2662_s8 = sld [smem:[#allocation2 + $0x14]] }
 0x415   : > { %v1883_v16 = vmul.f32 %v1880_v63, %v3085_v19  ;;  %v1882_v13 = vmul.f32 %v1880_v63, %v3089_v22 }
 0x416   : > { %1770 = vrot.lane.b32.xlu1 %v1764_v25, %s2886_s20  ;;  %v1838_v25 = vmul.f32 %v1836_v45, %v3089_v22  ;;  %v293_v45 = vmul.f32 %v292_v11, %v3070_v10 }
 0x417   : > { %v1714_v4 = vpop.permute.xlu0 %1713 }
 0x418   : > { %v1716_v61 = vsel %vm476_vm6, %v1712_v42, %v1714_v4  ;;  %v1722_v27 = vadd.f32 %v1714_v4, %v1701_v37  ;;  %v1860_v42 = vmul.f32 %v1859_v5, %v3015_v38  ;;  %v1904_v4 = vmul.f32 %v1903_v14, %v3015_v38 }
 0x419   : > { %v1721_v18 = vadd.f32 %v1716_v61, %v1700_v20  ;;  %v288_v37 = vmul.f32 %v287_v3, %v3015_v38  ;;  %v1992_v61 = vmul.f32 %v1991_v33, %v3015_v38  ;;  %v313_v20 = vsel %vm312_vm2, %v3102_v29, %v3110_v34 }
 0x41a   : > { %v1971_v5 = vmul.f32 %v1968_v50, %v3085_v19 }
 0x41e   : > { %1822 = vrot.lane.b32.xlu1 %v1816_v30, %s2878_s7  ;;  %v1906_v30 = vmul.f32 %v1903_v14, %v3025_v44  ;;  %v289_v14 = vmul.f32 %v287_v3, %v3022_v43  ;;  %v4323_v3 = vld [vmem:[#allocation24_spill] sm:$0xff] }
 0x41f   : > { %v1737_v2 = vpop.permute.xlu0 %1736 }
 0x420   : > { %v1739_v56 = vsel %vm517_vm7, %v1735_v41, %v1737_v2  ;;  %v1745_v58 = vadd.f32 %v1737_v2, %v1722_v27  ;;  %v1818_v41 = vmul.f32 %v1815_v36, %v3025_v44  ;;  %v1924_v36 = vstv %s2649_s19  ;;  %s2643_s19 = sld [smem:[#allocation2 + $0x36]] }
 0x421   : > { %v1744_v9 = vadd.f32 %v1739_v56, %v1721_v18  ;;  %v1925_v32 = vmul.f32 %v1924_v36, %v3070_v10  ;;  %v1927_v2 = vmul.f32 %v1924_v36, %v3085_v19  ;;  %v1926_v7 = vmul.f32 %v1924_v36, %v3089_v22 }
 0x422   : > { %v295_v27 = vadd.f32 %v293_v45, %v288_v37  ;;  %v332_v56 = vsel %vm312_vm2, %v3220_v49, %v3212_v39  ;;  %v1950_v18 = vmul.f32 %v1947_v46, %v3025_v44  ;;  %v373_v49 = vsel %vm353_vm3, %v3232_v59, %v3224_v51 }
 0x423   : > { %v414_v59 = vsel %vm394_vm4, %v3244_v8, %v3236_v0  ;;  %v314_v8 = vsel %vm312_vm2, %v3110_v34, %v3138_v54  ;;  %v3930_v54 = vstv %s2660_s4  ;;  %s2889_s4 = smov 122  }
 0x426   : > { %1843 = vrot.lane.b32.xlu1 %v1837_v24, %s2878_s7  ;;  %v317_v24 = vadd.f32 %v313_v20, %v295_v27  ;;  %v4325_v20 = vld [vmem:[#allocation11_spill] sm:$0xff] }
 0x427   : > { %v1758_v35 = vpop.permute.xlu0 %1757  ;;  %v355_v27 = vsel %vm353_vm3, %v3118_v40, %v4325_v20 }
 0x428   : > { %v1760_v6 = vsel %vm517_vm7, %v1756_v28, %v1758_v35  ;;  %v1766_v17 = vadd.f32 %v1758_v35, %v1745_v58  ;;  %v1881_v28 = vmul.f32 %v1880_v63, %v3070_v10  ;;  %v1949_v58 = vmul.f32 %v1947_v46, %v3022_v43 }
 0x429   : > { %v1765_v62 = vadd.f32 %v1760_v6, %v1744_v9  ;;  %v2012_v9 = vstv %s2653_s15  ;;  %v336_v35 = vadd.f32 %v332_v56, %v317_v24  ;;  %v354_v6 = vsel %vm353_vm3, %v3126_v47, %v3118_v40  ;;  %v4326_v56 = vld [vmem:[#allocation23_spill] sm:$0xff]  ;;  %s2670_s15 = sld [smem:[#allocation2 + $0x30]] }
 0x42a   : > { %1774 = vrot.lane.b32.xlu0 %v1766_v17, %s2886_s20  ;;  %v2013_v29 = vmul.f32 %v2012_v9, %v3070_v10  ;;  %v395_v47 = vsel %vm394_vm4, %v3136_v53, %v3128_v48  ;;  %v1994_v53 = vmul.f32 %v1991_v33, %v3025_v44  ;;  %v374_v24 = vsel %vm353_vm3, %v3224_v51, %v4326_v56 }
 0x42b   : > { %1772 = vrot.lane.b32.xlu2 %v1765_v62, %s2886_s20  ;;  %s2654_s20 = sld [smem:[#allocation2 + $0x2f]]  ;;  %v358_v17 = vadd.f32 %v354_v6, %v336_v35 }
 0x42d   : > { %v377_v62 = vadd.f32 %v373_v49, %v358_v17  ;;  %v3957_v49 = vstv %s2661_s5  ;;  %v4328_v17 = vld [vmem:[#allocation16_spill] sm:$0xff]  ;;  %s2562_s5 = sshll.u32 %s3002_s27, 1 }
 0x42e   : > { %1866 = vrot.lane.b32.xlu1 %v1860_v42, %s2877_s6  ;;  %v1970_v42 = vmul.f32 %v1968_v50, %v3089_v22  ;;  %v2149_v51 = vmul.f32 %v3957_v49, %v3085_v19 }
 0x432   : > { %1826 = vrot.lane.b32.xlu0 %v1818_v41, %s2878_s7  ;;  %v3896_v41 = vstv %s2654_s20  ;;  %s2659_s20 = sld [smem:[#allocation2 + $0x37]] }
 0x433   : > { %1824 = vrot.lane.b32.xlu2 %v1817_v52, %s2878_s7  ;;  %v399_v52 = vadd.f32 %v395_v47, %v377_v62  ;;  %v2036_v63 = vmul.f32 %v3896_v41, %v3015_v38 }
 0x436   : > { %1887 = vrot.lane.b32.xlu1 %v1881_v28, %s2877_s6  ;;  %v294_v28 = vmul.f32 %v292_v11, %v3089_v22  ;;  %v4321_v11 = vld [vmem:[#allocation12_spill] sm:$0xff] }
 0x43a   : > { %1847 = vrot.lane.b32.xlu0 %v1839_v21, %s2878_s7  ;;  %v418_v21 = vadd.f32 %v414_v59, %v399_v52  ;;  %v4331_v52 = vld [vmem:[#allocation14_spill] sm:$0xff] }
 0x43b   : > { %1845 = vrot.lane.b32.xlu2 %v1838_v25, %s2878_s7  ;;  %v246_v25 = vlaneseq }
 0x43d   : > { %v3923_v46 = vand.u32 127, %v246_v25 }
 0x43e   : > { %1910 = vrot.lane.b32.xlu1 %v1904_v4, %s2879_s14  ;;  %v436_v4 = vsel %vm435_vm5, %v3148_v60, %v3140_v55 }
 0x442   : > { %1870 = vrot.lane.b32.xlu0 %v1862_v1, %s2877_s6  ;;  %v4318_v1 = vld [vmem:[#allocation21_spill] sm:$0xff] }
 0x443   : > { %1868 = vrot.lane.b32.xlu2 %v1861_v23, %s2877_s6  ;;  %v4319_v23 = vld [vmem:[#allocation22_spill] sm:$0xff] }
 0x444   : > { %v455_v36 = vsel %vm435_vm5, %v4319_v23, %v4318_v1 }
 0x446   : > { %1931 = vrot.lane.b32.xlu1 %v1925_v32, %s2879_s14  ;;  %v1993_v32 = vmul.f32 %v1991_v33, %v3022_v43 }
 0x44a   : > { %1891 = vrot.lane.b32.xlu0 %v1883_v16, %s2877_s6  ;;  %v296_v16 = vadd.f32 %v294_v28, %v289_v14  ;;  %v4332_v28 = vld [vmem:[#allocation26_spill] sm:$0xff]  ;;  %v2887_v14 = vmov 0.0  }
 0x44b   : > { %1889 = vrot.lane.b32.xlu2 %v1882_v13, %s2877_s6  ;;  %v440_v13 = vadd.f32 %v436_v4, %v418_v21  ;;  %v415_v21 = vsel %vm394_vm4, %v3236_v0, %v4332_v28  ;;  %v4334_v4 = vld [vmem:[#allocation33_spill] sm:$0xff]  ;;  %v4336_v0 = vld [vmem:[#allocation36_spill] sm:$0xff] }
 0x44c   : > { %v318_v60 = vadd.f32 %v314_v8, %v296_v16  ;;  %v4333_v8 = vld [vmem:[#allocation32_spill] sm:$0xff]  ;;  %v2127_v16 = vmul.f32 %v3930_v54, %v3022_v43 }
 0x44d   : > { %v849_v23 = vsel %vm848_vm10, %v4334_v4, %v4333_v8  ;;  %v4034_v4 = vstv %s2643_s19 }
 0x44e   : > { %1954 = vrot.lane.b32.xlu1 %v1948_v15, %s2880_s18  ;;  %v4320_v15 = vld [vmem:[#allocation20_spill] sm:$0xff] }
 0x44f   : > { %v333_v34 = vsel %vm312_vm2, %v3212_v39, %v4320_v15 }
 0x450   : > { %v337_v50 = vadd.f32 %v333_v34, %v318_v60  ;;  %v4335_v34 = vld [vmem:[#allocation35_spill] sm:$0xff] }
 0x451   : > { %v1159_v60 = vsel %vm1158_vm13, %v4336_v0, %v4335_v34 }
 0x452   : > { %1914 = vrot.lane.b32.xlu0 %v1906_v30, %s2879_s14  ;;  %v459_v30 = vadd.f32 %v455_v36, %v440_v13 }
 0x453   : > { %1912 = vrot.lane.b32.xlu2 %v1905_v31, %s2879_s14  ;;  %v2128_v31 = vmul.f32 %v3930_v54, %v3025_v44 }
 0x456   : > { %1975 = vrot.lane.b32.xlu1 %v1969_v57, %s2880_s18  ;;  %v3935_v57 = vand.u32 15, %v3923_v46 }
 0x458   : > { %v547_v37 = vadd.s32 4294967294, %v3935_v57  ;;  %v857_v6 = vadd.s32 4294967295, %v3935_v57  ;;  %v1475_v13 = vadd.s32 1, %v3935_v57 }
 0x45a   : > { %1935 = vrot.lane.b32.xlu0 %v1927_v2, %s2879_s14  ;;  %v4322_v2 = vld [vmem:[#allocation13_spill] sm:$0xff]  ;;  %vm549_vm9 = vcmp.ge.s32.totalorder %v547_v37, 0  ;;  %vm859_vm12 = vcmp.ge.s32.totalorder %v857_v6, 0  ;;  %vm1479_vm14 = vcmp.lt.s32.totalorder %v1475_v13, 16 }
 0x45b   : > { %1933 = vrot.lane.b32.xlu2 %v1926_v7, %s2879_s14  ;;  %v477_v39 = vsel %vm476_vm6, %v4322_v2, %v4321_v11  ;;  %v4324_v7 = vld [vmem:[#allocation25_spill] sm:$0xff]  ;;  %v2594_v15 = vsel %vm859_vm12, 1.0, %v2887_v14  ;;  %v3990_v2 = vstv %s2662_s8  ;;  %s2675_s8 = sshll.u32 %s2926_s13, 1 }
 0x45c   : > { %v496_v33 = vsel %vm476_vm6, %v4324_v7, %v4323_v3  ;;  %v481_v45 = vadd.f32 %v477_v39, %v459_v30  ;;  %v2037_v30 = vmul.f32 %v3896_v41, %v3022_v43  ;;  %v1163_v7 = vmul.f32 %v2594_v15, %v1159_v60 }
 0x45d   : > { %v2147_v60 = vmul.f32 %v3957_v49, %v3070_v10 }
 0x45e   : > { %1998 = vrot.lane.b32.xlu1 %v1992_v61, %s2881_s22  ;;  %v2015_v61 = vmul.f32 %v2012_v9, %v3085_v19  ;;  %v500_v35 = vadd.f32 %v496_v33, %v481_v45  ;;  %v2172_v33 = vmul.f32 %v3990_v2, %v3025_v44  ;;  %v4337_v45 = vld [vmem:[#allocation17_spill] sm:$0xff] }
 0x45f   : > { %v437_v37 = vsel %vm435_vm5, %v3140_v55, %v4337_v45  ;;  %v2148_v55 = vmul.f32 %v3957_v49, %v3089_v22 }
 0x462   : > { %1958 = vrot.lane.b32.xlu0 %v1950_v18, %s2880_s18  ;;  %v2014_v18 = vmul.f32 %v2012_v9, %v3089_v22  ;;  %v4327_v9 = vld [vmem:[#allocation15_spill] sm:$0xff] }
 0x463   : > { %1956 = vrot.lane.b32.xlu2 %v1949_v58, %s2880_s18  ;;  %v359_v58 = vadd.f32 %v355_v27, %v337_v50  ;;  %v518_v62 = vsel %vm517_vm7, %v4328_v17, %v4327_v9 }
 0x464   : > { %v522_v59 = vadd.f32 %v518_v62, %v500_v35  ;;  %v4339_v62 = vld [vmem:[#allocation18_spill] sm:$0xff] }
 0x465   : > { %v378_v40 = vadd.f32 %v374_v24, %v359_v58  ;;  %v248_v24 = vadd.s32 128, %v3923_v46  ;;  %v2624_v58 = vsel %vm1479_vm14, 1.0, %v2887_v14  ;;  %v2126_v46 = vmul.f32 %v3930_v54, %v3015_v38 }
 0x466   : > { %2019 = vrot.lane.b32.xlu1 %v2013_v29, %s2881_s22  ;;  %v273_v29 = vadd.s32 4294967293, %v3935_v57 }
 0x468   : > { %vm275_vm11 = vcmp.ge.s32.totalorder %v273_v29, 0 }
 0x46a   : > { %1979 = vrot.lane.b32.xlu0 %v1971_v5, %s2880_s18  ;;  %v4329_v5 = vld [vmem:[#allocation27_spill] sm:$0xff] }
 0x46b   : > { %1977 = vrot.lane.b32.xlu2 %v1970_v42, %s2880_s18  ;;  %v4330_v42 = vld [vmem:[#allocation28_spill] sm:$0xff] }
 0x46c   : > { %v537_v47 = vsel %vm517_vm7, %v4330_v42, %v4329_v5  ;;  %v478_v42 = vsel %vm476_vm6, %v4321_v11, %v4339_v62  ;;  %v2234_v62 = vstv %s2665_s29 }
 0x46e   : > { %2042 = vrot.lane.b32.xlu1 %v2036_v63, %s2882_s24  ;;  %v396_v63 = vsel %vm394_vm4, %v3128_v48, %v4331_v52  ;;  %v2563_v48 = vsel %vm275_vm11, 1.0, %v2887_v14  ;;  %v4022_v52 = vstv %s2663_s17 }
 0x46f   : > { %v400_v36 = vadd.f32 %v396_v63, %v378_v40  ;;  %v4011_v40 = vand.u32 15, %v248_v24  ;;  %v2193_v28 = vmul.f32 %v4022_v52, %v3085_v19 }
 0x471   : > { %v548_v63 = vadd.s32 4294967294, %v4011_v40  ;;  %v1476_v45 = vadd.s32 1, %v4011_v40 }
 0x472   : > { %2002 = vrot.lane.b32.xlu0 %v1994_v53, %s2881_s22  ;;  %v2578_v53 = vsel %vm549_vm9, 1.0, %v2887_v14 }
 0x473   : > { %2000 = vrot.lane.b32.xlu2 %v1993_v32, %s2881_s22  ;;  %v541_v32 = vadd.f32 %v537_v47, %v522_v59  ;;  %v853_v50 = vmul.f32 %v2578_v53, %v849_v23  ;;  %v4340_v47 = vld [vmem:[#allocation30_spill] sm:$0xff]  ;;  %v274_v53 = vadd.s32 4294967293, %v4011_v40  ;;  %vm550_vm0 = vcmp.ge.s32.totalorder %v548_v63, 0 }
 0x474   : > { %v497_v59 = vsel %vm476_vm6, %v4323_v3, %v4340_v47  ;;  %v858_v3 = vadd.s32 4294967295, %v4011_v40  ;;  %v4036_v23 = vstv %s2642_s23  ;;  %vm1480_vm9 = vcmp.lt.s32.totalorder %v1476_v45, 16  ;;  %s2465_s23 = scalar_lea.hbm %s4278_s2, %s2675_s8 }
 0x475   : > { %v543_v39 = vmul.f32 %v2563_v48, %v541_v32  ;;  %v2171_v32 = vmul.f32 %v3990_v2, %v3022_v43  ;;  %v4342_v48 = vld [vmem:[#allocation31_spill] sm:$0xff]  ;;  %vm276_vm1 = vcmp.ge.s32.totalorder %v274_v53, 0  ;;  %v1800_v49 = vmul.f32 %v4036_v23, %v3015_v38  ;;  %s2469_s13 = sshll.u32 %s2465_s23, 4  ;;  %s2470_s13 = int_to_ptr.hbm [resolvable:$true] %s2469_s13 }
 0x476   : > { %2136 = vrot.lane.b32.xlu1 %v2128_v31, %s2878_s7  ;;  %v419_v31 = vadd.f32 %v415_v21, %v400_v36  ;;  %v538_v15 = vsel %vm517_vm7, %v4329_v5, %v4342_v48  ;;  %vm860_vm8 = vcmp.ge.s32.totalorder %v858_v3, 0  ;;  %v1809_v48 = vmul.f32 %v4034_v4, %v3085_v19 }
 0x478   : > { %v441_v56 = vadd.f32 %v437_v37, %v419_v31  ;;  %v1807_v31 = vmul.f32 %v4034_v4, %v3070_v10  ;;  %v2564_v37 = vsel %vm276_vm1, 1.0, %v2887_v14  ;;  %vm2446_vm1 = vcmask 1040384  }
 0x47a   : > { %2023 = vrot.lane.b32.xlu0 %v2015_v61, %s2881_s22  ;;  %v4338_v61 = vld [vmem:[#allocation29_spill] sm:$0xff] }
 0x47b   : > { %2021 = vrot.lane.b32.xlu2 %v2014_v18, %s2881_s22  ;;  %v456_v20 = vsel %vm435_vm5, %v4318_v1, %v4338_v61  ;;  %v855_v18 = vadd.f32 %v853_v50, %v543_v39  ;;  %v4343_v50 = vld [vmem:[#allocation34_spill] sm:$0xff]  ;;  %v2213_v39 = vstv %s2664_s28  ;;  %v2595_v61 = vsel %vm860_vm8, 1.0, %v2887_v14  ;;  %s175_s28 = scalar_lea.vmem [#allocation7], %s2562_s5 }
 0x47c   : > { %v460_v35 = vadd.f32 %v456_v20, %v441_v56  ;;  %v850_v5 = vsel %vm848_vm10, %v4333_v8, %v4343_v50  ;;  %v4344_v20 = vld [vmem:[#allocation37_spill] sm:$0xff]  ;;  %v2215_v3 = vmul.f32 %v2213_v39, %v3022_v43  ;;  %s2467_s29 = sshll.u32 %s175_s28, 4  ;;  %s2468_s29 = int_to_ptr.vmem [resolvable:$true] %s2467_s29 }
 0x47d   : > { %v1165_v29 = vadd.f32 %v1163_v7, %v855_v18  ;;  %v1160_v8 = vsel %vm1158_vm13, %v4335_v34, %v4344_v20  ;;  %v1810_v18 = vadd.f32 %v1807_v31, %v1800_v49 }
 0x47e   : > { %2157 = vrot.lane.b32.xlu1 %v2149_v51, %s2878_s7  ;;  %v482_v54 = vadd.f32 %v478_v42, %v460_v35 }
 0x47f   : > { %v1473_v51 = vadd.f32 %v3761_v26, %v1165_v29  ;;  %v1164_v29 = vmul.f32 %v2595_v61, %v1160_v8 }
 0x480   : > { %v501_v11 = vadd.f32 %v497_v59, %v482_v54  ;;  %v2237_v59 = vmul.f32 %v2234_v62, %v3085_v19 }
 0x482   : > { %2134 = vrot.lane.b32.xlu0 %v2127_v16, %s2878_s7  ;;  %v4341_v16 = vld [vmem:[#allocation19_spill] sm:$0xff] }
 0x483   : > { %2044 = vrot.lane.b32.xlu2 %v2037_v30, %s2882_s24  ;;  %v519_v13 = vsel %vm517_vm7, %v4327_v9, %v4341_v16  ;;  %v2579_v9 = vsel %vm550_vm0, 1.0, %v2887_v14 }
 0x484   : > { %v523_v30 = vadd.f32 %v519_v13, %v501_v11  ;;  %v854_v24 = vmul.f32 %v2579_v9, %v850_v5  ;;  %v2236_v9 = vmul.f32 %v2234_v62, %v3089_v22 }
 0x485   : > { %v4000_v27 = vpop.permute.xlu2 %1772 }
 0x486   : > { %2180 = vrot.lane.b32.xlu1 %v2172_v33, %s2877_s6  ;;  %v542_v7 = vadd.f32 %v538_v15, %v523_v30  ;;  %v2216_v33 = vmul.f32 %v2213_v39, %v3025_v44  ;;  %v1801_v30 = vmul.f32 %v4036_v23, %v3022_v43 }
 0x488   : > { %v1771_v6 = vpop.permute.xlu1 %1770  ;;  %v544_v35 = vmul.f32 %v2564_v37, %v542_v7 }
 0x489   : > { %v1777_v1 = vsel %vm1776_vm15, %v1771_v6, %v4000_v27 }
 0x48a   : > { %v1781_v17 = vmul.f32 %v2624_v58, %v1777_v1  ;;  %2155 = vrot.lane.b32.xlu0 %v2148_v55, %s2878_s7  ;;  %v2192_v58 = vmul.f32 %v4022_v52, %v3089_v22 }
 0x48b   : > { %2132 = vrot.lane.b32.xlu2 %v2126_v46, %s2878_s7  ;;  %v2170_v46 = vmul.f32 %v3990_v2, %v3015_v38 }
 0x48c   : > { %v4025_v26 = vadd.f32 %v1781_v17, %v1473_v51  ;;  %v856_v51 = vadd.f32 %v854_v24, %v544_v35  ;;  %v2625_v17 = vsel %vm1480_vm9, 1.0, %v2887_v14  ;;  %v2235_v35 = vmul.f32 %v2234_v62, %v3070_v10 }
 0x48d   : > { %v4029_v21 = vpop.permute.xlu2 %1824  ;;  %vm2451_vm9 = vcmp.lt.s32.totalorder %v246_v25, 256 }
 0x48e   : > { %2201 = vrot.lane.b32.xlu1 %v2193_v28, %s2877_s6  ;;  %v1166_v42 = vadd.f32 %v1164_v29, %v856_v51 }
 0x490   : > { %v1823_v36 = vpop.permute.xlu1 %1822  ;;  %v1474_v2 = vadd.f32 %v3768_v12, %v1166_v42 }
 0x491   : > { %v1828_v0 = vsel %vm312_vm2, %v1823_v36, %v4029_v21 }
 0x492   : > { %2178 = vrot.lane.b32.xlu0 %v2171_v32, %s2877_s6  ;;  %v1833_v6 = vadd.f32 %v1828_v0, %v1810_v18  ;;  %v2191_v32 = vmul.f32 %v4022_v52, %v3070_v10  ;;  %v1808_v52 = vmul.f32 %v4034_v4, %v3089_v22 }
 0x493   : > { %2153 = vrot.lane.b32.xlu2 %v2147_v60, %s2878_s7  ;;  %s2666_s7 = sld [smem:[#allocation2 + $0x22]]  ;;  %v1802_v60 = vmul.f32 %v4036_v23, %v3025_v44 }
 0x494   : > { %v1811_v7 = vadd.f32 %v1808_v52, %v1801_v30 }
 0x495   : > { %v1846_v56 = vpop.permute.xlu2 %1845  ;;  %v1812_v50 = vadd.f32 %v1809_v48, %v1802_v60 }
 0x496   : > { %2224 = vrot.lane.b32.xlu1 %v2216_v33, %s2879_s14  ;;  %v2278_v33 = vstv %s2667_s30  ;;  %s2817_s30 = sshra.s32 %s2470_s13, 4  ;;  %s2818_s30 = int_to_ptr.hbm [resolvable:$true] %s2817_s30 }
 0x497   : > { %v2281_v23 = vmul.f32 %v2278_v33, %v3085_v19  ;;  %v2280_v62 = vmul.f32 %v2278_v33, %v3089_v22  ;;  %p2824_p9 = scmp.lt.s32.totalorder %s2818_s30, %s4278_s2 }
 0x498   : > { %v1844_v55 = vpop.permute.xlu1 %1843 }
 0x499   : > { %v1849_v1 = vsel %vm312_vm2, %v1844_v55, %v1846_v56 }
 0x49a   : > { %v1854_v34 = vadd.f32 %v1849_v1, %v1833_v6  ;;  %2199 = vrot.lane.b32.xlu0 %v2192_v58, %s2877_s6 }
 0x49b   : > { %2176 = vrot.lane.b32.xlu2 %v2170_v46, %s2877_s6 }
 0x49c   : > { %v1775_v47 = vpop.permute.xlu0 %1774 }
 0x49d   : > { %v1778_v54 = vsel %vm1776_vm15, %v4000_v27, %v1775_v47  ;;  %v1869_v63 = vpop.permute.xlu2 %1868  ;;  %v2257_v27 = vstv %s2666_s7  ;;  %s2455_s7 = scalar_lea.sflag [#allocation4], %s3002_s27 }
 0x49e   : > { %v1782_v28 = vmul.f32 %v2625_v17, %v1778_v54  ;;  %2245 = vrot.lane.b32.xlu1 %v2237_v59, %s2879_s14  ;;  %v2260_v13 = vmul.f32 %v2257_v27, %v3025_v44  ;;  %v2259_v18 = vmul.f32 %v2257_v27, %v3022_v43  ;;  %v2258_v47 = vmul.f32 %v2257_v27, %v3015_v38 }
 0x49f   : > { %v4120_v59 = vstv %s2669_s3 }
 0x4a0   : > { %v4081_v11 = vadd.f32 %v1782_v28, %v1474_v2  ;;  %v1867_v53 = vpop.permute.xlu1 %1866  ;;  %v2324_v2 = vmul.f32 %v4120_v59, %v3089_v22 }
 0x4a1   : > { %v1872_v36 = vsel %vm353_vm3, %v1867_v53, %v1869_v63 }
 0x4a2   : > { %v1877_v16 = vadd.f32 %v1872_v36, %v1854_v34  ;;  %2222 = vrot.lane.b32.xlu0 %v2215_v3, %s2879_s14 }
 0x4a3   : > { %2197 = vrot.lane.b32.xlu2 %v2191_v32, %s2877_s6  ;;  %s2668_s6 = sld [smem:[#allocation2 + $0x29]] }
 0x4a4   : > { %v1827_v12 = vpop.permute.xlu0 %1826 }
 0x4a5   : > { %v1829_v15 = vsel %vm312_vm2, %v4029_v21, %v1827_v12  ;;  %v1890_v0 = vpop.permute.xlu2 %1889  ;;  %v2214_v21 = vmul.f32 %v2213_v39, %v3015_v38  ;;  %v1835_v4 = vadd.f32 %v1827_v12, %v1812_v50  ;;  %v2279_v12 = vmul.f32 %v2278_v33, %v3070_v10 }
 0x4a6   : > { %2268 = vrot.lane.b32.xlu1 %v2260_v13, %s2880_s18  ;;  %v1834_v45 = vadd.f32 %v1829_v15, %v1811_v7 }
 0x4a8   : > { %v1888_v31 = vpop.permute.xlu1 %1887 }
 0x4a9   : > { %v1893_v5 = vsel %vm353_vm3, %v1888_v31, %v1890_v0  ;;  %v2301_v6 = vstv %s2668_s6  ;;  %s2819_s6 = scalar_lea.hbm %s2818_s30, 2 }
 0x4aa   : > { %v1898_v49 = vadd.f32 %v1893_v5, %v1877_v16  ;;  %2243 = vrot.lane.b32.xlu0 %v2236_v9, %s2879_s14  ;;  %v2304_v55 = vmul.f32 %v2301_v6, %v3025_v44  ;;  %v2303_v16 = vmul.f32 %v2301_v6, %v3022_v43  ;;  %v2302_v50 = vmul.f32 %v2301_v6, %v3015_v38  ;;  %p2820_p1 = scmp.ne.s32.totalorder %s2818_s30, %s2819_s6 }
 0x4ab   : > { %2220 = vrot.lane.b32.xlu2 %v2214_v21, %s2879_s14  ;;  %v2038_v21 = vmul.f32 %v3896_v41, %v3025_v44 }
 0x4ac   : > { %v1848_v37 = vpop.permute.xlu0 %1847  ;;  %p2821_p4 = pnand %p2820_p1, %p2971_p3 }
 0x4ad   : > { %v1850_v61 = vsel %vm312_vm2, %v1846_v56, %v1848_v37  ;;  %v1856_v20 = vadd.f32 %v1848_v37, %v1835_v4  ;;  %v1913_v8 = vpop.permute.xlu2 %1912 }
 0x4ae   : > { %v1855_v24 = vadd.f32 %v1850_v61, %v1834_v45  ;;  %2289 = vrot.lane.b32.xlu1 %v2281_v23, %s2880_s18  ;;  %p2822_p8 = pneg %p2821_p4 }
 0x4b0   : > { %v1911_v39 = vpop.permute.xlu1 %1910 }
 0x4b1   : > { %v1916_v58 = vsel %vm394_vm4, %v1911_v39, %v1913_v8 }
 0x4b2   : > { %v1921_v29 = vadd.f32 %v1916_v58, %v1898_v49  ;;  %2266 = vrot.lane.b32.xlu0 %v2259_v18, %s2880_s18  ;;  %v2345_v49 = vstv %s2670_s15  ;;  %s2823_s15 = scalar_lea.hbm %s4278_s2, 4 }
 0x4b3   : > { %2241 = vrot.lane.b32.xlu2 %v2235_v35, %s2879_s14  ;;  %s2655_s14 = sld [smem:[#allocation2 + $0x60]]  ;;  %v2348_v33 = vmul.f32 %v2345_v49, %v3025_v44  ;;  %p2825_p10 = scmp.lt.s32.totalorder %s2823_s15, %s2819_s6 }
 0x4b4   : > { %v1871_v56 = vpop.permute.xlu0 %1870 }
 0x4b5   : > { %v1873_v1 = vsel %vm353_vm3, %v1869_v63, %v1871_v56  ;;  %v1879_v46 = vadd.f32 %v1871_v56, %v1856_v20  ;;  %v1934_v51 = vpop.permute.xlu2 %1933  ;;  %p2826_p2 = por %p2825_p10, %p2824_p9 }
 0x4b6   : > { %v1878_v34 = vadd.f32 %v1873_v1, %v1855_v24  ;;  %2312 = vrot.lane.b32.xlu1 %v2304_v55, %s2881_s22  ;;  %v2325_v24 = vmul.f32 %v4120_v59, %v3085_v19 }
 0x4b7   : > { %p2827_p11 = pnand %p2826_p2, %p2822_p8 }
 0x4b8   : > { %v1932_v17 = vpop.permute.xlu1 %1931 }
 0x4b9   : > { %v1937_v42 = vsel %vm394_vm4, %v1932_v17, %v1934_v51  ;;  %v2056_v48 = vstv %s2655_s14 }
 0x4ba   : > { %v1942_v54 = vadd.f32 %v1937_v42, %v1921_v29  ;;  %2287 = vrot.lane.b32.xlu0 %v2280_v62, %s2880_s18  ;;  %v2058_v41 = vmul.f32 %v2056_v48, %v3089_v22 }
 0x4bb   : > { %2264 = vrot.lane.b32.xlu2 %v2258_v47, %s2880_s18 }
 0x4bc   : > { %v1892_v63 = vpop.permute.xlu0 %1891 }
 0x4bd   : > { %v1894_v28 = vsel %vm353_vm3, %v1890_v0, %v1892_v63  ;;  %v1900_v53 = vadd.f32 %v1892_v63, %v1879_v46  ;;  %v1957_v3 = vpop.permute.xlu2 %1956  ;;  %v2059_v0 = vmul.f32 %v2056_v48, %v3085_v19  ;;  %v2347_v46 = vmul.f32 %v2345_v49, %v3022_v43 }
 0x4be   : > { %v1899_v36 = vadd.f32 %v1894_v28, %v1878_v34  ;;  %2331 = vrot.lane.b32.xlu1 %v2324_v2, %s2881_s22  ;;  %v2323_v34 = vmul.f32 %v4120_v59, %v3070_v10  ;;  %v2346_v28 = vmul.f32 %v2345_v49, %v3015_v38  ;;  %v2057_v59 = vmul.f32 %v2056_v48, %v3070_v10 }
 0x4c0   : > { %v1955_v32 = vpop.permute.xlu1 %1954 }
 0x4c1   : > { %v1960_v27 = vsel %vm435_vm5, %v1955_v32, %v1957_v3 }
 0x4c2   : > { %v1965_v13 = vadd.f32 %v1960_v27, %v1942_v54  ;;  %2310 = vrot.lane.b32.xlu0 %v2303_v16, %s2881_s22 }
 0x4c3   : > { %2285 = vrot.lane.b32.xlu2 %v2279_v12, %s2880_s18  ;;  %s2671_s18 = sld [smem:[#allocation2 + $0x61]] }
 0x4c4   : > { %v1915_v15 = vpop.permute.xlu0 %1914 }
 0x4c5   : > { %v1917_v52 = vsel %vm394_vm4, %v1913_v8, %v1915_v15  ;;  %v1923_v60 = vadd.f32 %v1915_v15, %v1900_v53  ;;  %v1978_v30 = vpop.permute.xlu2 %1977 }
 0x4c6   : > { %v1922_v31 = vadd.f32 %v1917_v52, %v1899_v36  ;;  %2067 = vrot.lane.b32.xlu1 %v2059_v0, %s2882_s24 }
 0x4c8   : > { %v1976_v9 = vpop.permute.xlu1 %1975 }
 0x4c9   : > { %v1981_v5 = vsel %vm435_vm5, %v1976_v9, %v1978_v30  ;;  %v2366_v39 = vstv %s2671_s18 }
 0x4ca   : > { %v1986_v7 = vadd.f32 %v1981_v5, %v1965_v13  ;;  %2308 = vrot.lane.b32.xlu0 %v2302_v50, %s2881_s22  ;;  %v2368_v35 = vmul.f32 %v2366_v39, %v3089_v22  ;;  %v2116_v13 = vstv %s2659_s20  ;;  %v2367_v0 = vmul.f32 %v2366_v39, %v3070_v10 }
 0x4cb   : > { %2046 = vrot.lane.b32.xlu2 %v2038_v21, %s2882_s24  ;;  %v2119_v52 = vmul.f32 %v2116_v13, %v3085_v19  ;;  %v2369_v48 = vmul.f32 %v2366_v39, %v3085_v19 }
 0x4cc   : > { %v1936_v4 = vpop.permute.xlu0 %1935 }
 0x4cd   : > { %v1938_v45 = vsel %vm394_vm4, %v1934_v51, %v1936_v4  ;;  %v1944_v37 = vadd.f32 %v1936_v4, %v1923_v60  ;;  %v2001_v23 = vpop.permute.xlu2 %2000 }
 0x4ce   : > { %v1943_v61 = vadd.f32 %v1938_v45, %v1922_v31  ;;  %2356 = vrot.lane.b32.xlu1 %v2348_v33, %s2882_s24 }
 0x4d0   : > { %v1999_v20 = vpop.permute.xlu1 %1998 }
 0x4d1   : > { %v2004_v8 = vsel %vm476_vm6, %v1999_v20, %v2001_v23 }
 0x4d2   : > { %v2009_v18 = vadd.f32 %v2004_v8, %v1986_v7  ;;  %2065 = vrot.lane.b32.xlu0 %v2058_v41, %s2882_s24 }
 0x4d3   : > { %2333 = vrot.lane.b32.xlu2 %v2325_v24, %s2881_s22 }
 0x4d4   : > { %v1959_v58 = vpop.permute.xlu0 %1958 }
 0x4d5   : > { %v1961_v29 = vsel %vm435_vm5, %v1957_v3, %v1959_v58  ;;  %v1967_v6 = vadd.f32 %v1959_v58, %v1944_v37  ;;  %v2022_v56 = vpop.permute.xlu2 %2021 }
 0x4d6   : > { %v1966_v55 = vadd.f32 %v1961_v29, %v1943_v61  ;;  %2375 = vrot.lane.b32.xlu1 %v2368_v35, %s2882_s24  ;;  %v2118_v61 = vmul.f32 %v2116_v13, %v3089_v22 }
 0x4d8   : > { %v2020_v1 = vpop.permute.xlu1 %2019 }
 0x4d9   : > { %v2025_v51 = vsel %vm476_vm6, %v2020_v1, %v2022_v56 }
 0x4da   : > { %v2030_v17 = vadd.f32 %v2025_v51, %v2009_v18  ;;  %2354 = vrot.lane.b32.xlu0 %v2347_v46, %s2882_s24 }
 0x4db   : > { %2329 = vrot.lane.b32.xlu2 %v2323_v34, %s2881_s22  ;;  %s2658_s22 = sld [smem:[#allocation2 + $0x6]] }
 0x4dc   : > { %v1980_v62 = vpop.permute.xlu0 %1979 }
 0x4dd   : > { %v1982_v42 = vsel %vm435_vm5, %v1978_v30, %v1980_v62  ;;  %v1988_v47 = vadd.f32 %v1980_v62, %v1967_v6  ;;  %v4161_v54 = vpop.permute.xlu2 %2044 }
 0x4de   : > { %v1987_v63 = vadd.f32 %v1982_v42, %v1966_v55 }
 0x4e0   : > { %v2043_v2 = vpop.permute.xlu1 %2042 }
 0x4e1   : > { %v2048_v53 = vsel %vm517_vm7, %v2043_v2, %v4161_v54  ;;  %v2109_v60 = vstv %s2658_s22 }
 0x4e2   : > { %v4167_v3 = vadd.f32 %v2048_v53, %v2030_v17  ;;  %2352 = vrot.lane.b32.xlu0 %v2346_v28, %s2882_s24  ;;  %v2112_v30 = vmul.f32 %v2109_v60, %v3025_v44  ;;  %v2117_v44 = vmul.f32 %v2116_v13, %v3070_v10  ;;  %v2110_v20 = vmul.f32 %v2109_v60, %v3015_v38 }
 0x4e3   : > { %2063 = vrot.lane.b32.xlu2 %v2057_v59, %s2882_s24  ;;  %v2111_v41 = vmul.f32 %v2109_v60, %v3022_v43 }
 0x4e4   : > { %v2003_v36 = vpop.permute.xlu0 %2002  ;;  %v2122_v9 = vadd.f32 %v2119_v52, %v2112_v30  ;;  %v2120_v24 = vadd.f32 %v2117_v44, %v2110_v20 }
 0x4e5   : > { %v2005_v32 = vsel %vm476_vm6, %v2001_v23, %v2003_v36  ;;  %v2011_v16 = vadd.f32 %v2003_v36, %v1988_v47  ;;  %v2133_v27 = vpop.permute.xlu2 %2132  ;;  %v2121_v39 = vadd.f32 %v2118_v61, %v2111_v41 }
 0x4e6   : > { %v2010_v12 = vadd.f32 %v2005_v32, %v1987_v63 }
 0x4e8   : > { %v2137_v15 = vpop.permute.xlu1 %2136 }
 0x4e9   : > { %v2145_v49 = vadd.f32 %v2137_v15, %v2122_v9 }
 0x4ea   : > { %2373 = vrot.lane.b32.xlu0 %v2367_v0, %s2882_s24 }
 0x4eb   : > { %2377 = vrot.lane.b32.xlu2 %v2369_v48, %s2882_s24  ;;  %s2888_s24 = smov 123  }
 0x4ec   : > { %v2024_v31 = vpop.permute.xlu0 %2023 }
 0x4ed   : > { %v2026_v50 = vsel %vm476_vm6, %v2022_v56, %v2024_v31  ;;  %v2032_v5 = vadd.f32 %v2024_v31, %v2011_v16  ;;  %v2154_v21 = vpop.permute.xlu2 %2153 }
 0x4ee   : > { %v4179_v7 = vadd.f32 %v2026_v50, %v2010_v12 }
 0x4f0   : > { %v2158_v4 = vpop.permute.xlu1 %2157 }
 0x4f1   : > { %v2166_v33 = vadd.f32 %v2158_v4, %v2145_v49 }
 0x4f4   : > { %v2135_v45 = vpop.permute.xlu0 %2134 }
 0x4f5   : > { %v2138_v19 = vsel %vm312_vm2, %v2133_v27, %v2135_v45  ;;  %v2139_v37 = vsel %vm312_vm2, %v2135_v45, %v2137_v15  ;;  %v2177_v23 = vpop.permute.xlu2 %2176 }
 0x4f6   : > { %v2143_v18 = vadd.f32 %v2138_v19, %v2120_v24  ;;  %v2144_v58 = vadd.f32 %v2139_v37, %v2121_v39 }
 0x4f8   : > { %v2181_v8 = vpop.permute.xlu1 %2180 }
 0x4f9   : > { %v2189_v9 = vadd.f32 %v2181_v8, %v2166_v33 }
 0x4fc   : > { %v2156_v35 = vpop.permute.xlu0 %2155 }
 0x4fd   : > { %v2159_v29 = vsel %vm312_vm2, %v2154_v21, %v2156_v35  ;;  %v2160_v6 = vsel %vm312_vm2, %v2156_v35, %v2158_v4  ;;  %v2198_v56 = vpop.permute.xlu2 %2197 }
 0x4fe   : > { %v2164_v55 = vadd.f32 %v2159_v29, %v2143_v18  ;;  %v2165_v1 = vadd.f32 %v2160_v6, %v2144_v58 }
 0x500   : > { %v2202_v10 = vpop.permute.xlu1 %2201 }
 0x501   : > { %v2210_v49 = vadd.f32 %v2202_v10, %v2189_v9 }
 0x504   : > { %v2179_v46 = vpop.permute.xlu0 %2178 }
 0x505   : > { %v2182_v22 = vsel %vm353_vm3, %v2177_v23, %v2179_v46  ;;  %v2183_v38 = vsel %vm353_vm3, %v2179_v46, %v2181_v8  ;;  %v2221_v43 = vpop.permute.xlu2 %2220 }
 0x506   : > { %v2187_v51 = vadd.f32 %v2182_v22, %v2164_v55  ;;  %v2188_v34 = vadd.f32 %v2183_v38, %v2165_v1 }
 0x508   : > { %v2225_v17 = vpop.permute.xlu1 %2224 }
 0x509   : > { %v2233_v45 = vadd.f32 %v2225_v17, %v2210_v49 }
 0x50c   : > { %v2200_v62 = vpop.permute.xlu0 %2199 }
 0x50d   : > { %v2203_v42 = vsel %vm353_vm3, %v2198_v56, %v2200_v62  ;;  %v2242_v47 = vpop.permute.xlu2 %2241  ;;  %v2204_v44 = vsel %vm353_vm3, %v2200_v62, %v2202_v10  ;;  %vm2086_vm3 = vcmask 1006592  }
 0x50e   : > { %v2208_v63 = vadd.f32 %v2203_v42, %v2187_v51  ;;  %v2209_v39 = vadd.f32 %v2204_v44, %v2188_v34 }
 0x510   : > { %v2246_v2 = vpop.permute.xlu1 %2245 }
 0x511   : > { %v2254_v23 = vadd.f32 %v2246_v2, %v2233_v45 }
 0x514   : > { %v2223_v28 = vpop.permute.xlu0 %2222 }
 0x515   : > { %v2226_v53 = vsel %vm394_vm4, %v2221_v43, %v2223_v28  ;;  %v4193_v59 = vpop.permute.xlu2 %2264  ;;  %v2227_v41 = vsel %vm394_vm4, %v2223_v28, %v2225_v17 }
 0x516   : > { %v2231_v36 = vadd.f32 %v2226_v53, %v2208_v63  ;;  %v2232_v18 = vadd.f32 %v2227_v41, %v2209_v39 }
 0x518   : > { %v2269_v32 = vpop.permute.xlu1 %2268 }
 0x519   : > { %v2277_v61 = vadd.f32 %v2269_v32, %v2254_v23 }
 0x51c   : > { %v2244_v16 = vpop.permute.xlu0 %2243 }
 0x51d   : > { %v2247_v27 = vsel %vm394_vm4, %v2242_v47, %v2244_v16  ;;  %v4196_v12 = vpop.permute.xlu2 %2285  ;;  %v2248_v8 = vsel %vm394_vm4, %v2244_v16, %v2246_v2 }
 0x51e   : > { %v4198_v13 = vadd.f32 %v2247_v27, %v2231_v36  ;;  %v2253_v6 = vadd.f32 %v2248_v8, %v2232_v18 }
 0x520   : > { %v2290_v15 = vpop.permute.xlu1 %2289 }
 0x521   : > { %v2298_v33 = vadd.f32 %v2290_v15, %v2277_v61 }
 0x524   : > { %v2267_v0 = vpop.permute.xlu0 %2266 }
 0x525   : > { %v2047_v52 = vpop.permute.xlu2 %2046  ;;  %v2271_v58 = vsel %vm435_vm5, %v2267_v0, %v2269_v32 }
 0x526   : > { %v2055_v4 = vadd.f32 %v2047_v52, %v2032_v5  ;;  %v2049_v35 = vsel %vm517_vm7, %v4161_v54, %v2047_v52  ;;  %v2276_v1 = vadd.f32 %v2271_v58, %v2253_v6 }
 0x527   : > { %v2054_v10 = vadd.f32 %v2049_v35, %v4179_v7 }
 0x528   : > { %v2313_v48 = vpop.permute.xlu1 %2312 }
 0x529   : > { %v2321_v5 = vadd.f32 %v2313_v48, %v2298_v33 }
 0x52c   : > { %v2288_v60 = vpop.permute.xlu0 %2287 }
 0x52d   : > { %v2334_v30 = vpop.permute.xlu2 %2333  ;;  %v2292_v55 = vsel %vm435_vm5, %v2288_v60, %v2290_v15  ;;  %v2291_v27 = vsel %vm435_vm5, %v4196_v12, %v2288_v60  ;;  %v1786_v12 = vadd.s32 2, %v4011_v40 }
 0x52e   : > { %v2342_v56 = vadd.f32 %v2334_v30, %v2321_v5  ;;  %v2297_v17 = vadd.f32 %v2292_v55, %v2276_v1  ;;  %v2095_v5 = vadd.s32 3, %v3935_v57 }
 0x52f   : > { %vm1790_vm2 = vcmp.lt.s32.totalorder %v1786_v12, 16 }
 0x530   : > { %v2332_v31 = vpop.permute.xlu1 %2331  ;;  %v2641_v23 = vsel %vm1790_vm2, 1.0, %v2887_v14 }
 0x531   : > { %v2336_v7 = vsel %vm476_vm6, %v2332_v31, %v2334_v30 }
 0x534   : > { %v2311_v50 = vpop.permute.xlu0 %2310 }
 0x535   : > { %v2330_v21 = vpop.permute.xlu2 %2329  ;;  %v2315_v38 = vsel %vm476_vm6, %v2311_v50, %v2313_v48 }
 0x536   : > { %v2320_v47 = vadd.f32 %v2315_v38, %v2297_v17  ;;  %v2335_v49 = vsel %vm476_vm6, %v2330_v21, %v2332_v31 }
 0x538   : > { %v2068_v19 = vpop.permute.xlu1 %2067  ;;  %v2341_v28 = vadd.f32 %v2336_v7, %v2320_v47 }
 0x539   : > { %v2076_v37 = vadd.f32 %v2068_v19, %v2055_v4 }
 0x53b   : > { %2084 = vrot.lane.b32.xlu2 %v2076_v37, %s2888_s24 }
 0x53c   : > { %v2309_v20 = vpop.permute.xlu0 %2308 }
 0x53d   : > { %v2064_v24 = vpop.permute.xlu2 %2063  ;;  %v2314_v52 = vsel %vm476_vm6, %v2309_v20, %v2311_v50  ;;  %v2096_v50 = vadd.s32 3, %v4011_v40 }
 0x53f   : > { %vm2100_vm4 = vcmp.lt.s32.totalorder %v2096_v50, 16 }
 0x540   : > { %v2357_v29 = vpop.permute.xlu1 %2356  ;;  %v2657_v44 = vsel %vm2100_vm4, 1.0, %v2887_v14 }
 0x541   : > { %v2365_v46 = vadd.f32 %v2357_v29, %v2342_v56 }
 0x544   : > { %v2066_v22 = vpop.permute.xlu0 %2065 }
 0x545   : > { %v2069_v43 = vsel %vm517_vm7, %v2064_v24, %v2066_v22  ;;  %v2070_v51 = vsel %vm517_vm7, %v2066_v22, %v2068_v19  ;;  %v2378_v34 = vpop.permute.xlu2 %2377  ;;  %v1785_v24 = vadd.s32 2, %v3935_v57 }
 0x546   : > { %v2074_v54 = vadd.f32 %v2069_v43, %v4167_v3  ;;  %v2075_v62 = vadd.f32 %v2070_v51, %v2054_v10  ;;  %v2386_v42 = vadd.f32 %v2378_v34, %v2365_v46  ;;  %v2270_v3 = vsel %vm435_vm5, %v4193_v59, %v2267_v0 }
 0x547   : > { %v2275_v15 = vadd.f32 %v2270_v3, %v4198_v13  ;;  %vm2396_vm5 = vcmask 998400   ;;  %vm1789_vm6 = vcmp.lt.s32.totalorder %v1785_v24, 16 }
 0x548   : > { %2080 = vrot.lane.b32.xlu0 %v2074_v54, %s2888_s24  ;;  %2082 = vrot.lane.b32.xlu1 %v2075_v62, %s2888_s24  ;;  %v2376_v63 = vpop.permute.xlu1 %2375  ;;  %v2640_v58 = vsel %vm1789_vm6, 1.0, %v2887_v14 }
 0x549   : > { %2394 = vrot.lane.b32.xlu2 %v2386_v42, %s2889_s4  ;;  %v2380_v32 = vsel %vm517_vm7, %v2376_v63, %v2378_v34  ;;  %v2296_v48 = vadd.f32 %v2291_v27, %v2275_v15 }
 0x54b   : > { %v2319_v9 = vadd.f32 %v2314_v52, %v2296_v48 }
 0x54c   : > { %v2355_v2 = vpop.permute.xlu0 %2354 }
 0x54d   : > { %v2359_v53 = vsel %vm517_vm7, %v2355_v2, %v2357_v29  ;;  %v2340_v45 = vadd.f32 %v2335_v49, %v2319_v9 }
 0x54e   : > { %v2364_v36 = vadd.f32 %v2359_v53, %v2341_v28 }
 0x550   : > { %v2385_v16 = vadd.f32 %v2380_v32, %v2364_v36 }
 0x552   : > { %2392 = vrot.lane.b32.xlu1 %v2385_v16, %s2889_s4 }
 0x554   : > { %v2353_v30 = vpop.permute.xlu0 %2352 }
 0x555   : > { %v2358_v4 = vsel %vm517_vm7, %v2353_v30, %v2355_v2 }
 0x556   : > { %v2363_v59 = vadd.f32 %v2358_v4, %v2340_v45 }
 0x55c   : > { %v2374_v0 = vpop.permute.xlu0 %2373 }
 0x55d   : > { %v2379_v19 = vsel %vm517_vm7, %v2374_v0, %v2376_v63  ;;  %vm2099_vm7 = vcmp.lt.s32.totalorder %v2095_v5, 16 }
 0x55e   : > { %v2384_v37 = vadd.f32 %v2379_v19, %v2363_v59  ;;  %v2656_v6 = vsel %vm2099_vm7, 1.0, %v2887_v14 }
 0x560   : > { %2390 = vrot.lane.b32.xlu0 %v2384_v37, %s2889_s4 }
 0x595   : > { %v2085_v13 = vpop.permute.xlu2 %2084 }
 0x5a3   : > { %v2395_v61 = vpop.permute.xlu2 %2394 }
 0x5ba   : > { %v2083_v60 = vpop.permute.xlu1 %2082  ;;  %v2081_v40 = vpop.permute.xlu0 %2080 }
 0x5bb   : > { %v2088_v31 = vsel %vm2086_vm3, %v2083_v60, %v2085_v13  ;;  %v2087_v35 = vsel %vm2086_vm3, %v2081_v40, %v2083_v60 }
 0x5bc   : > { %v2092_v21 = vmul.f32 %v2641_v23, %v2088_v31  ;;  %v2091_v29 = vmul.f32 %v2640_v58, %v2087_v35 }
 0x5be   : > { %v2094_v39 = vadd.f32 %v2092_v21, %v4081_v11  ;;  %v2093_v10 = vadd.f32 %v2091_v29, %v4025_v26 }
 0x5c4   : > { %v2393_v20 = vpop.permute.xlu1 %2392 }
 0x5c5   : > { %v2398_v41 = vsel %vm2396_vm5, %v2393_v20, %v2395_v61 }
 0x5c6   : > { %v2402_v33 = vmul.f32 %v2657_v44, %v2398_v41 }
 0x5c8   : > { %v2404_v8 = vadd.f32 %v2402_v33, %v2094_v39 }
 0x5ca   : > { %v2673_v18 = vmul.f32 -1.442695, %v2404_v8 }
 0x5cc   : > { %2750 = vpow2.f32 %v2673_v18 }
 0x5d2   : > { %v2751_v56 = vpop.eup %2750  ;;  %v2391_v55 = vpop.permute.xlu0 %2390 }
 0x5d3   : > { %v2412_v1 = vadd.f32 1.0, %v2751_v56  ;;  %v2397_v11 = vsel %vm2396_vm5, %v2391_v55, %v2393_v20 }
 0x5d4   : > { %v2401_v46 = vmul.f32 %v2656_v6, %v2397_v11 }
 0x5d5   : > { %2752 = vrcp.f32 %v2412_v1  ;;  %v2439_v42 = vand.u32 2147483648, %v2412_v1  ;;  %vm2433_vm11 = vweird.f32 %v2412_v1  ;;  %v2437_v47 = vand.u32 2147483647, %v2412_v1 }
 0x5d6   : > { %v2403_v57 = vadd.f32 %v2401_v46, %v2093_v10 }
 0x5d7   : > { %v2440_v28 = vor.u32 1.1754944e-38, %v2439_v42  ;;  %vm2438_vm14 = vcmp.eq.f32.partialorder %v2437_v47, 8.507059e+37 }
 0x5d8   : > { %v2672_v22 = vmul.f32 -1.442695, %v2403_v57 }
 0x5da   : > { %2754 = vpow2.f32 %v2672_v22 }
 0x5db   : > { %v2753_v38 = vpop.eup %2752 }
 0x5dc   : > { %v2429_v43 = vmul.f32 %v2753_v38, %v2412_v1  ;;  %vm2434_vm10 = vweird.f32 %v2753_v38 }
 0x5dd   : > { %vm2435_vm12 = vmor %vm2433_vm11, %vm2434_vm10 }
 0x5de   : > { %v2430_v34 = vsub.f32 1.0, %v2429_v43 }
 0x5e0   : > { %v2755_v51 = vpop.eup %2754  ;;  %v2431_v14 = vmul.f32 %v2753_v38, %v2430_v34 }
 0x5e1   : > { %v2411_v17 = vadd.f32 1.0, %v2755_v51 }
 0x5e2   : > { %v2432_v54 = vadd.f32 %v2753_v38, %v2431_v14 }
 0x5e3   : > { %2756 = vrcp.f32 %v2411_v17  ;;  %v2424_v2 = vand.u32 2147483648, %v2411_v17  ;;  %v2422_v36 = vand.u32 2147483647, %v2411_v17  ;;  %vm2418_vm15 = vweird.f32 %v2411_v17 }
 0x5e4   : > { %v2436_v63 = vsel %vm2435_vm12, %v2753_v38, %v2432_v54 }
 0x5e5   : > { %v2441_v3 = vsel %vm2438_vm14, %v2440_v28, %v2436_v63  ;;  %v2425_v16 = vor.u32 1.1754944e-38, %v2424_v2  ;;  %vm2423_vm8 = vcmp.eq.f32.partialorder %v2422_v36, 8.507059e+37 }
 0x5e6   : > { %v2445_v15 = vrot.slane %v2441_v3, 7 }
 0x5e9   : > { %v2757_v62 = vpop.eup %2756 }
 0x5ea   : > { %v2414_v26 = vmul.f32 %v2757_v62, %v2411_v17  ;;  %vm2419_vm13 = vweird.f32 %v2757_v62 }
 0x5eb   : > { %vm2420_vm0 = vmor %vm2418_vm15, %vm2419_vm13 }
 0x5ec   : > { %v2415_v7 = vsub.f32 1.0, %v2414_v26 }
 0x5ee   : > { %v2416_v53 = vmul.f32 %v2757_v62, %v2415_v7 }
 0x5f0   : > { %v2417_v32 = vadd.f32 %v2757_v62, %v2416_v53 }
 0x5f2   : > { %v2421_v27 = vsel %vm2420_vm0, %v2757_v62, %v2417_v32 }
 0x5f3   : > { %v2426_v52 = vsel %vm2423_vm8, %v2425_v16, %v2421_v27 }
 0x5f4   : > { %v2447_v48 = vsel %vm2446_vm1, %v2426_v52, %v2445_v15 }
 0x5f5   : > { %2453 = vst.msk [vmem:[%s175_s28] sm:$0x3] %vm2451_vm9, %v2447_v48 }
 0x5f6   : > { %2830 = shalt.err (!%p2827_p11)
}
 0x5f7   : > { %2685 = dma.vmem_to_hbm [thread:$0]  (%p2971_p3), %s2468_s29, 32, %s2470_s13, %s2455_s7  }
 0x5f8 PF: > { %s2481_s27 = sand.u32 1, %s2861_s9   ;;  %p4345_p12 = scmp.ge.s32.totalorder %s2873_s12, 2 }
 0x5f9   : > { %s2482_s22 = scalar_lea.sflag [#allocation4], %s2481_s27 }
 0x5fa   : > { %p2696_p13 = pnand %p4345_p12, %p2940_p6 }
 0x5fc   : > { %p2697_p0 = pneg %p2696_p13 }
 0x5fe   : > { %2856 = dma.done.wait (%p2697_p0), %s2482_s22, 32  }
 0x5ff   : > { %2858 = vsyncadd (%p2697_p0), %s2482_s22, 4294967264  ;;  %p16_p5 = scmp.ge.s32.totalorder %s2956_s21, 4   ;;  %s4346_s9 = smov %s2865_s10 }
 0x600   : > { %s4347_s10 = smov %s2869_s11  ;;  %s4348_s11 = smov %s2966_s25 }
 0x601   : > { %s4349_s12 = smov %s2956_s21  ;;  %18 = sbr.rel (!%p16_p5) target bundleno = 6 (0x6), region = 78 }
 0x606   :  { %2488 = vsyncpa [#allocation3], 1 }
 0x607   :  { %2490 = vsyncpa [#allocation3 + $0x1], 1 }
 0x608   :  { %2491 = vsyncpa [#allocation4], 1 }
 0x609   :  { %2493 = vsyncpa [#allocation4 + $0x1], 1 }
 0x60a   :  { %2494 = vsyncpa [#allocation5], 1 }
 0x60b   :  { %2496 = vsyncpa [#allocation5 + $0x1], 1 }

</bundles_post_ra>
